<compile_context>
chip_gen: v7x
topology: tpu7x:2x2x1
jax: 0.10.0
libtpu: 0.0.40
codegen_flags: <defaults>
</compile_context>

<pallas_src>
import functools

import jax
import jax.numpy as jnp
from jax.experimental import pallas as pl
from jax.experimental.pallas import tpu as pltpu

IN_FEAT = 784   # 28 * 28
LATENT = 10


def vae_kernel(x_ref, eps_ref,
               ew1, eb1, ew2, eb2, ew3m, eb3m, ew3s, eb3s,
               dw1, db1, dw2, db2, dw3, db3,
               xhat_ref, kld_ref):
    f32 = jnp.float32
    bf16 = jnp.bfloat16

    # ---- encoder: Linear(784,256)+ReLU, Linear(256,64)+ReLU, Linear(64,20)+ReLU
    x = x_ref[...]                                               # bf16 block
    h = jnp.maximum(
        jnp.dot(x, ew1[...], preferred_element_type=f32) + eb1[...], 0.0)
    h = jnp.maximum(
        jnp.dot(h.astype(bf16), ew2[...], preferred_element_type=f32) + eb2[...], 0.0)
    h16 = h.astype(bf16)

    # encoder layer 3 split into mu / sigma heads == torch.chunk(2, dim=1) of
    # the 20-wide ReLU output (ReLU applied per head is identical).
    mu = jnp.maximum(
        jnp.dot(h16, ew3m[...], preferred_element_type=f32) + eb3m[...], 0.0)
    sigma = jnp.maximum(
        jnp.dot(h16, ew3s[...], preferred_element_type=f32) + eb3s[...], 0.0)

    # ---- reparameterization: z = mu + sigma * eps   (f32 on the VPU)
    z = mu + sigma * eps_ref[...].astype(f32)

    # ---- decoder: Linear(10,64)+ReLU, Linear(64,256)+ReLU, Linear(256,784)+Sigmoid
    d = jnp.maximum(
        jnp.dot(z.astype(bf16), dw1[...], preferred_element_type=f32) + db1[...], 0.0)
    d = jnp.maximum(
        jnp.dot(d.astype(bf16), dw2[...], preferred_element_type=f32) + db2[...], 0.0)
    logits = jnp.dot(d.astype(bf16), dw3[...], preferred_element_type=f32) + db3[...]
    # f32 sigmoid (EUP stays off the DMA critical path, v5e-safe), bf16 store:
    # halves the dominant x_hat writeback stream.
    xhat_ref[...] = jax.nn.sigmoid(logits).astype(bf16)

    # ---- per-row KLD partials: 0.5 * sum_j(mu^2 + s^2 - log(1e-8 + s^2) - 1)
    s2 = sigma * sigma
    kld_ref[...] = 0.5 * jnp.sum(
        mu * mu + s2 - jnp.log(1e-8 + s2) - 1.0, axis=1, keepdims=True)


def prepare_params(raw_params):
    """PyTorch-layout params ((in,out) weights, (1,out) biases, 6 Linears) ->
    kernel layout: encoder layer 3 split into mu/sigma heads, weights bf16
    (halves weight DMA), biases f32 (tiny, added to f32 accumulators)."""
    (ew1, eb1, ew2, eb2, ew3, eb3, dw1, db1, dw2, db2, dw3, db3) = raw_params
    ew3m, ew3s = ew3[:, :LATENT], ew3[:, LATENT:]
    eb3m, eb3s = eb3[:, :LATENT], eb3[:, LATENT:]
    ws = [ew1, ew2, ew3m, ew3s, dw1, dw2, dw3]
    bs = [eb1, eb2, eb3m, eb3s, db1, db2, db3]
    out = []
    for w, b in zip(ws, bs):
        out.append(w.astype(jnp.bfloat16))
        out.append(b.astype(jnp.float32))
    return tuple(out)


def _round_up(n, m):
    return ((n + m - 1) // m) * m


@functools.partial(jax.jit, static_argnames=("bm", "single_buffer_weights"))
def _vae_forward_impl(x_nchw, eps, params, *, bm, single_buffer_weights):
    B = x_nchw.shape[0]
    # bf16 at the pallas_call boundary: halves the x / eps input HBM streams
    # (the MXU already consumed bf16 x, so no additional accuracy loss).
    x_flat = x_nchw.reshape(B, IN_FEAT).astype(jnp.bfloat16)
    eps = eps.astype(jnp.bfloat16)

    # Batch tile: multiple of 8 (sublanes), big enough to amortize per-step
    # overhead, capped so the 1-D "parallel" grid has >= 2 steps whenever the
    # batch allows it (v7x has 2 TensorCores; a 1-step grid idles one).
    B8 = max(8, _round_up(B, 8))
    bm_cap = _round_up(pl.cdiv(B8, 2), 8) if B8 > 8 else B8
    BM = max(8, _round_up(min(bm, bm_cap), 8))
    Bp = _round_up(B8, BM)
    if Bp != B:
        x_flat = jnp.pad(x_flat, ((0, Bp - B), (0, 0)))
        eps = jnp.pad(eps, ((0, Bp - B), (0, 0)))

    grid = (Bp // BM,)

    def batch_spec(width):
        return pl.BlockSpec((BM, width), lambda i: (i, 0))

    def const_spec(arr):
        # Full-array block, constant index -> fetched once, VMEM-resident.
        if single_buffer_weights:
            # No dead second buffer for blocks that never change.
            return pl.BlockSpec(arr.shape, lambda i: (0, 0),
                                pipeline_mode=pl.Buffered(1))
        return pl.BlockSpec(arr.shape, lambda i: (0, 0))

    in_specs = [batch_spec(IN_FEAT), batch_spec(LATENT)]
    in_specs += [const_spec(p) for p in params]

    xhat_flat, kld_rows = pl.pallas_call(
        vae_kernel,
        out_shape=(
            jax.ShapeDtypeStruct((Bp, IN_FEAT), jnp.bfloat16),   # bf16 writeback
            jax.ShapeDtypeStruct((Bp, 1), jnp.float32),
        ),
        grid=grid,
        in_specs=in_specs,
        out_specs=(batch_spec(IN_FEAT), batch_spec(1)),
        compiler_params=pltpu.CompilerParams(
            dimension_semantics=("parallel",),
            # Headroom for larger user-chosen bm; below v7x's 64 MiB physical
            # VMEM and well below v5e/v6e's 128 MiB.
            vmem_limit_bytes=48 * 1024 * 1024),
    )(x_flat, eps, *params)

    if Bp != B:                    # drop padded batch rows (garbage xhat/kld)
        xhat_flat = xhat_flat[:B]
        kld_rows = kld_rows[:B]
    x_hat = xhat_flat.reshape(B, 1, 28, 28)        # bf16; no column-slice copy
    kld = jnp.sum(kld_rows[:, 0]) / jnp.float32(B * 28 * 28)
    return x_hat, kld


def vae_forward(x_nchw, eps, params, *, bm=512):
    """VAE forward. x_hat is returned in bfloat16 (halves the HBM writeback of
    this bandwidth-bound kernel); kld is a float32 scalar."""
    try:
        return _vae_forward_impl(x_nchw, eps, params, bm=bm,
                                 single_buffer_weights=True)
    except Exception:
        # pipeline_mode=pl.Buffered(1) unsupported on this jax build: fall back
        # to default double-buffered weight blocks (math is identical).
        return _vae_forward_impl(x_nchw, eps, params, bm=bm,
                                 single_buffer_weights=False)


def init_params(key):
    """Deterministic synthetic parameters in PyTorch-equivalent layout:
    Linear weights stored as (in, out) (transposed vs torch's (out, in)),
    biases as (1, out)."""
    dims = [(784, 256), (256, 64), (64, 20),      # encoder
            (10, 64), (64, 256), (256, 784)]      # decoder
    params = []
    keys = jax.random.split(key, len(dims))
    for k, (fan_in, fan_out) in zip(keys, dims):
        kw, kb = jax.random.split(k)
        bound = 1.0 / jnp.sqrt(fan_in)
        w = jax.random.uniform(kw, (fan_in, fan_out), jnp.float32, -bound, bound)
        b = jax.random.uniform(kb, (1, fan_out), jnp.float32, -bound, bound)
        params += [w, b]
    return tuple(params)


def vae_reference(x_nchw, eps, raw_params):
    """Pure-JAX f32 reference mirroring the PyTorch module."""
    (ew1, eb1, ew2, eb2, ew3, eb3, dw1, db1, dw2, db2, dw3, db3) = raw_params
    B = x_nchw.shape[0]
    x = x_nchw.reshape(B, IN_FEAT)
    h = jnp.maximum(x @ ew1 + eb1, 0.0)
    h = jnp.maximum(h @ ew2 + eb2, 0.0)
    h_ = jnp.maximum(h @ ew3 + eb3, 0.0)
    mu, sigma = h_[:, :LATENT], h_[:, LATENT:]
    z = mu + sigma * eps
    d = jnp.maximum(z @ dw1 + db1, 0.0)
    d = jnp.maximum(d @ dw2 + db2, 0.0)
    x_hat = jax.nn.sigmoid(d @ dw3 + db3).reshape(B, 1, 28, 28)
    s2 = sigma * sigma
    kld = 0.5 * jnp.sum(mu * mu + s2 - jnp.log(1e-8 + s2) - 1.0) / (B * 28 * 28)
    return x_hat, kld


if __name__ == "__main__":
    key = jax.random.PRNGKey(0)
    k_params, k_x, k_eps = jax.random.split(key, 3)

    B = 2
    raw_params = init_params(k_params)
    params = prepare_params(raw_params)

    x = jax.random.uniform(k_x, (B, 1, 28, 28), jnp.float32)   # NCHW input
    eps = jax.random.normal(k_eps, (B, LATENT), jnp.float32)   # randn_like(sigma)

    x_hat, kld = vae_forward(x, eps, params)
    jax.block_until_ready((x_hat, kld))

    assert x_hat.shape == (B, 1, 28, 28)
    assert kld.shape == ()

    # correctness vs f32 reference (loose tolerance: bf16 weights/IO in kernel)
    x_ref, kld_ref = vae_reference(x, eps, raw_params)
    assert jnp.allclose(x_hat.astype(jnp.float32), x_ref, atol=5e-2, rtol=5e-2)
    assert jnp.allclose(kld, kld_ref, atol=5e-2, rtol=5e-2)

    print("KERNEL_OK")
</pallas_src>

<mosaic_0001>
module attributes {stable_mosaic.version = 11 : i64} {
  func.func @vae_kernel(%arg0: i32, %arg1: memref<8x784xbf16, #tpu.memory_space<vmem>>, %arg2: memref<8x10xbf16, #tpu.memory_space<vmem>>, %arg3: memref<784x256xbf16, #tpu.memory_space<vmem>>, %arg4: memref<1x256xf32, #tpu.memory_space<vmem>>, %arg5: memref<256x64xbf16, #tpu.memory_space<vmem>>, %arg6: memref<1x64xf32, #tpu.memory_space<vmem>>, %arg7: memref<64x10xbf16, #tpu.memory_space<vmem>>, %arg8: memref<1x10xf32, #tpu.memory_space<vmem>>, %arg9: memref<64x10xbf16, #tpu.memory_space<vmem>>, %arg10: memref<1x10xf32, #tpu.memory_space<vmem>>, %arg11: memref<10x64xbf16, #tpu.memory_space<vmem>>, %arg12: memref<1x64xf32, #tpu.memory_space<vmem>>, %arg13: memref<64x256xbf16, #tpu.memory_space<vmem>>, %arg14: memref<1x256xf32, #tpu.memory_space<vmem>>, %arg15: memref<256x784xbf16, #tpu.memory_space<vmem>>, %arg16: memref<1x784xf32, #tpu.memory_space<vmem>>, %arg17: memref<8x784xbf16, #tpu.memory_space<vmem>>, %arg18: memref<8x1xf32, #tpu.memory_space<vmem>>) attributes {dimension_semantics = [#tpu.dimension_semantics<parallel>], iteration_bounds = array<i64: 1>, scalar_prefetch = 0 : i64, scratch_operands = 0 : i64, tpu.core_type = #tpu.core_type<tc>, window_params = [{transform_indices = @transform_0, window_bounds = array<i64: 8, 784>}, {transform_indices = @transform_1, window_bounds = array<i64: 8, 10>}, {pipeline_mode = #tpu.pipeline_mode<synchronous>, transform_indices = @transform_2, window_bounds = array<i64: 784, 256>}, {pipeline_mode = #tpu.pipeline_mode<synchronous>, transform_indices = @transform_3, window_bounds = array<i64: 1, 256>}, {pipeline_mode = #tpu.pipeline_mode<synchronous>, transform_indices = @transform_4, window_bounds = array<i64: 256, 64>}, {pipeline_mode = #tpu.pipeline_mode<synchronous>, transform_indices = @transform_5, window_bounds = array<i64: 1, 64>}, {pipeline_mode = #tpu.pipeline_mode<synchronous>, transform_indices = @transform_6, window_bounds = array<i64: 64, 10>}, {pipeline_mode = #tpu.pipeline_mode<synchronous>, transform_indices = @transform_7, window_bounds = array<i64: 1, 10>}, {pipeline_mode = #tpu.pipeline_mode<synchronous>, transform_indices = @transform_8, window_bounds = array<i64: 64, 10>}, {pipeline_mode = #tpu.pipeline_mode<synchronous>, transform_indices = @transform_9, window_bounds = array<i64: 1, 10>}, {pipeline_mode = #tpu.pipeline_mode<synchronous>, transform_indices = @transform_10, window_bounds = array<i64: 10, 64>}, {pipeline_mode = #tpu.pipeline_mode<synchronous>, transform_indices = @transform_11, window_bounds = array<i64: 1, 64>}, {pipeline_mode = #tpu.pipeline_mode<synchronous>, transform_indices = @transform_12, window_bounds = array<i64: 64, 256>}, {pipeline_mode = #tpu.pipeline_mode<synchronous>, transform_indices = @transform_13, window_bounds = array<i64: 1, 256>}, {pipeline_mode = #tpu.pipeline_mode<synchronous>, transform_indices = @transform_14, window_bounds = array<i64: 256, 784>}, {pipeline_mode = #tpu.pipeline_mode<synchronous>, transform_indices = @transform_15, window_bounds = array<i64: 1, 784>}, {transform_indices = @transform_16, window_bounds = array<i64: 8, 784>}, {transform_indices = @transform_17, window_bounds = array<i64: 8, 1>}]} {
    %c0 = arith.constant 0 : index
    %c0_0 = arith.constant 0 : index
    %0 = vector.load %arg1[%c0, %c0_0] : memref<8x784xbf16, #tpu.memory_space<vmem>>, vector<8x784xbf16>
    %c0_1 = arith.constant 0 : index
    %c0_2 = arith.constant 0 : index
    %1 = vector.load %arg3[%c0_1, %c0_2] : memref<784x256xbf16, #tpu.memory_space<vmem>>, vector<784x256xbf16>
    %cst = arith.constant dense<0.000000e+00> : vector<8x256xf32>
    %2 = tpu.matmul %0, %1, %cst {dimension_numbers = #tpu.dot_dimension_numbers<[1], [0], [0], [1], [0, 0, 1, 1], [], []>} : vector<8x784xbf16>, vector<784x256xbf16>, vector<8x256xf32> -> vector<8x256xf32>
    %c0_3 = arith.constant 0 : index
    %c0_4 = arith.constant 0 : index
    %3 = vector.load %arg4[%c0_3, %c0_4] : memref<1x256xf32, #tpu.memory_space<vmem>>, vector<1x256xf32>
    %4 = vector.broadcast %3 : vector<1x256xf32> to vector<8x256xf32>
    %5 = arith.addf %2, %4 : vector<8x256xf32>
    %cst_5 = arith.constant 0.000000e+00 : f32
    %6 = vector.broadcast %cst_5 : f32 to vector<8x256xf32>
    %7 = arith.maximumf %5, %6 : vector<8x256xf32>
    %8 = arith.truncf %7 : vector<8x256xf32> to vector<8x256xbf16>
    %c0_6 = arith.constant 0 : index
    %c0_7 = arith.constant 0 : index
    %9 = vector.load %arg5[%c0_6, %c0_7] : memref<256x64xbf16, #tpu.memory_space<vmem>>, vector<256x64xbf16>
    %cst_8 = arith.constant dense<0.000000e+00> : vector<8x64xf32>
    %10 = tpu.matmul %8, %9, %cst_8 {dimension_numbers = #tpu.dot_dimension_numbers<[1], [0], [0], [1], [0, 0, 1, 1], [], []>} : vector<8x256xbf16>, vector<256x64xbf16>, vector<8x64xf32> -> vector<8x64xf32>
    %c0_9 = arith.constant 0 : index
    %c0_10 = arith.constant 0 : index
    %11 = vector.load %arg6[%c0_9, %c0_10] : memref<1x64xf32, #tpu.memory_space<vmem>>, vector<1x64xf32>
    %12 = vector.broadcast %11 : vector<1x64xf32> to vector<8x64xf32>
    %13 = arith.addf %10, %12 : vector<8x64xf32>
    %cst_11 = arith.constant 0.000000e+00 : f32
    %14 = vector.broadcast %cst_11 : f32 to vector<8x64xf32>
    %15 = arith.maximumf %13, %14 : vector<8x64xf32>
    %16 = arith.truncf %15 : vector<8x64xf32> to vector<8x64xbf16>
    %c0_12 = arith.constant 0 : index
    %c0_13 = arith.constant 0 : index
    %17 = vector.load %arg7[%c0_12, %c0_13] : memref<64x10xbf16, #tpu.memory_space<vmem>>, vector<64x10xbf16>
    %cst_14 = arith.constant dense<0.000000e+00> : vector<8x10xf32>
    %18 = tpu.matmul %16, %17, %cst_14 {dimension_numbers = #tpu.dot_dimension_numbers<[1], [0], [0], [1], [0, 0, 1, 1], [], []>} : vector<8x64xbf16>, vector<64x10xbf16>, vector<8x10xf32> -> vector<8x10xf32>
    %c0_15 = arith.constant 0 : index
    %c0_16 = arith.constant 0 : index
    %19 = vector.load %arg8[%c0_15, %c0_16] : memref<1x10xf32, #tpu.memory_space<vmem>>, vector<1x10xf32>
    %20 = vector.broadcast %19 : vector<1x10xf32> to vector<8x10xf32>
    %21 = arith.addf %18, %20 : vector<8x10xf32>
    %cst_17 = arith.constant 0.000000e+00 : f32
    %22 = vector.broadcast %cst_17 : f32 to vector<8x10xf32>
    %23 = arith.maximumf %21, %22 : vector<8x10xf32>
    %c0_18 = arith.constant 0 : index
    %c0_19 = arith.constant 0 : index
    %24 = vector.load %arg9[%c0_18, %c0_19] : memref<64x10xbf16, #tpu.memory_space<vmem>>, vector<64x10xbf16>
    %cst_20 = arith.constant dense<0.000000e+00> : vector<8x10xf32>
    %25 = tpu.matmul %16, %24, %cst_20 {dimension_numbers = #tpu.dot_dimension_numbers<[1], [0], [0], [1], [0, 0, 1, 1], [], []>} : vector<8x64xbf16>, vector<64x10xbf16>, vector<8x10xf32> -> vector<8x10xf32>
    %c0_21 = arith.constant 0 : index
    %c0_22 = arith.constant 0 : index
    %26 = vector.load %arg10[%c0_21, %c0_22] : memref<1x10xf32, #tpu.memory_space<vmem>>, vector<1x10xf32>
    %27 = vector.broadcast %26 : vector<1x10xf32> to vector<8x10xf32>
    %28 = arith.addf %25, %27 : vector<8x10xf32>
    %cst_23 = arith.constant 0.000000e+00 : f32
    %29 = vector.broadcast %cst_23 : f32 to vector<8x10xf32>
    %30 = arith.maximumf %28, %29 : vector<8x10xf32>
    %c0_24 = arith.constant 0 : index
    %c0_25 = arith.constant 0 : index
    %31 = vector.load %arg2[%c0_24, %c0_25] : memref<8x10xbf16, #tpu.memory_space<vmem>>, vector<8x10xbf16>
    %32 = arith.extf %31 : vector<8x10xbf16> to vector<8x10xf32>
    %33 = arith.mulf %30, %32 : vector<8x10xf32>
    %34 = arith.addf %23, %33 : vector<8x10xf32>
    %35 = arith.truncf %34 : vector<8x10xf32> to vector<8x10xbf16>
    %c0_26 = arith.constant 0 : index
    %c0_27 = arith.constant 0 : index
    %36 = vector.load %arg11[%c0_26, %c0_27] : memref<10x64xbf16, #tpu.memory_space<vmem>>, vector<10x64xbf16>
    %cst_28 = arith.constant dense<0.000000e+00> : vector<8x64xf32>
    %37 = tpu.matmul %35, %36, %cst_28 {dimension_numbers = #tpu.dot_dimension_numbers<[1], [0], [0], [1], [0, 0, 1, 1], [], []>} : vector<8x10xbf16>, vector<10x64xbf16>, vector<8x64xf32> -> vector<8x64xf32>
    %c0_29 = arith.constant 0 : index
    %c0_30 = arith.constant 0 : index
    %38 = vector.load %arg12[%c0_29, %c0_30] : memref<1x64xf32, #tpu.memory_space<vmem>>, vector<1x64xf32>
    %39 = vector.broadcast %38 : vector<1x64xf32> to vector<8x64xf32>
    %40 = arith.addf %37, %39 : vector<8x64xf32>
    %cst_31 = arith.constant 0.000000e+00 : f32
    %41 = vector.broadcast %cst_31 : f32 to vector<8x64xf32>
    %42 = arith.maximumf %40, %41 : vector<8x64xf32>
    %43 = arith.truncf %42 : vector<8x64xf32> to vector<8x64xbf16>
    %c0_32 = arith.constant 0 : index
    %c0_33 = arith.constant 0 : index
    %44 = vector.load %arg13[%c0_32, %c0_33] : memref<64x256xbf16, #tpu.memory_space<vmem>>, vector<64x256xbf16>
    %cst_34 = arith.constant dense<0.000000e+00> : vector<8x256xf32>
    %45 = tpu.matmul %43, %44, %cst_34 {dimension_numbers = #tpu.dot_dimension_numbers<[1], [0], [0], [1], [0, 0, 1, 1], [], []>} : vector<8x64xbf16>, vector<64x256xbf16>, vector<8x256xf32> -> vector<8x256xf32>
    %c0_35 = arith.constant 0 : index
    %c0_36 = arith.constant 0 : index
    %46 = vector.load %arg14[%c0_35, %c0_36] : memref<1x256xf32, #tpu.memory_space<vmem>>, vector<1x256xf32>
    %47 = vector.broadcast %46 : vector<1x256xf32> to vector<8x256xf32>
    %48 = arith.addf %45, %47 : vector<8x256xf32>
    %cst_37 = arith.constant 0.000000e+00 : f32
    %49 = vector.broadcast %cst_37 : f32 to vector<8x256xf32>
    %50 = arith.maximumf %48, %49 : vector<8x256xf32>
    %51 = arith.truncf %50 : vector<8x256xf32> to vector<8x256xbf16>
    %c0_38 = arith.constant 0 : index
    %c0_39 = arith.constant 0 : index
    %52 = vector.load %arg15[%c0_38, %c0_39] : memref<256x784xbf16, #tpu.memory_space<vmem>>, vector<256x784xbf16>
    %cst_40 = arith.constant dense<0.000000e+00> : vector<8x784xf32>
    %53 = tpu.matmul %51, %52, %cst_40 {dimension_numbers = #tpu.dot_dimension_numbers<[1], [0], [0], [1], [0, 0, 1, 1], [], []>} : vector<8x256xbf16>, vector<256x784xbf16>, vector<8x784xf32> -> vector<8x784xf32>
    %c0_41 = arith.constant 0 : index
    %c0_42 = arith.constant 0 : index
    %54 = vector.load %arg16[%c0_41, %c0_42] : memref<1x784xf32, #tpu.memory_space<vmem>>, vector<1x784xf32>
    %55 = vector.broadcast %54 : vector<1x784xf32> to vector<8x784xf32>
    %56 = arith.addf %53, %55 : vector<8x784xf32>
    %57 = arith.negf %56 : vector<8x784xf32>
    %58 = math.exp %57 : vector<8x784xf32>
    %cst_43 = arith.constant 1.000000e+00 : f32
    %59 = vector.broadcast %cst_43 : f32 to vector<8x784xf32>
    %60 = arith.addf %59, %58 : vector<8x784xf32>
    %61 = arith.divf %59, %60 : vector<8x784xf32>
    %62 = arith.truncf %61 : vector<8x784xf32> to vector<8x784xbf16>
    %c0_44 = arith.constant 0 : index
    %c0_45 = arith.constant 0 : index
    %63 = vector.load %arg17[%c0_44, %c0_45] : memref<8x784xbf16, #tpu.memory_space<vmem>>, vector<8x784xbf16>
    tpu.vector_store %arg17[%c0_44, %c0_45], %62 {strides = array<i32>} : memref<8x784xbf16, #tpu.memory_space<vmem>>, vector<8x784xbf16>,
    %64 = arith.mulf %30, %30 : vector<8x10xf32>
    %65 = arith.mulf %23, %23 : vector<8x10xf32>
    %66 = arith.addf %65, %64 : vector<8x10xf32>
    %cst_46 = arith.constant 9.99999993E-9 : f32
    %67 = vector.broadcast %cst_46 : f32 to vector<8x10xf32>
    %68 = arith.addf %67, %64 : vector<8x10xf32>
    %69 = math.log %68 : vector<8x10xf32>
    %70 = arith.subf %66, %69 : vector<8x10xf32>
    %cst_47 = arith.constant 1.000000e+00 : f32
    %71 = vector.broadcast %cst_47 : f32 to vector<8x10xf32>
    %72 = arith.subf %70, %71 : vector<8x10xf32>
    %cst_48 = arith.constant dense<0.000000e+00> : vector<8xf32>
    %73 = vector.multi_reduction <add>, %72, %cst_48 [1] : vector<8x10xf32> to vector<8xf32>
    %74 = vector.shape_cast %73 : vector<8xf32> to vector<8x1xf32>
    %cst_49 = arith.constant 5.000000e-01 : f32
    %75 = vector.broadcast %cst_49 : f32 to vector<8x1xf32>
    %76 = arith.mulf %75, %74 : vector<8x1xf32>
    %c0_50 = arith.constant 0 : index
    %c0_51 = arith.constant 0 : index
    %77 = vector.load %arg18[%c0_50, %c0_51] : memref<8x1xf32, #tpu.memory_space<vmem>>, vector<8x1xf32>
    tpu.vector_store %arg18[%c0_50, %c0_51], %76 {strides = array<i32>} : memref<8x1xf32, #tpu.memory_space<vmem>>, vector<8x1xf32>,
    return
  }
  func.func @transform_0(%arg0: i32) -> (i32, i32) {
    %c0_i32 = arith.constant 0 : i32
    %c0_i32_0 = arith.constant 0 : i32
    return %arg0, %c0_i32 : i32, i32
  }
  func.func @transform_1(%arg0: i32) -> (i32, i32) {
    %c0_i32 = arith.constant 0 : i32
    %c0_i32_0 = arith.constant 0 : i32
    return %arg0, %c0_i32 : i32, i32
  }
  func.func @transform_2(%arg0: i32) -> (i32, i32) {
    %c0_i32 = arith.constant 0 : i32
    %c0_i32_0 = arith.constant 0 : i32
    %c0_i32_1 = arith.constant 0 : i32
    return %c0_i32, %c0_i32_0 : i32, i32
  }
  func.func @transform_3(%arg0: i32) -> (i32, i32) {
    %c0_i32 = arith.constant 0 : i32
    %c0_i32_0 = arith.constant 0 : i32
    %c0_i32_1 = arith.constant 0 : i32
    return %c0_i32, %c0_i32_0 : i32, i32
  }
  func.func @transform_4(%arg0: i32) -> (i32, i32) {
    %c0_i32 = arith.constant 0 : i32
    %c0_i32_0 = arith.constant 0 : i32
    %c0_i32_1 = arith.constant 0 : i32
    return %c0_i32, %c0_i32_0 : i32, i32
  }
  func.func @transform_5(%arg0: i32) -> (i32, i32) {
    %c0_i32 = arith.constant 0 : i32
    %c0_i32_0 = arith.constant 0 : i32
    %c0_i32_1 = arith.constant 0 : i32
    return %c0_i32, %c0_i32_0 : i32, i32
  }
  func.func @transform_6(%arg0: i32) -> (i32, i32) {
    %c0_i32 = arith.constant 0 : i32
    %c0_i32_0 = arith.constant 0 : i32
    %c0_i32_1 = arith.constant 0 : i32
    return %c0_i32, %c0_i32_0 : i32, i32
  }
  func.func @transform_7(%arg0: i32) -> (i32, i32) {
    %c0_i32 = arith.constant 0 : i32
    %c0_i32_0 = arith.constant 0 : i32
    %c0_i32_1 = arith.constant 0 : i32
    return %c0_i32, %c0_i32_0 : i32, i32
  }
  func.func @transform_8(%arg0: i32) -> (i32, i32) {
    %c0_i32 = arith.constant 0 : i32
    %c0_i32_0 = arith.constant 0 : i32
    %c0_i32_1 = arith.constant 0 : i32
    return %c0_i32, %c0_i32_0 : i32, i32
  }
  func.func @transform_9(%arg0: i32) -> (i32, i32) {
    %c0_i32 = arith.constant 0 : i32
    %c0_i32_0 = arith.constant 0 : i32
    %c0_i32_1 = arith.constant 0 : i32
    return %c0_i32, %c0_i32_0 : i32, i32
  }
  func.func @transform_10(%arg0: i32) -> (i32, i32) {
    %c0_i32 = arith.constant 0 : i32
    %c0_i32_0 = arith.constant 0 : i32
    %c0_i32_1 = arith.constant 0 : i32
    return %c0_i32, %c0_i32_0 : i32, i32
  }
  func.func @transform_11(%arg0: i32) -> (i32, i32) {
    %c0_i32 = arith.constant 0 : i32
    %c0_i32_0 = arith.constant 0 : i32
    %c0_i32_1 = arith.constant 0 : i32
    return %c0_i32, %c0_i32_0 : i32, i32
  }
  func.func @transform_12(%arg0: i32) -> (i32, i32) {
    %c0_i32 = arith.constant 0 : i32
    %c0_i32_0 = arith.constant 0 : i32
    %c0_i32_1 = arith.constant 0 : i32
    return %c0_i32, %c0_i32_0 : i32, i32
  }
  func.func @transform_13(%arg0: i32) -> (i32, i32) {
    %c0_i32 = arith.constant 0 : i32
    %c0_i32_0 = arith.constant 0 : i32
    %c0_i32_1 = arith.constant 0 : i32
    return %c0_i32, %c0_i32_0 : i32, i32
  }
  func.func @transform_14(%arg0: i32) -> (i32, i32) {
    %c0_i32 = arith.constant 0 : i32
    %c0_i32_0 = arith.constant 0 : i32
    %c0_i32_1 = arith.constant 0 : i32
    return %c0_i32, %c0_i32_0 : i32, i32
  }
  func.func @transform_15(%arg0: i32) -> (i32, i32) {
    %c0_i32 = arith.constant 0 : i32
    %c0_i32_0 = arith.constant 0 : i32
    %c0_i32_1 = arith.constant 0 : i32
    return %c0_i32, %c0_i32_0 : i32, i32
  }
  func.func @transform_16(%arg0: i32) -> (i32, i32) {
    %c0_i32 = arith.constant 0 : i32
    %c0_i32_0 = arith.constant 0 : i32
    return %arg0, %c0_i32 : i32, i32
  }
  func.func @transform_17(%arg0: i32) -> (i32, i32) {
    %c0_i32 = arith.constant 0 : i32
    %c0_i32_0 = arith.constant 0 : i32
    return %arg0, %c0_i32 : i32, i32
  }
}

module attributes {stable_mosaic.version = 11 : i64} {
  func.func @vae_kernel(%arg0: i32, %arg1: memref<8x784xbf16, #tpu.memory_space<vmem>>, %arg2: memref<8x10xbf16, #tpu.memory_space<vmem>>, %arg3: memref<784x256xbf16, #tpu.memory_space<vmem>>, %arg4: memref<1x256xf32, #tpu.memory_space<vmem>>, %arg5: memref<256x64xbf16, #tpu.memory_space<vmem>>, %arg6: memref<1x64xf32, #tpu.memory_space<vmem>>, %arg7: memref<64x10xbf16, #tpu.memory_space<vmem>>, %arg8: memref<1x10xf32, #tpu.memory_space<vmem>>, %arg9: memref<64x10xbf16, #tpu.memory_space<vmem>>, %arg10: memref<1x10xf32, #tpu.memory_space<vmem>>, %arg11: memref<10x64xbf16, #tpu.memory_space<vmem>>, %arg12: memref<1x64xf32, #tpu.memory_space<vmem>>, %arg13: memref<64x256xbf16, #tpu.memory_space<vmem>>, %arg14: memref<1x256xf32, #tpu.memory_space<vmem>>, %arg15: memref<256x784xbf16, #tpu.memory_space<vmem>>, %arg16: memref<1x784xf32, #tpu.memory_space<vmem>>, %arg17: memref<8x784xbf16, #tpu.memory_space<vmem>>, %arg18: memref<8x1xf32, #tpu.memory_space<vmem>>) attributes {dimension_semantics = [#tpu.dimension_semantics<parallel>], iteration_bounds = array<i64: 1>, scalar_prefetch = 0 : i64, scratch_operands = 0 : i64, tpu.core_type = #tpu.core_type<tc>, window_params = [{transform_indices = @transform_0, window_bounds = array<i64: 8, 784>}, {transform_indices = @transform_1, window_bounds = array<i64: 8, 10>}, {pipeline_mode = #tpu.pipeline_mode<synchronous>, transform_indices = @transform_2, window_bounds = array<i64: 784, 256>}, {pipeline_mode = #tpu.pipeline_mode<synchronous>, transform_indices = @transform_3, window_bounds = array<i64: 1, 256>}, {pipeline_mode = #tpu.pipeline_mode<synchronous>, transform_indices = @transform_4, window_bounds = array<i64: 256, 64>}, {pipeline_mode = #tpu.pipeline_mode<synchronous>, transform_indices = @transform_5, window_bounds = array<i64: 1, 64>}, {pipeline_mode = #tpu.pipeline_mode<synchronous>, transform_indices = @transform_6, window_bounds = array<i64: 64, 10>}, {pipeline_mode = #tpu.pipeline_mode<synchronous>, transform_indices = @transform_7, window_bounds = array<i64: 1, 10>}, {pipeline_mode = #tpu.pipeline_mode<synchronous>, transform_indices = @transform_8, window_bounds = array<i64: 64, 10>}, {pipeline_mode = #tpu.pipeline_mode<synchronous>, transform_indices = @transform_9, window_bounds = array<i64: 1, 10>}, {pipeline_mode = #tpu.pipeline_mode<synchronous>, transform_indices = @transform_10, window_bounds = array<i64: 10, 64>}, {pipeline_mode = #tpu.pipeline_mode<synchronous>, transform_indices = @transform_11, window_bounds = array<i64: 1, 64>}, {pipeline_mode = #tpu.pipeline_mode<synchronous>, transform_indices = @transform_12, window_bounds = array<i64: 64, 256>}, {pipeline_mode = #tpu.pipeline_mode<synchronous>, transform_indices = @transform_13, window_bounds = array<i64: 1, 256>}, {pipeline_mode = #tpu.pipeline_mode<synchronous>, transform_indices = @transform_14, window_bounds = array<i64: 256, 784>}, {pipeline_mode = #tpu.pipeline_mode<synchronous>, transform_indices = @transform_15, window_bounds = array<i64: 1, 784>}, {transform_indices = @transform_16, window_bounds = array<i64: 8, 784>}, {transform_indices = @transform_17, window_bounds = array<i64: 8, 1>}]} {
    %c0 = arith.constant 0 : index
    %c0_0 = arith.constant 0 : index
    %0 = vector.load %arg1[%c0, %c0_0] : memref<8x784xbf16, #tpu.memory_space<vmem>>, vector<8x784xbf16>
    %c0_1 = arith.constant 0 : index
    %c0_2 = arith.constant 0 : index
    %1 = vector.load %arg3[%c0_1, %c0_2] : memref<784x256xbf16, #tpu.memory_space<vmem>>, vector<784x256xbf16>
    %cst = arith.constant dense<0.000000e+00> : vector<8x256xf32>
    %2 = tpu.matmul %0, %1, %cst {dimension_numbers = #tpu.dot_dimension_numbers<[1], [0], [0], [1], [0, 0, 1, 1], [], []>} : vector<8x784xbf16>, vector<784x256xbf16>, vector<8x256xf32> -> vector<8x256xf32>
    %c0_3 = arith.constant 0 : index
    %c0_4 = arith.constant 0 : index
    %3 = vector.load %arg4[%c0_3, %c0_4] : memref<1x256xf32, #tpu.memory_space<vmem>>, vector<1x256xf32>
    %4 = vector.broadcast %3 : vector<1x256xf32> to vector<8x256xf32>
    %5 = arith.addf %2, %4 : vector<8x256xf32>
    %cst_5 = arith.constant 0.000000e+00 : f32
    %6 = vector.broadcast %cst_5 : f32 to vector<8x256xf32>
    %7 = arith.maximumf %5, %6 : vector<8x256xf32>
    %8 = arith.truncf %7 : vector<8x256xf32> to vector<8x256xbf16>
    %c0_6 = arith.constant 0 : index
    %c0_7 = arith.constant 0 : index
    %9 = vector.load %arg5[%c0_6, %c0_7] : memref<256x64xbf16, #tpu.memory_space<vmem>>, vector<256x64xbf16>
    %cst_8 = arith.constant dense<0.000000e+00> : vector<8x64xf32>
    %10 = tpu.matmul %8, %9, %cst_8 {dimension_numbers = #tpu.dot_dimension_numbers<[1], [0], [0], [1], [0, 0, 1, 1], [], []>} : vector<8x256xbf16>, vector<256x64xbf16>, vector<8x64xf32> -> vector<8x64xf32>
    %c0_9 = arith.constant 0 : index
    %c0_10 = arith.constant 0 : index
    %11 = vector.load %arg6[%c0_9, %c0_10] : memref<1x64xf32, #tpu.memory_space<vmem>>, vector<1x64xf32>
    %12 = vector.broadcast %11 : vector<1x64xf32> to vector<8x64xf32>
    %13 = arith.addf %10, %12 : vector<8x64xf32>
    %cst_11 = arith.constant 0.000000e+00 : f32
    %14 = vector.broadcast %cst_11 : f32 to vector<8x64xf32>
    %15 = arith.maximumf %13, %14 : vector<8x64xf32>
    %16 = arith.truncf %15 : vector<8x64xf32> to vector<8x64xbf16>
    %c0_12 = arith.constant 0 : index
    %c0_13 = arith.constant 0 : index
    %17 = vector.load %arg7[%c0_12, %c0_13] : memref<64x10xbf16, #tpu.memory_space<vmem>>, vector<64x10xbf16>
    %cst_14 = arith.constant dense<0.000000e+00> : vector<8x10xf32>
    %18 = tpu.matmul %16, %17, %cst_14 {dimension_numbers = #tpu.dot_dimension_numbers<[1], [0], [0], [1], [0, 0, 1, 1], [], []>} : vector<8x64xbf16>, vector<64x10xbf16>, vector<8x10xf32> -> vector<8x10xf32>
    %c0_15 = arith.constant 0 : index
    %c0_16 = arith.constant 0 : index
    %19 = vector.load %arg8[%c0_15, %c0_16] : memref<1x10xf32, #tpu.memory_space<vmem>>, vector<1x10xf32>
    %20 = vector.broadcast %19 : vector<1x10xf32> to vector<8x10xf32>
    %21 = arith.addf %18, %20 : vector<8x10xf32>
    %cst_17 = arith.constant 0.000000e+00 : f32
    %22 = vector.broadcast %cst_17 : f32 to vector<8x10xf32>
    %23 = arith.maximumf %21, %22 : vector<8x10xf32>
    %c0_18 = arith.constant 0 : index
    %c0_19 = arith.constant 0 : index
    %24 = vector.load %arg9[%c0_18, %c0_19] : memref<64x10xbf16, #tpu.memory_space<vmem>>, vector<64x10xbf16>
    %cst_20 = arith.constant dense<0.000000e+00> : vector<8x10xf32>
    %25 = tpu.matmul %16, %24, %cst_20 {dimension_numbers = #tpu.dot_dimension_numbers<[1], [0], [0], [1], [0, 0, 1, 1], [], []>} : vector<8x64xbf16>, vector<64x10xbf16>, vector<8x10xf32> -> vector<8x10xf32>
    %c0_21 = arith.constant 0 : index
    %c0_22 = arith.constant 0 : index
    %26 = vector.load %arg10[%c0_21, %c0_22] : memref<1x10xf32, #tpu.memory_space<vmem>>, vector<1x10xf32>
    %27 = vector.broadcast %26 : vector<1x10xf32> to vector<8x10xf32>
    %28 = arith.addf %25, %27 : vector<8x10xf32>
    %cst_23 = arith.constant 0.000000e+00 : f32
    %29 = vector.broadcast %cst_23 : f32 to vector<8x10xf32>
    %30 = arith.maximumf %28, %29 : vector<8x10xf32>
    %c0_24 = arith.constant 0 : index
    %c0_25 = arith.constant 0 : index
    %31 = vector.load %arg2[%c0_24, %c0_25] : memref<8x10xbf16, #tpu.memory_space<vmem>>, vector<8x10xbf16>
    %32 = arith.extf %31 : vector<8x10xbf16> to vector<8x10xf32>
    %33 = arith.mulf %30, %32 : vector<8x10xf32>
    %34 = arith.addf %23, %33 : vector<8x10xf32>
    %35 = arith.truncf %34 : vector<8x10xf32> to vector<8x10xbf16>
    %c0_26 = arith.constant 0 : index
    %c0_27 = arith.constant 0 : index
    %36 = vector.load %arg11[%c0_26, %c0_27] : memref<10x64xbf16, #tpu.memory_space<vmem>>, vector<10x64xbf16>
    %cst_28 = arith.constant dense<0.000000e+00> : vector<8x64xf32>
    %37 = tpu.matmul %35, %36, %cst_28 {dimension_numbers = #tpu.dot_dimension_numbers<[1], [0], [0], [1], [0, 0, 1, 1], [], []>} : vector<8x10xbf16>, vector<10x64xbf16>, vector<8x64xf32> -> vector<8x64xf32>
    %c0_29 = arith.constant 0 : index
    %c0_30 = arith.constant 0 : index
    %38 = vector.load %arg12[%c0_29, %c0_30] : memref<1x64xf32, #tpu.memory_space<vmem>>, vector<1x64xf32>
    %39 = vector.broadcast %38 : vector<1x64xf32> to vector<8x64xf32>
    %40 = arith.addf %37, %39 : vector<8x64xf32>
    %cst_31 = arith.constant 0.000000e+00 : f32
    %41 = vector.broadcast %cst_31 : f32 to vector<8x64xf32>
    %42 = arith.maximumf %40, %41 : vector<8x64xf32>
    %43 = arith.truncf %42 : vector<8x64xf32> to vector<8x64xbf16>
    %c0_32 = arith.constant 0 : index
    %c0_33 = arith.constant 0 : index
    %44 = vector.load %arg13[%c0_32, %c0_33] : memref<64x256xbf16, #tpu.memory_space<vmem>>, vector<64x256xbf16>
    %cst_34 = arith.constant dense<0.000000e+00> : vector<8x256xf32>
    %45 = tpu.matmul %43, %44, %cst_34 {dimension_numbers = #tpu.dot_dimension_numbers<[1], [0], [0], [1], [0, 0, 1, 1], [], []>} : vector<8x64xbf16>, vector<64x256xbf16>, vector<8x256xf32> -> vector<8x256xf32>
    %c0_35 = arith.constant 0 : index
    %c0_36 = arith.constant 0 : index
    %46 = vector.load %arg14[%c0_35, %c0_36] : memref<1x256xf32, #tpu.memory_space<vmem>>, vector<1x256xf32>
    %47 = vector.broadcast %46 : vector<1x256xf32> to vector<8x256xf32>
    %48 = arith.addf %45, %47 : vector<8x256xf32>
    %cst_37 = arith.constant 0.000000e+00 : f32
    %49 = vector.broadcast %cst_37 : f32 to vector<8x256xf32>
    %50 = arith.maximumf %48, %49 : vector<8x256xf32>
    %51 = arith.truncf %50 : vector<8x256xf32> to vector<8x256xbf16>
    %c0_38 = arith.constant 0 : index
    %c0_39 = arith.constant 0 : index
    %52 = vector.load %arg15[%c0_38, %c0_39] : memref<256x784xbf16, #tpu.memory_space<vmem>>, vector<256x784xbf16>
    %cst_40 = arith.constant dense<0.000000e+00> : vector<8x784xf32>
    %53 = tpu.matmul %51, %52, %cst_40 {dimension_numbers = #tpu.dot_dimension_numbers<[1], [0], [0], [1], [0, 0, 1, 1], [], []>} : vector<8x256xbf16>, vector<256x784xbf16>, vector<8x784xf32> -> vector<8x784xf32>
    %c0_41 = arith.constant 0 : index
    %c0_42 = arith.constant 0 : index
    %54 = vector.load %arg16[%c0_41, %c0_42] : memref<1x784xf32, #tpu.memory_space<vmem>>, vector<1x784xf32>
    %55 = vector.broadcast %54 : vector<1x784xf32> to vector<8x784xf32>
    %56 = arith.addf %53, %55 : vector<8x784xf32>
    %57 = arith.negf %56 : vector<8x784xf32>
    %58 = math.exp %57 : vector<8x784xf32>
    %cst_43 = arith.constant 1.000000e+00 : f32
    %59 = vector.broadcast %cst_43 : f32 to vector<8x784xf32>
    %60 = arith.addf %59, %58 : vector<8x784xf32>
    %61 = arith.divf %59, %60 : vector<8x784xf32>
    %62 = arith.truncf %61 : vector<8x784xf32> to vector<8x784xbf16>
    %c0_44 = arith.constant 0 : index
    %c0_45 = arith.constant 0 : index
    %63 = vector.load %arg17[%c0_44, %c0_45] : memref<8x784xbf16, #tpu.memory_space<vmem>>, vector<8x784xbf16>
    tpu.vector_store %arg17[%c0_44, %c0_45], %62 {strides = array<i32>} : memref<8x784xbf16, #tpu.memory_space<vmem>>, vector<8x784xbf16>,
    %64 = arith.mulf %30, %30 : vector<8x10xf32>
    %65 = arith.mulf %23, %23 : vector<8x10xf32>
    %66 = arith.addf %65, %64 : vector<8x10xf32>
    %cst_46 = arith.constant 9.99999993E-9 : f32
    %67 = vector.broadcast %cst_46 : f32 to vector<8x10xf32>
    %68 = arith.addf %67, %64 : vector<8x10xf32>
    %69 = math.log %68 : vector<8x10xf32>
    %70 = arith.subf %66, %69 : vector<8x10xf32>
    %cst_47 = arith.constant 1.000000e+00 : f32
    %71 = vector.broadcast %cst_47 : f32 to vector<8x10xf32>
    %72 = arith.subf %70, %71 : vector<8x10xf32>
    %cst_48 = arith.constant dense<0.000000e+00> : vector<8xf32>
    %73 = vector.multi_reduction <add>, %72, %cst_48 [1] : vector<8x10xf32> to vector<8xf32>
    %74 = vector.shape_cast %73 : vector<8xf32> to vector<8x1xf32>
    %cst_49 = arith.constant 5.000000e-01 : f32
    %75 = vector.broadcast %cst_49 : f32 to vector<8x1xf32>
    %76 = arith.mulf %75, %74 : vector<8x1xf32>
    %c0_50 = arith.constant 0 : index
    %c0_51 = arith.constant 0 : index
    %77 = vector.load %arg18[%c0_50, %c0_51] : memref<8x1xf32, #tpu.memory_space<vmem>>, vector<8x1xf32>
    tpu.vector_store %arg18[%c0_50, %c0_51], %76 {strides = array<i32>} : memref<8x1xf32, #tpu.memory_space<vmem>>, vector<8x1xf32>,
    return
  }
  func.func @transform_0(%arg0: i32) -> (i32, i32) {
    %c0_i32 = arith.constant 0 : i32
    %c0_i32_0 = arith.constant 0 : i32
    return %arg0, %c0_i32 : i32, i32
  }
  func.func @transform_1(%arg0: i32) -> (i32, i32) {
    %c0_i32 = arith.constant 0 : i32
    %c0_i32_0 = arith.constant 0 : i32
    return %arg0, %c0_i32 : i32, i32
  }
  func.func @transform_2(%arg0: i32) -> (i32, i32) {
    %c0_i32 = arith.constant 0 : i32
    %c0_i32_0 = arith.constant 0 : i32
    %c0_i32_1 = arith.constant 0 : i32
    return %c0_i32, %c0_i32_0 : i32, i32
  }
  func.func @transform_3(%arg0: i32) -> (i32, i32) {
    %c0_i32 = arith.constant 0 : i32
    %c0_i32_0 = arith.constant 0 : i32
    %c0_i32_1 = arith.constant 0 : i32
    return %c0_i32, %c0_i32_0 : i32, i32
  }
  func.func @transform_4(%arg0: i32) -> (i32, i32) {
    %c0_i32 = arith.constant 0 : i32
    %c0_i32_0 = arith.constant 0 : i32
    %c0_i32_1 = arith.constant 0 : i32
    return %c0_i32, %c0_i32_0 : i32, i32
  }
  func.func @transform_5(%arg0: i32) -> (i32, i32) {
    %c0_i32 = arith.constant 0 : i32
    %c0_i32_0 = arith.constant 0 : i32
    %c0_i32_1 = arith.constant 0 : i32
    return %c0_i32, %c0_i32_0 : i32, i32
  }
  func.func @transform_6(%arg0: i32) -> (i32, i32) {
    %c0_i32 = arith.constant 0 : i32
    %c0_i32_0 = arith.constant 0 : i32
    %c0_i32_1 = arith.constant 0 : i32
    return %c0_i32, %c0_i32_0 : i32, i32
  }
  func.func @transform_7(%arg0: i32) -> (i32, i32) {
    %c0_i32 = arith.constant 0 : i32
    %c0_i32_0 = arith.constant 0 : i32
    %c0_i32_1 = arith.constant 0 : i32
    return %c0_i32, %c0_i32_0 : i32, i32
  }
  func.func @transform_8(%arg0: i32) -> (i32, i32) {
    %c0_i32 = arith.constant 0 : i32
    %c0_i32_0 = arith.constant 0 : i32
    %c0_i32_1 = arith.constant 0 : i32
    return %c0_i32, %c0_i32_0 : i32, i32
  }
  func.func @transform_9(%arg0: i32) -> (i32, i32) {
    %c0_i32 = arith.constant 0 : i32
    %c0_i32_0 = arith.constant 0 : i32
    %c0_i32_1 = arith.constant 0 : i32
    return %c0_i32, %c0_i32_0 : i32, i32
  }
  func.func @transform_10(%arg0: i32) -> (i32, i32) {
    %c0_i32 = arith.constant 0 : i32
    %c0_i32_0 = arith.constant 0 : i32
    %c0_i32_1 = arith.constant 0 : i32
    return %c0_i32, %c0_i32_0 : i32, i32
  }
  func.func @transform_11(%arg0: i32) -> (i32, i32) {
    %c0_i32 = arith.constant 0 : i32
    %c0_i32_0 = arith.constant 0 : i32
    %c0_i32_1 = arith.constant 0 : i32
    return %c0_i32, %c0_i32_0 : i32, i32
  }
  func.func @transform_12(%arg0: i32) -> (i32, i32) {
    %c0_i32 = arith.constant 0 : i32
    %c0_i32_0 = arith.constant 0 : i32
    %c0_i32_1 = arith.constant 0 : i32
    return %c0_i32, %c0_i32_0 : i32, i32
  }
  func.func @transform_13(%arg0: i32) -> (i32, i32) {
    %c0_i32 = arith.constant 0 : i32
    %c0_i32_0 = arith.constant 0 : i32
    %c0_i32_1 = arith.constant 0 : i32
    return %c0_i32, %c0_i32_0 : i32, i32
  }
  func.func @transform_14(%arg0: i32) -> (i32, i32) {
    %c0_i32 = arith.constant 0 : i32
    %c0_i32_0 = arith.constant 0 : i32
    %c0_i32_1 = arith.constant 0 : i32
    return %c0_i32, %c0_i32_0 : i32, i32
  }
  func.func @transform_15(%arg0: i32) -> (i32, i32) {
    %c0_i32 = arith.constant 0 : i32
    %c0_i32_0 = arith.constant 0 : i32
    %c0_i32_1 = arith.constant 0 : i32
    return %c0_i32, %c0_i32_0 : i32, i32
  }
  func.func @transform_16(%arg0: i32) -> (i32, i32) {
    %c0_i32 = arith.constant 0 : i32
    %c0_i32_0 = arith.constant 0 : i32
    return %arg0, %c0_i32 : i32, i32
  }
  func.func @transform_17(%arg0: i32) -> (i32, i32) {
    %c0_i32 = arith.constant 0 : i32
    %c0_i32_0 = arith.constant 0 : i32
    return %arg0, %c0_i32 : i32, i32
  }
}

</mosaic_0001>

<bundles_post_ra>
// kernel: _vae_forward_impl.1
= control target key start
LH: loop header
LB: loop body
LE: loop exit
PB: predicated region body
PF: predicated region fallthrough
CT: control target
= control target key end

     0   :  { %v3133_v41 = vmov 0   ;;  %vm684_vm0 = vcmask 130048   ;;  %vm3135_vm1 = vmmov 0   ;;  %vm1072_vm2 = vcmask 523264   ;;  %s4078_s2 = inlined_call_operand.vmem [shape: bf16[784,256], index: 2, kind: input, shape index: {}]   ;;  %s4079_s0 = inlined_call_operand.vmem [shape: bf16[8,784], index: 0, kind: input, shape index: {}]   ;;  %s4080_s4 = inlined_call_operand.vmem [shape: bf16[256,64], index: 4, kind: input, shape index: {}]   ;;  %s4081_s6 = inlined_call_operand.vmem [shape: bf16[64,10], index: 6, kind: input, shape index: {}]   ;;  %s4082_s3 = inlined_call_operand.vmem [shape: f32[1,256], index: 3, kind: input, shape index: {}]   ;;  %s4083_s8 = inlined_call_operand.vmem [shape: bf16[64,10], index: 8, kind: input, shape index: {}]   ;;  %s4084_s5 = inlined_call_operand.vmem [shape: f32[1,64], index: 5, kind: input, shape index: {}]   ;;  %s4085_s10 = inlined_call_operand.vmem [shape: bf16[10,64], index: 10, kind: input, shape index: {}]   ;;  %s4086_s7 = inlined_call_operand.vmem [shape: f32[1,10], index: 7, kind: input, shape index: {}]   ;;  %s4087_s1 = inlined_call_operand.vmem [shape: bf16[8,10], index: 1, kind: input, shape index: {}]   ;;  %s4088_s9 = inlined_call_operand.vmem [shape: f32[1,10], index: 9, kind: input, shape index: {}]   ;;  %s4089_s12 = inlined_call_operand.vmem [shape: bf16[64,256], index: 12, kind: input, shape index: {}]   ;;  %s4090_s14 = inlined_call_operand.vmem [shape: bf16[256,784], index: 14, kind: input, shape index: {}]   ;;  %s4091_s17 = inlined_call_operand.vmem [shape: f32[8,1], index: 17, kind: output, shape index: {1}]   ;;  %s4092_s11 = inlined_call_operand.vmem [shape: f32[1,64], index: 11, kind: input, shape index: {}]   ;;  %s4093_s13 = inlined_call_operand.vmem [shape: f32[1,256], index: 13, kind: input, shape index: {}]   ;;  %s4094_s15 = inlined_call_operand.vmem [shape: f32[1,784], index: 15, kind: input, shape index: {}]   ;;  %s4095_s16 = inlined_call_operand.vmem [shape: bf16[8,784], index: 16, kind: output, shape index: {0}]  }
   0x1   :  { %4098 = sst [smem:[#allocation2_spill]] %s4078_s2  ;;  %843 = vmatprep.mubr.bf16.mxu1 %v3133_v41  ;;  %v2906_v46 = vld [vmem:[%s4080_s4 + $0x40] sm:$0xff]   ;;  %v2908_v48 = vld [vmem:[%s4080_s4 + $0x48] sm:$0xff]   ;;  %v2910_v53 = vld [vmem:[%s4080_s4 + $0x50] sm:$0xff]   ;;  %vm1220_vm3 = vcmask 1044480   ;;  %vm1216_vm4 = vcmask 80896  }
   0x2   :  { %4099 = sst [smem:[#allocation3_spill]] %s4079_s0  ;;  %s4100_s26 = sld [smem:[#allocation2_spill]]  ;;  %v2907_v47 = vld [vmem:[%s4080_s4] sm:$0xff]   ;;  %v2909_v51 = vld [vmem:[%s4080_s4 + $0x8] sm:$0xff]   ;;  %v2911_v55 = vld [vmem:[%s4080_s4 + $0x10] sm:$0xff]   ;;  %vm2366_vm5 = vcmask 7168  }
   0x3   :  { %s4101_s24 = sld [smem:[#allocation3_spill]]  ;;  %v2912_v56 = vld [vmem:[%s4080_s4 + $0x58] sm:$0xff]   ;;  %v2914_v60 = vld [vmem:[%s4080_s4 + $0x60] sm:$0xff]   ;;  %vm2352_vm6 = vcmask 125952  }
   0x4   :  { %v2913_v59 = vld [vmem:[%s4080_s4 + $0x18] sm:$0xff]   ;;  %v2915_v63 = vld [vmem:[%s4080_s4 + $0x20] sm:$0xff]  }
   0x8   :  { %v2752_v0 = vld [vmem:[%s4100_s26 + $0x4] ss:$8 sps:$4 sm:$0xff]   ;;  %v2754_v1 = vld [vmem:[%s4100_s26] ss:$8 sps:$4 sm:$0xff]   ;;  %v2755_v2 = vld [vmem:[%s4100_s26 + $0x14] ss:$8 sps:$4 sm:$0xff]  }
   0x9   :  { %688 = vmatprep.subr.bf16.mxu0 %v2752_v0  ;;  %v2757_v3 = vld [vmem:[%s4100_s26 + $0x10] ss:$8 sps:$4 sm:$0xff]   ;;  %v2758_v4 = vld [vmem:[%s4100_s26 + $0x24] ss:$8 sps:$4 sm:$0xff]   ;;  %v2760_v5 = vld [vmem:[%s4100_s26 + $0x20] ss:$8 sps:$4 sm:$0xff]  }
   0xa   :  { %689 = vmatpush1.bf16.msra.mxu0 %v2754_v1  ;;  %v2761_v6 = vld [vmem:[%s4100_s26 + $0x34] ss:$8 sps:$4 sm:$0xff]   ;;  %v2763_v7 = vld [vmem:[%s4100_s26 + $0x30] ss:$8 sps:$4 sm:$0xff]   ;;  %v2764_v8 = vld [vmem:[%s4100_s26 + $0x44] ss:$8 sps:$4 sm:$0xff]  }
   0xb   :  { %690 = vmatprep.subr.bf16.mxu0 %v2755_v2  ;;  %v2766_v9 = vld [vmem:[%s4100_s26 + $0x40] ss:$8 sps:$4 sm:$0xff]   ;;  %v2767_v10 = vld [vmem:[%s4100_s26 + $0x54] ss:$8 sps:$4 sm:$0xff]   ;;  %v2769_v11 = vld [vmem:[%s4100_s26 + $0x50] ss:$8 sps:$4 sm:$0xff]  }
   0xc   :  { %v2770_v12 = vld [vmem:[%s4100_s26 + $0x64] ss:$8 sps:$4 sm:$0xff]   ;;  %v2772_v15 = vld [vmem:[%s4100_s26 + $0x60] ss:$8 sps:$4 sm:$0xff]   ;;  %v2773_v16 = vld [vmem:[%s4100_s26 + $0x74] ss:$8 sps:$4 sm:$0xff]  }
   0xd   :  { %v56_v13 = vld [vmem:[%s4101_s24] sm:$0xff]  ;;  %v2775_v17 = vld [vmem:[%s4100_s26 + $0x70] ss:$8 sps:$4 sm:$0xff]   ;;  %v2779_v20 = vld [vmem:[%s4100_s26 + $0x94] ss:$8 sps:$4 sm:$0xff]  }
   0xe   :  { %691 = vmatpush1.bf16.msra.mxu0 %v2757_v3  ;;  %v2377_v14 = vcombine.high %v56_v13, %v56_v13  ;;  %v2776_v18 = vld [vmem:[%s4100_s26 + $0x84] ss:$8 sps:$4 sm:$0xff]   ;;  %v2778_v19 = vld [vmem:[%s4100_s26 + $0x80] ss:$8 sps:$4 sm:$0xff]   ;;  %v2781_v21 = vld [vmem:[%s4100_s26 + $0x90] ss:$8 sps:$4 sm:$0xff]   ;;  %v2376_v36 = vcombine.low %v56_v13, %v56_v13 }
   0xf   :  { %692 = vmatprep.subr.bf16.mxu0 %v2758_v4  ;;  %v2782_v22 = vld [vmem:[%s4100_s26 + $0xa4] ss:$8 sps:$4 sm:$0xff]   ;;  %v2784_v23 = vld [vmem:[%s4100_s26 + $0xa0] ss:$8 sps:$4 sm:$0xff]   ;;  %v2785_v24 = vld [vmem:[%s4100_s26 + $0xb4] ss:$8 sps:$4 sm:$0xff]  }
  0x10   :  { %720 = vmatprep.mubr.bf16.mxu0 %v2377_v14  ;;  %v2787_v25 = vld [vmem:[%s4100_s26 + $0xb0] ss:$8 sps:$4 sm:$0xff]   ;;  %v2788_v26 = vld [vmem:[%s4100_s26 + $0xc4] ss:$8 sps:$4 sm:$0xff]   ;;  %v2790_v27 = vld [vmem:[%s4100_s26 + $0xc0] ss:$8 sps:$4 sm:$0xff]  }
  0x11   :  { %v2791_v28 = vld [vmem:[%s4100_s26 + $0xd4] ss:$8 sps:$4 sm:$0xff]   ;;  %v2793_v29 = vld [vmem:[%s4100_s26 + $0xd0] ss:$8 sps:$4 sm:$0xff]   ;;  %v2794_v30 = vld [vmem:[%s4100_s26 + $0xe4] ss:$8 sps:$4 sm:$0xff]  }
  0x12   :  { %693 = vmatpush1.bf16.msra.mxu0 %v2760_v5  ;;  %v2796_v31 = vld [vmem:[%s4100_s26 + $0xe0] ss:$8 sps:$4 sm:$0xff]   ;;  %v2797_v32 = vld [vmem:[%s4100_s26 + $0xf4] ss:$8 sps:$4 sm:$0xff]   ;;  %v2799_v33 = vld [vmem:[%s4100_s26 + $0xf0] ss:$8 sps:$4 sm:$0xff]  }
  0x13   :  { %694 = vmatprep.subr.bf16.mxu0 %v2761_v6  ;;  %v2804_v34 = vld [vmem:[%s4100_s26 + $0x104] ss:$8 sps:$4 sm:$0xff]   ;;  %v2802_v37 = vld [vmem:[%s4100_s26 + $0x100] ss:$8 sps:$4 sm:$0xff]   ;;  %v2807_v38 = vld [vmem:[%s4100_s26 + $0x114] ss:$8 sps:$4 sm:$0xff]  }
  0x14   :  { %v3331_v35 = vld [vmem:[%s4101_s24 + $0x8] sm:$0xff]  ;;  %v2805_v42 = vld [vmem:[%s4100_s26 + $0x110] ss:$8 sps:$4 sm:$0xff]   ;;  %v2813_v50 = vld [vmem:[%s4100_s26 + $0x134] ss:$8 sps:$4 sm:$0xff]  }
  0x15   :  { %v2379_v39 = vcombine.high %v3331_v35, %v3331_v35  ;;  %v2897_v40 = vld [vmem:[%s4100_s26 + $0x304] ss:$8 sps:$4 sm:$0xff]   ;;  %v2902_v43 = vld [vmem:[%s4100_s26 + $0x300] ss:$8 sps:$4 sm:$0xff]   ;;  %v2905_v45 = vld [vmem:[%s4101_s24 + $0x18] ss:$0 sps:$4 sm:$0xff]  }
  0x16   :  { %695 = vmatpush1.bf16.msra.mxu0 %v2763_v7  ;;  %v2810_v44 = vld [vmem:[%s4100_s26 + $0x124] ss:$8 sps:$4 sm:$0xff]   ;;  %811 = vmatprep.subr.bf16.mxu1 %v2897_v40  ;;  %v2808_v49 = vld [vmem:[%s4100_s26 + $0x120] ss:$8 sps:$4 sm:$0xff]   ;;  %v2811_v52 = vld [vmem:[%s4100_s26 + $0x130] ss:$8 sps:$4 sm:$0xff]  }
  0x17   :  { %696 = vmatprep.subr.bf16.mxu0 %v2764_v8  ;;  %812 = vmatpush1.bf16.msra.mxu1 %v2902_v43  ;;  %v2816_v54 = vld [vmem:[%s4100_s26 + $0x144] ss:$8 sps:$4 sm:$0xff]   ;;  %v2814_v57 = vld [vmem:[%s4100_s26 + $0x140] ss:$8 sps:$4 sm:$0xff]   ;;  %v2819_v58 = vld [vmem:[%s4100_s26 + $0x154] ss:$8 sps:$4 sm:$0xff]  }
  0x18   :  { %2651 = vmatprep.subr.bf16.mxu1 %v2906_v46  ;;  %v2817_v61 = vld [vmem:[%s4100_s26 + $0x150] ss:$8 sps:$4 sm:$0xff]   ;;  %v2822_v62 = vld [vmem:[%s4100_s26 + $0x164] ss:$8 sps:$4 sm:$0xff]   ;;  %v2820_v0 = vld [vmem:[%s4100_s26 + $0x160] ss:$8 sps:$4 sm:$0xff]  }
  0x19   :  { %v2825_v1 = vld [vmem:[%s4100_s26 + $0x174] ss:$8 sps:$4 sm:$0xff]   ;;  %v2823_v2 = vld [vmem:[%s4100_s26 + $0x170] ss:$8 sps:$4 sm:$0xff]   ;;  %v2828_v3 = vld [vmem:[%s4100_s26 + $0x184] ss:$8 sps:$4 sm:$0xff]  }
  0x1a   :  { %697 = vmatpush1.bf16.msra.mxu0 %v2766_v9  ;;  %2481 = vmatmul.mubr.msk.bf16.vlgmr.msra.gmra.mrb[0].mxu1 %vm684_vm0, %v2905_v45  ;;  %v2826_v4 = vld [vmem:[%s4100_s26 + $0x180] ss:$8 sps:$4 sm:$0xff]   ;;  %v2831_v5 = vld [vmem:[%s4100_s26 + $0x194] ss:$8 sps:$4 sm:$0xff]   ;;  %v2829_v6 = vld [vmem:[%s4100_s26 + $0x190] ss:$8 sps:$4 sm:$0xff]  }
  0x1b   :  { %698 = vmatprep.subr.bf16.mxu0 %v2767_v10  ;;  %2652 = vmatpush3.bf16.msra.mxu1 %v2907_v47  ;;  %v2834_v7 = vld [vmem:[%s4100_s26 + $0x1a4] ss:$8 sps:$4 sm:$0xff]   ;;  %v2832_v8 = vld [vmem:[%s4100_s26 + $0x1a0] ss:$8 sps:$4 sm:$0xff]   ;;  %v2837_v9 = vld [vmem:[%s4100_s26 + $0x1b4] ss:$8 sps:$4 sm:$0xff]  }
  0x1c   :  { %2653 = vmatprep.subr.bf16.mxu1 %v2908_v48  ;;  %v2835_v10 = vld [vmem:[%s4100_s26 + $0x1b0] ss:$8 sps:$4 sm:$0xff]   ;;  %v2843_v13 = vld [vmem:[%s4100_s26 + $0x1d4] ss:$8 sps:$4 sm:$0xff]   ;;  %v2876_v40 = vld [vmem:[%s4100_s26 + $0x280] ss:$8 sps:$4 sm:$0xff]  }
  0x1d   :  { %v2841_v14 = vld [vmem:[%s4100_s26 + $0x1d0] ss:$8 sps:$4 sm:$0xff]   ;;  %v2882_v45 = vld [vmem:[%s4100_s26 + $0x2a0] ss:$8 sps:$4 sm:$0xff]   ;;  %v2887_v46 = vld [vmem:[%s4100_s26 + $0x2b4] ss:$8 sps:$4 sm:$0xff]  }
  0x1e   :  { %699 = vmatpush1.bf16.msra.mxu0 %v2769_v11  ;;  %v2840_v11 = vld [vmem:[%s4100_s26 + $0x1c4] ss:$8 sps:$4 sm:$0xff]   ;;  %v2879_v43 = vld [vmem:[%s4100_s26 + $0x290] ss:$8 sps:$4 sm:$0xff]  }
  0x1f   :  { %700 = vmatprep.subr.bf16.mxu0 %v2770_v12  ;;  %2654 = vmatpush3.bf16.msra.mxu1 %v2909_v51  ;;  %v2838_v12 = vld [vmem:[%s4100_s26 + $0x1c0] ss:$8 sps:$4 sm:$0xff]   ;;  %v2885_v47 = vld [vmem:[%s4100_s26 + $0x2b0] ss:$8 sps:$4 sm:$0xff]   ;;  %v2890_v48 = vld [vmem:[%s4100_s26 + $0x2c4] ss:$8 sps:$4 sm:$0xff]  }
  0x20   :  { %2655 = vmatprep.subr.bf16.mxu1 %v2910_v53  ;;  %v2891_v51 = vld [vmem:[%s4100_s26 + $0x2d0] ss:$8 sps:$4 sm:$0xff]   ;;  %v2894_v53 = vld [vmem:[%s4100_s26 + $0x2e0] ss:$8 sps:$4 sm:$0xff]  }
  0x22   :  { %701 = vmatpush1.bf16.msra.mxu0 %v2772_v15  ;;  %v2846_v15 = vld [vmem:[%s4100_s26 + $0x1e4] ss:$8 sps:$4 sm:$0xff]  }
  0x23   :  { %702 = vmatprep.subr.bf16.mxu0 %v2773_v16  ;;  %2656 = vmatpush3.bf16.msra.mxu1 %v2911_v55  ;;  %v2844_v16 = vld [vmem:[%s4100_s26 + $0x1e0] ss:$8 sps:$4 sm:$0xff]   ;;  %v2899_v55 = vld [vmem:[%s4100_s26 + $0x2f0] ss:$8 sps:$4 sm:$0xff]  }
  0x24   :  { %2657 = vmatprep.subr.bf16.mxu1 %v2912_v56 }
  0x26   :  { %703 = vmatpush1.bf16.msra.mxu0 %v2775_v17  ;;  %v2849_v17 = vld [vmem:[%s4100_s26 + $0x1f4] ss:$8 sps:$4 sm:$0xff]  }
  0x27   :  { %704 = vmatprep.subr.bf16.mxu0 %v2776_v18  ;;  %2658 = vmatpush3.bf16.msra.mxu1 %v2913_v59  ;;  %v2847_v18 = vld [vmem:[%s4100_s26 + $0x1f0] ss:$8 sps:$4 sm:$0xff]  }
  0x28   :  { %2659 = vmatprep.subr.bf16.mxu1 %v2914_v60  ;;  %v2919_v59 = vld [vmem:[%s4080_s4 + $0x30] sm:$0xff]  }
  0x2a   :  { %705 = vmatpush1.bf16.msra.mxu0 %v2778_v19  ;;  %v2854_v19 = vld [vmem:[%s4100_s26 + $0x204] ss:$8 sps:$4 sm:$0xff]  }
  0x2b   :  { %706 = vmatprep.subr.bf16.mxu0 %v2779_v20  ;;  %2660 = vmatpush3.bf16.msra.mxu1 %v2915_v63  ;;  %v3474_v20 = vld [vmem:[%s4101_s24 + $0x10] sm:$0xff]  ;;  %v2921_v63 = vld [vmem:[%s4080_s4 + $0x38] sm:$0xff]  }
  0x2c   :  { %v2380_v56 = vcombine.low %v3474_v20, %v3474_v20 }
  0x2e   :  { %707 = vmatpush1.bf16.msra.mxu0 %v2781_v21  ;;  %v2378_v21 = vcombine.low %v3331_v35, %v3331_v35  ;;  %v2870_v35 = vld [vmem:[%s4100_s26 + $0x260] ss:$8 sps:$4 sm:$0xff]  }
  0x2f   :  { %708 = vmatprep.subr.bf16.mxu0 %v2782_v22  ;;  %v2852_v22 = vld [vmem:[%s4100_s26 + $0x200] ss:$8 sps:$4 sm:$0xff]  }
  0x32   :  { %709 = vmatpush1.bf16.msra.mxu0 %v2784_v23  ;;  %v2381_v23 = vcombine.high %v3474_v20, %v3474_v20 }
  0x33   :  { %710 = vmatprep.subr.bf16.mxu0 %v2785_v24  ;;  %v2857_v24 = vld [vmem:[%s4100_s26 + $0x214] ss:$8 sps:$4 sm:$0xff]  }
  0x36   :  { %711 = vmatpush1.bf16.msra.mxu0 %v2787_v25  ;;  %v2855_v25 = vld [vmem:[%s4100_s26 + $0x210] ss:$8 sps:$4 sm:$0xff]  }
  0x37   :  { %712 = vmatprep.subr.bf16.mxu0 %v2788_v26  ;;  %v2860_v26 = vld [vmem:[%s4100_s26 + $0x224] ss:$8 sps:$4 sm:$0xff]  }
  0x3a   :  { %713 = vmatpush1.bf16.msra.mxu0 %v2790_v27  ;;  %v2858_v27 = vld [vmem:[%s4100_s26 + $0x220] ss:$8 sps:$4 sm:$0xff]  }
  0x3b   :  { %714 = vmatprep.subr.bf16.mxu0 %v2791_v28  ;;  %v2863_v28 = vld [vmem:[%s4100_s26 + $0x234] ss:$8 sps:$4 sm:$0xff]  }
  0x3e   :  { %715 = vmatpush1.bf16.msra.mxu0 %v2793_v29  ;;  %v2861_v29 = vld [vmem:[%s4100_s26 + $0x230] ss:$8 sps:$4 sm:$0xff]  }
  0x3f   :  { %716 = vmatprep.subr.bf16.mxu0 %v2794_v30  ;;  %v2866_v30 = vld [vmem:[%s4100_s26 + $0x244] ss:$8 sps:$4 sm:$0xff]  }
  0x42   :  { %717 = vmatpush1.bf16.msra.mxu0 %v2796_v31  ;;  %v2864_v31 = vld [vmem:[%s4100_s26 + $0x240] ss:$8 sps:$4 sm:$0xff]  }
  0x43   :  { %718 = vmatprep.subr.bf16.mxu0 %v2797_v32  ;;  %v2869_v32 = vld [vmem:[%s4100_s26 + $0x254] ss:$8 sps:$4 sm:$0xff]  }
  0x46   :  { %719 = vmatpush1.bf16.msra.mxu0 %v2799_v33  ;;  %v2867_v33 = vld [vmem:[%s4100_s26 + $0x250] ss:$8 sps:$4 sm:$0xff]  }
  0x47   :  { %729 = vmatprep.subr.bf16.mxu0 %v2804_v34  ;;  %v2872_v34 = vld [vmem:[%s4100_s26 + $0x264] ss:$8 sps:$4 sm:$0xff]  }
  0x49   :  { %721 = vmatmul.mubr.bf16.vlgmr.msra.gmra.mrb[0].mxu0 %v2376_v36  ;;  %v2875_v36 = vld [vmem:[%s4100_s26 + $0x274] ss:$8 sps:$4 sm:$0xff]  }
  0x4a   :  { %730 = vmatpush1.bf16.msra.mxu0 %v2802_v37  ;;  %761 = vmatprep.mubr.bf16.mxu0 %v2379_v39  ;;  %v2916_v37 = vld [vmem:[%s4080_s4 + $0x68] sm:$0xff]  }
  0x4b   :  { %731 = vmatprep.subr.bf16.mxu0 %v2807_v38  ;;  %v2873_v38 = vld [vmem:[%s4100_s26 + $0x270] ss:$8 sps:$4 sm:$0xff]   ;;  %v2878_v39 = vld [vmem:[%s4100_s26 + $0x284] ss:$8 sps:$4 sm:$0xff]   ;;  %2661 = vmatprep.subr.bf16.mxu1 %v2916_v37 }
  0x4c   :  { %v2928_v37 = vld [vmem:[%s4083_s8 + $0x10] sm:$0xff]  }
  0x4e   :  { %732 = vmatpush1.bf16.msra.mxu0 %v2805_v42  ;;  %v2881_v42 = vld [vmem:[%s4100_s26 + $0x294] ss:$8 sps:$4 sm:$0xff]  }
  0x4f   :  { %733 = vmatprep.subr.bf16.mxu0 %v2810_v44  ;;  %v2884_v44 = vld [vmem:[%s4100_s26 + $0x2a4] ss:$8 sps:$4 sm:$0xff]  }
  0x52   :  { %734 = vmatpush1.bf16.msra.mxu0 %v2808_v49  ;;  %v2888_v49 = vld [vmem:[%s4100_s26 + $0x2c0] ss:$8 sps:$4 sm:$0xff]  }
  0x53   :  { %735 = vmatprep.subr.bf16.mxu0 %v2813_v50  ;;  %v2893_v50 = vld [vmem:[%s4100_s26 + $0x2d4] ss:$8 sps:$4 sm:$0xff]  }
  0x56   :  { %736 = vmatpush1.bf16.msra.mxu0 %v2811_v52  ;;  %v2896_v52 = vld [vmem:[%s4100_s26 + $0x2e4] ss:$8 sps:$4 sm:$0xff]  }
  0x57   :  { %737 = vmatprep.subr.bf16.mxu0 %v2816_v54  ;;  %v2901_v54 = vld [vmem:[%s4100_s26 + $0x2f4] ss:$8 sps:$4 sm:$0xff]  }
  0x5a   :  { %738 = vmatpush1.bf16.msra.mxu0 %v2814_v57  ;;  %v2917_v57 = vld [vmem:[%s4080_s4 + $0x28] sm:$0xff]  }
  0x5b   :  { %739 = vmatprep.subr.bf16.mxu0 %v2819_v58  ;;  %2662 = vmatpush3.bf16.msra.mxu1 %v2917_v57  ;;  %v2918_v58 = vld [vmem:[%s4080_s4 + $0x70] sm:$0xff]  }
  0x5c   :  { %2663 = vmatprep.subr.bf16.mxu1 %v2918_v58 }
  0x5e   :  { %740 = vmatpush1.bf16.msra.mxu0 %v2817_v61  ;;  %v2920_v61 = vld [vmem:[%s4080_s4 + $0x78] sm:$0xff]  }
  0x5f   :  { %741 = vmatprep.subr.bf16.mxu0 %v2822_v62  ;;  %2664 = vmatpush3.bf16.msra.mxu1 %v2919_v59 }
  0x60   :  { %2665 = vmatprep.subr.bf16.mxu1 %v2920_v61 }
  0x62   :  { %742 = vmatpush1.bf16.msra.mxu0 %v2820_v0 }
  0x63   :  { %743 = vmatprep.subr.bf16.mxu0 %v2825_v1  ;;  %2666 = vmatpush3.bf16.msra.mxu1 %v2921_v63 }
  0x66   :  { %744 = vmatpush1.bf16.msra.mxu0 %v2823_v2  ;;  %v3134_v2 = vmov 0.0  }
  0x67   :  { %745 = vmatprep.subr.bf16.mxu0 %v2828_v3  ;;  %2707 = vmatprep.subr.bf16.mxu1 %v3134_v2  ;;  %v160_v3 = vlaneseq }
  0x6a   :  { %746 = vmatpush1.bf16.msra.mxu0 %v2826_v4  ;;  %v3594_v4 = vshrl.u32 %v160_v3, 7 }
  0x6b   :  { %747 = vmatprep.subr.bf16.mxu0 %v2831_v5 }
  0x6c   :  { %v3597_v5 = vsub.s32 0, %v3594_v4 }
  0x6e   :  { %748 = vmatpush1.bf16.msra.mxu0 %v2829_v6  ;;  %v158_v6 = vld [vmem:[%s4082_s3] sm:$0x3] }
  0x6f   :  { %749 = vmatprep.subr.bf16.mxu0 %v2834_v7  ;;  %v3603_v7 = vsub.s32 1, %v3594_v4 }
  0x72   :  { %750 = vmatpush1.bf16.msra.mxu0 %v2832_v8  ;;  %v163_v8 = vrot.slane %v158_v6, %v3597_v5 }
  0x73   :  { %751 = vmatprep.subr.bf16.mxu0 %v2837_v9  ;;  %v167_v9 = vrot.slane %v158_v6, %v3603_v7 }
  0x76   :  { %752 = vmatpush1.bf16.msra.mxu0 %v2835_v10 }
  0x77   :  { %753 = vmatprep.subr.bf16.mxu0 %v2840_v11 }
  0x7a   :  { %754 = vmatpush1.bf16.msra.mxu0 %v2838_v12 }
  0x7b   :  { %755 = vmatprep.subr.bf16.mxu0 %v2843_v13 }
  0x7e   :  { %756 = vmatpush1.bf16.msra.mxu0 %v2841_v14 }
  0x7f   :  { %757 = vmatprep.subr.bf16.mxu0 %v2846_v15 }
  0x82   :  { %758 = vmatpush1.bf16.msra.mxu0 %v2844_v16 }
  0x83   :  { %759 = vmatprep.subr.bf16.mxu0 %v2849_v17 }
  0x86   :  { %760 = vmatpush1.bf16.msra.mxu0 %v2847_v18 }
  0x87   :  { %770 = vmatprep.subr.bf16.mxu0 %v2854_v19 }
  0x89   :  { %762 = vmatmul.mubr.bf16.vlgmr.msra.gmra.mrb[0].mxu0 %v2378_v21  ;;  %v2922_v21 = vld [vmem:[%s4081_s6] sm:$0xff]  }
  0x8a   :  { %771 = vmatpush1.bf16.msra.mxu0 %v2852_v22  ;;  %802 = vmatprep.mubr.bf16.mxu0 %v2381_v23  ;;  %v2923_v23 = vld [vmem:[%s4081_s6 + $0x8] sm:$0xff]  }
  0x8b   :  { %772 = vmatprep.subr.bf16.mxu0 %v2857_v24  ;;  %v2924_v24 = vld [vmem:[%s4081_s6 + $0x10] sm:$0xff]  }
  0x8e   :  { %773 = vmatpush1.bf16.msra.mxu0 %v2855_v25  ;;  %v2925_v25 = vld [vmem:[%s4081_s6 + $0x18] sm:$0xff]  }
  0x8f   :  { %774 = vmatprep.subr.bf16.mxu0 %v2860_v26 }
  0x92   :  { %775 = vmatpush1.bf16.msra.mxu0 %v2858_v27  ;;  %v2482_v27 = vld [vmem:[%s4084_s5] ss:$0 sm:$0xff] }
  0x93   :  { %776 = vmatprep.subr.bf16.mxu0 %v2863_v28 }
  0x96   :  { %777 = vmatpush1.bf16.msra.mxu0 %v2861_v29 }
  0x97   :  { %778 = vmatprep.subr.bf16.mxu0 %v2866_v30 }
  0x9a   :  { %779 = vmatpush1.bf16.msra.mxu0 %v2864_v31 }
  0x9b   :  { %780 = vmatprep.subr.bf16.mxu0 %v2869_v32 }
  0x9e   :  { %781 = vmatpush1.bf16.msra.mxu0 %v2867_v33 }
  0x9f   :  { %782 = vmatprep.subr.bf16.mxu0 %v2872_v34  ;;  %v2926_v34 = vld [vmem:[%s4083_s8] sm:$0xff]  }
  0xa2   :  { %783 = vmatpush1.bf16.msra.mxu0 %v2870_v35 }
  0xa3   :  { %784 = vmatprep.subr.bf16.mxu0 %v2875_v36  ;;  %v2927_v36 = vld [vmem:[%s4083_s8 + $0x8] sm:$0xff]  }
  0xa6   :  { %785 = vmatpush1.bf16.msra.mxu0 %v2873_v38  ;;  %v2929_v38 = vld [vmem:[%s4083_s8 + $0x18] sm:$0xff]  }
  0xa7   :  { %786 = vmatprep.subr.bf16.mxu0 %v2878_v39  ;;  %v2930_v39 = vld [vmem:[%s4085_s10] sm:$0x1f]  }
  0xaa   :  { %787 = vmatpush1.bf16.msra.mxu0 %v2876_v40  ;;  %v1222_v40 = vsel %vm1220_vm3, %v2930_v39, 0  ;;  %v3014_v39 = vld [vmem:[%s4090_s14 + $0x27c] ss:$28 sps:$4 sm:$0xff]  }
  0xab   :  { %788 = vmatprep.subr.bf16.mxu0 %v2881_v42 }
  0xae   :  { %789 = vmatpush1.bf16.msra.mxu0 %v2879_v43 }
  0xaf   :  { %790 = vmatprep.subr.bf16.mxu0 %v2884_v44 }
  0xb2   :  { %791 = vmatpush1.bf16.msra.mxu0 %v2882_v45 }
  0xb3   :  { %792 = vmatprep.subr.bf16.mxu0 %v2887_v46  ;;  %v2499_v46 = vld [vmem:[%s4086_s7] ss:$0 sm:$0xff] }
  0xb6   :  { %793 = vmatpush1.bf16.msra.mxu0 %v2885_v47 }
  0xb7   :  { %794 = vmatprep.subr.bf16.mxu0 %v2890_v48  ;;  %v2505_v48 = vld [vmem:[%s4088_s9] ss:$0 sm:$0xff] }
  0xba   :  { %795 = vmatpush1.bf16.msra.mxu0 %v2888_v49  ;;  %v1197_v49 = vld [vmem:[%s4087_s1] sm:$0xf] }
  0xbb   :  { %796 = vmatprep.subr.bf16.mxu0 %v2893_v50 }
  0xbe   :  { %797 = vmatpush1.bf16.msra.mxu0 %v2891_v51 }
  0xbf   :  { %798 = vmatprep.subr.bf16.mxu0 %v2896_v52 }
  0xc2   :  { %799 = vmatpush1.bf16.msra.mxu0 %v2894_v53  ;;  %v1198_v53 = vunpack.c.l.bf16 %v1197_v49 }
  0xc3   :  { %800 = vmatprep.subr.bf16.mxu0 %v2901_v54 }
  0xc6   :  { %801 = vmatpush1.bf16.msra.mxu0 %v2899_v55 }
  0xc9   :  { %803 = vmatmul.mubr.bf16.vlgmr.msra.gmra.mrb[0].mxu0 %v2380_v56 }
  0xed   :  { %v845_v60 = vpop.f32.mrb[0].mxu1 }
  0xee   :  { %v847_v62 = vpop.f32.mrb[1].mxu1 }
  0xef   :  { %v849_v0 = vpop.f32.mrb[2].mxu1 }
  0xf0   :  { %v850_v1 = vpop.f32.mrb[3].mxu1 }
 0x19c   :  { %v804_v10 = vpop.f32.mrb[0].mxu0 }
 0x19d   :  { %v2737_v11 = vadd.f32 %v804_v10, %v163_v8  ;;  %v806_v12 = vpop.f32.mrb[1].mxu0  ;;  %v2933_v10 = vld [vmem:[%s4089_s12 + $0x4] ss:$8 sps:$4 sm:$0xff]  }
 0x19e   :  { %v2739_v13 = vadd.f32 %v806_v12, %v167_v9  ;;  %v808_v14 = vpop.f32.mrb[2].mxu0  ;;  %v2931_v9 = vld [vmem:[%s4089_s12] ss:$8 sps:$4 sm:$0xff]   ;;  %v2939_v12 = vld [vmem:[%s4089_s12 + $0x24] ss:$8 sps:$4 sm:$0xff]  }
 0x19f   :  { %v2738_v15 = vadd.f32 %v2737_v11, %v845_v60  ;;  %v809_v16 = vpop.f32.mrb[3].mxu0  ;;  %v2936_v11 = vld [vmem:[%s4089_s12 + $0x14] ss:$8 sps:$4 sm:$0xff]  }
 0x1a0   :  { %v2740_v17 = vadd.f32 %v2739_v13, %v847_v62  ;;  %v2937_v13 = vld [vmem:[%s4089_s12 + $0x20] ss:$8 sps:$4 sm:$0xff]   ;;  %v2942_v14 = vld [vmem:[%s4089_s12 + $0x34] ss:$8 sps:$4 sm:$0xff]  }
 0x1a1   :  { %v852_v18 = vmax.f32 %v2738_v15, 0.0  ;;  %v2940_v15 = vld [vmem:[%s4089_s12 + $0x30] ss:$8 sps:$4 sm:$0xff]   ;;  %v2945_v16 = vld [vmem:[%s4090_s14 + $0x4] ss:$28 sps:$4 sm:$0xff]  }
 0x1a2   :  { %v853_v19 = vmax.f32 %v2740_v17, 0.0  ;;  %v2946_v17 = vld [vmem:[%s4090_s14 + $0x10] ss:$28 sps:$4 sm:$0xff]  }
 0x1a3   :  { %v854_v22 = vpack.c.bf16 %v852_v18, %v852_v18  ;;  %v2948_v18 = vld [vmem:[%s4090_s14 + $0x14] ss:$28 sps:$4 sm:$0xff]  }
 0x1a4   :  { %v855_v20 = vpack.c.bf16 %v853_v19, %v853_v19  ;;  %2197 = vmatprep.subr.bf16.mxu0 %v2948_v18  ;;  %v2952_v19 = vld [vmem:[%s4090_s14 + $0x48] ss:$28 sps:$4 sm:$0xff]   ;;  %v3015_v18 = vld [vmem:[%s4090_s14 + $0x2a0] ss:$28 sps:$4 sm:$0xff]  }
 0x1a5   :  { %2198 = vmatpush1.bf16.msra.mxu0 %v2946_v17  ;;  %v3017_v17 = vld [vmem:[%s4090_s14 + $0x2a4] ss:$28 sps:$4 sm:$0xff]  }
 0x1a6   :  { %1023 = vmatprep.mubr.bf16.mxu1 %v855_v20  ;;  %v2954_v20 = vld [vmem:[%s4090_s14 + $0x4c] ss:$28 sps:$4 sm:$0xff]  }
 0x1a7   :  { %1024 = vmatmul.mubr.bf16.vlgmr.msra.gmra.mrb[4].mxu1 %v854_v22  ;;  %2199 = vmatprep.subr.bf16.mxu0 %v2954_v20  ;;  %v2958_v22 = vld [vmem:[%s4090_s14 + $0x80] ss:$28 sps:$4 sm:$0xff]   ;;  %v3021_v20 = vld [vmem:[%s4090_s14 + $0x2d8] ss:$28 sps:$4 sm:$0xff]  }
 0x1a8   :  { %2708 = vmatpush3.bf16.msra.mxu1 %v2922_v21  ;;  %2715 = vmatprep.mubr.msk.bf16.mxu1 %vm3135_vm1, %v3134_v2  ;;  %v2960_v21 = vld [vmem:[%s4090_s14 + $0x84] ss:$28 sps:$4 sm:$0xff]  }
 0x1a9   :  { %2709 = vmatprep.subr.bf16.mxu1 %v3134_v2  ;;  %2200 = vmatpush1.bf16.msra.mxu0 %v2952_v19  ;;  %v3023_v19 = vld [vmem:[%s4090_s14 + $0x2dc] ss:$28 sps:$4 sm:$0xff]  }
 0x1aa   :  { %2201 = vmatprep.subr.bf16.mxu0 %v2960_v21  ;;  %v3029_v21 = vld [vmem:[%s4090_s14 + $0x314] ss:$28 sps:$4 sm:$0xff]  }
 0x1ac   :  { %2710 = vmatpush3.bf16.msra.mxu1 %v2923_v23  ;;  %v2966_v23 = vld [vmem:[%s4090_s14 + $0xbc] ss:$28 sps:$4 sm:$0xff]  }
 0x1ad   :  { %2711 = vmatprep.subr.bf16.mxu1 %v3134_v2  ;;  %2202 = vmatpush1.bf16.msra.mxu0 %v2958_v22  ;;  %v3027_v22 = vld [vmem:[%s4090_s14 + $0x310] ss:$28 sps:$4 sm:$0xff]  }
 0x1ae   :  { %2203 = vmatprep.subr.bf16.mxu0 %v2966_v23  ;;  %v3032_v23 = vld [vmem:[%s4090_s14 + $0x324] ss:$28 sps:$4 sm:$0xff]  }
 0x1b0   :  { %2712 = vmatpush3.bf16.msra.mxu1 %v2924_v24  ;;  %v2964_v24 = vld [vmem:[%s4090_s14 + $0xb8] ss:$28 sps:$4 sm:$0xff]  }
 0x1b1   :  { %2713 = vmatprep.subr.bf16.mxu1 %v3134_v2  ;;  %2204 = vmatpush1.bf16.msra.mxu0 %v2964_v24  ;;  %v3030_v24 = vld [vmem:[%s4090_s14 + $0x320] ss:$28 sps:$4 sm:$0xff]  }
 0x1b4   :  { %2714 = vmatpush3.bf16.msra.mxu1 %v2925_v25  ;;  %v2972_v25 = vld [vmem:[%s4090_s14 + $0xf4] ss:$28 sps:$4 sm:$0xff]  }
 0x1b5   :  { %2719 = vmatprep.subr.bf16.mxu1 %v3134_v2  ;;  %2205 = vmatprep.subr.bf16.mxu0 %v2972_v25  ;;  %v3035_v25 = vld [vmem:[%s4090_s14 + $0x34c] ss:$28 sps:$4 sm:$0xff]  }
 0x27a   :  { %v2667_v26 = vpop.f32.mrb[4].mxu1 }
 0x27b   :  { %v2668_v28 = vpop.f32.mrb[5].mxu1 }
 0x27c   :  { %v2669_v29 = vadd.f32 %v2668_v28, %v2667_v26  ;;  %v2670_v30 = vpop.f32.mrb[6].mxu1  ;;  %v2970_v26 = vld [vmem:[%s4090_s14 + $0xf0] ss:$28 sps:$4 sm:$0xff]   ;;  %v2976_v28 = vld [vmem:[%s4090_s14 + $0x128] ss:$28 sps:$4 sm:$0xff]  }
 0x27d   :  { %v2671_v31 = vpop.f32.mrb[7].mxu1  ;;  %2206 = vmatpush1.bf16.msra.mxu0 %v2970_v26  ;;  %v2982_v30 = vld [vmem:[%s4090_s14 + $0x160] ss:$28 sps:$4 sm:$0xff]   ;;  %v3033_v26 = vld [vmem:[%s4090_s14 + $0x348] ss:$28 sps:$4 sm:$0xff]  }
 0x27e   :  { %v1026_v32 = vadd.f32 %v2669_v29, %v2482_v27  ;;  %v2978_v27 = vld [vmem:[%s4090_s14 + $0x12c] ss:$28 sps:$4 sm:$0xff]   ;;  %v2984_v29 = vld [vmem:[%s4090_s14 + $0x164] ss:$28 sps:$4 sm:$0xff]   ;;  %v2990_v31 = vld [vmem:[%s4090_s14 + $0x19c] ss:$28 sps:$4 sm:$0xff]  }
 0x27f   :  { %2207 = vmatprep.subr.bf16.mxu0 %v2978_v27  ;;  %v3038_v27 = vld [vmem:[%s4090_s14 + $0x35c] ss:$28 sps:$4 sm:$0xff]  }
 0x280   :  { %v1031_v33 = vmax.f32 %v1026_v32, 0.0  ;;  %v2988_v32 = vld [vmem:[%s4090_s14 + $0x198] ss:$28 sps:$4 sm:$0xff]  }
 0x281   :  { %2208 = vmatpush1.bf16.msra.mxu0 %v2976_v28  ;;  %v3036_v28 = vld [vmem:[%s4090_s14 + $0x358] ss:$28 sps:$4 sm:$0xff]  }
 0x282   :  { %v1032_v35 = vpack.c.bf16 %v1031_v33, %v1031_v33  ;;  %2209 = vmatprep.subr.bf16.mxu0 %v2984_v29  ;;  %v2996_v33 = vld [vmem:[%s4090_s14 + $0x1d4] ss:$28 sps:$4 sm:$0xff]   ;;  %v3041_v29 = vld [vmem:[%s4090_s14 + $0xc] ss:$28 sps:$4 sm:$0xff]  }
 0x284   :  { %2716 = vmatmul.mubr.msk.bf16.vlgmr.msra.gmra.mrb[8].mxu1 %vm1072_vm2, %v1032_v35 }
 0x285   :  { %2720 = vmatpush3.bf16.msra.mxu1 %v2926_v34  ;;  %2727 = vmatprep.mubr.msk.bf16.mxu1 %vm3135_vm1, %v3134_v2  ;;  %v2994_v34 = vld [vmem:[%s4090_s14 + $0x1d0] ss:$28 sps:$4 sm:$0xff]  }
 0x286   :  { %2721 = vmatprep.subr.bf16.mxu1 %v3134_v2  ;;  %2210 = vmatpush1.bf16.msra.mxu0 %v2982_v30  ;;  %v1274_v30 = vld [vmem:[%s4093_s13] sm:$0x3] }
 0x287   :  { %2211 = vmatprep.subr.bf16.mxu0 %v2990_v31  ;;  %v1279_v31 = vrot.slane %v1274_v30, %v3597_v5 }
 0x289   :  { %2722 = vmatpush3.bf16.msra.mxu1 %v2927_v36  ;;  %v3000_v36 = vld [vmem:[%s4090_s14 + $0x208] ss:$28 sps:$4 sm:$0xff]  }
 0x28a   :  { %2723 = vmatprep.subr.bf16.mxu1 %v3134_v2  ;;  %2212 = vmatpush1.bf16.msra.mxu0 %v2988_v32  ;;  %v1283_v32 = vrot.slane %v1274_v30, %v3603_v7  ;;  %v4051_v30 = vld [vmem:[%s4094_s15] sm:$0x7f] }
 0x28b   :  { %2213 = vmatprep.subr.bf16.mxu0 %v2996_v33 }
 0x28d   :  { %2724 = vmatpush3.bf16.msra.mxu1 %v2928_v37  ;;  %v3008_v37 = vld [vmem:[%s4090_s14 + $0x244] ss:$28 sps:$4 sm:$0xff]  }
 0x28e   :  { %2725 = vmatprep.subr.bf16.mxu1 %v3134_v2  ;;  %2214 = vmatpush1.bf16.msra.mxu0 %v2994_v34 }
 0x291   :  { %2726 = vmatpush3.bf16.msra.mxu1 %v2929_v38  ;;  %v3006_v38 = vld [vmem:[%s4090_s14 + $0x240] ss:$28 sps:$4 sm:$0xff]  }
 0x292   :  { %2731 = vmatprep.subr.bf16.mxu1 %v3134_v2 }
 0x294   :  { %2728 = vmatmul.mubr.msk.bf16.vlgmr.msra.gmra.mrb[12].mxu1 %vm1072_vm2, %v1032_v35  ;;  %v3002_v35 = vld [vmem:[%s4090_s14 + $0x20c] ss:$28 sps:$4 sm:$0xff]  }
 0x295   :  { %2733 = vmatprep.mubr.msk.bf16.mxu1 %vm3135_vm1, %v3134_v2  ;;  %2732 = vmatpush3.bf16.msra.mxu1 %v1222_v40  ;;  %v3012_v40 = vld [vmem:[%s4090_s14 + $0x278] ss:$28 sps:$4 sm:$0xff]  }
 0x296   :  { %1329 = vmatprep.subr.bf16.mxu1 %v2933_v10  ;;  %2215 = vmatprep.subr.bf16.mxu0 %v3002_v35  ;;  %v2993_v10 = vld [vmem:[%s4090_s14 + $0x1c4] ss:$28 sps:$4 sm:$0xff]  }
 0x297   :  { %2216 = vmatpush1.bf16.msra.mxu0 %v3000_v36 }
 0x298   :  { %2217 = vmatprep.subr.bf16.mxu0 %v3008_v37 }
 0x29b   :  { %2218 = vmatpush1.bf16.msra.mxu0 %v3006_v38 }
 0x29c   :  { %2219 = vmatprep.subr.bf16.mxu0 %v3014_v39 }
 0x29f   :  { %2220 = vmatpush1.bf16.msra.mxu0 %v3012_v40 }
 0x357   :  { %v1110_v42 = vpop.f32.mrb[8].mxu1 }
 0x358   :  { %v2717_v43 = vpop.f32.mrb[9].mxu1  ;;  %v1111_v47 = vadd.f32 %v2499_v46, %v1110_v42  ;;  %v3020_v42 = vld [vmem:[%s4090_s14 + $0x2b4] ss:$28 sps:$4 sm:$0xff]  }
 0x359   :  { %v1113_v44 = vpop.f32.mrb[10].mxu1  ;;  %v3018_v43 = vld [vmem:[%s4090_s14 + $0x2b0] ss:$28 sps:$4 sm:$0xff]   ;;  %2221 = vmatprep.subr.bf16.mxu0 %v3020_v42 }
 0x35a   :  { %v2718_v45 = vpop.f32.mrb[11].mxu1  ;;  %v1116_v51 = vmax.f32 %v1111_v47, 0.0  ;;  %v3026_v44 = vld [vmem:[%s4090_s14 + $0x2ec] ss:$28 sps:$4 sm:$0xff]   ;;  %2222 = vmatpush1.bf16.msra.mxu0 %v3018_v43 }
 0x35b   :  { %v3024_v45 = vld [vmem:[%s4090_s14 + $0x2e8] ss:$28 sps:$4 sm:$0xff]   ;;  %2223 = vmatprep.subr.bf16.mxu0 %v3026_v44 }
 0x35c   :  { %v2355_v58 = vmul.f32 %v1116_v51, %v1116_v51  ;;  %v3039_v43 = vld [vmem:[%s4090_s14 + $0x8] ss:$28 sps:$4 sm:$0xff]  }
 0x35e   :  { %2224 = vmatpush1.bf16.msra.mxu0 %v3024_v45  ;;  %v3044_v45 = vld [vmem:[%s4090_s14 + $0x44] ss:$28 sps:$4 sm:$0xff]  }
 0x35f   :  { %2225 = vmatprep.subr.bf16.mxu0 %v3032_v23  ;;  %v3097_v23 = vld [vmem:[%s4090_s14 + $0x2f0] ss:$28 sps:$4 sm:$0xff]  }
 0x362   :  { %2226 = vmatpush1.bf16.msra.mxu0 %v3030_v24  ;;  %v3098_v24 = vld [vmem:[%s4090_s14 + $0x130] ss:$28 sps:$4 sm:$0xff]  }
 0x363   :  { %2227 = vmatprep.subr.bf16.mxu0 %v3038_v27  ;;  %v3101_v27 = vld [vmem:[%s4090_s14 + $0x360] ss:$28 sps:$4 sm:$0xff]  }
 0x366   :  { %2228 = vmatpush1.bf16.msra.mxu0 %v3036_v28  ;;  %v3102_v28 = vld [vmem:[%s4090_s14 + $0x1a0] ss:$28 sps:$4 sm:$0xff]  }
 0x367   :  { %v1190_v50 = vpop.f32.mrb[12].mxu1 }
 0x368   :  { %v1191_v52 = vadd.f32 %v2505_v48, %v1190_v50  ;;  %v2729_v54 = vpop.f32.mrb[13].mxu1  ;;  %v2511_v48 = vld [vmem:[%s4092_s11] ss:$0 sm:$0xff] }
 0x369   :  { %v1193_v55 = vpop.f32.mrb[14].mxu1 }
 0x36a   :  { %v1196_v56 = vmax.f32 %v1191_v52, 0.0  ;;  %v2730_v57 = vpop.f32.mrb[15].mxu1  ;;  %v2943_v55 = vld [vmem:[%s4090_s14] ss:$28 sps:$4 sm:$0xff]  }
 0x36b   :  { %v2951_v57 = vld [vmem:[%s4090_s14 + $0x3c] ss:$28 sps:$4 sm:$0xff]  }
 0x36c   :  { %v1199_v59 = vmul.f32 %v1198_v53, %v1196_v56  ;;  %v2354_v60 = vmul.f32 %v1196_v56, %v1196_v56 }
 0x36e   :  { %v1200_v61 = vadd.f32 %v1199_v59, %v1116_v51  ;;  %v2357_v62 = vadd.f32 1e-08, %v2354_v60  ;;  %v2356_v63 = vadd.f32 %v2355_v58, %v2354_v60  ;;  %v2949_v58 = vld [vmem:[%s4090_s14 + $0x38] ss:$28 sps:$4 sm:$0xff]   ;;  %v2955_v60 = vld [vmem:[%s4090_s14 + $0x70] ss:$28 sps:$4 sm:$0xff]  }
 0x36f   :  { %v2957_v59 = vld [vmem:[%s4090_s14 + $0x74] ss:$28 sps:$4 sm:$0xff]  }
 0x370   :  { %v1201_v0 = vpack.c.bf16 %v1200_v61, %v1200_v61  ;;  %3103 = vlog2.f32 %v2357_v62  ;;  %v2963_v61 = vld [vmem:[%s4090_s14 + $0xac] ss:$28 sps:$4 sm:$0xff]  }
 0x371   :  { %v2961_v62 = vld [vmem:[%s4090_s14 + $0xa8] ss:$28 sps:$4 sm:$0xff]  }
 0x372   :  { %2734 = vmatmul.mubr.msk.bf16.vlgmr.msra.gmra.mrb[16].mxu1 %vm1216_vm4, %v1201_v0  ;;  %v2967_v0 = vld [vmem:[%s4090_s14 + $0xe0] ss:$28 sps:$4 sm:$0xff]  }
 0x373   :  { %1361 = vmatprep.mubr.bf16.mxu1 %v3133_v41  ;;  %1330 = vmatpush1.bf16.msra.mxu1 %v2931_v9  ;;  %v2934_v41 = vld [vmem:[%s4089_s12 + $0x10] ss:$8 sps:$4 sm:$0xff]   ;;  %v2985_v9 = vld [vmem:[%s4090_s14 + $0x188] ss:$28 sps:$4 sm:$0xff]  }
 0x374   :  { %1331 = vmatprep.subr.bf16.mxu1 %v2936_v11  ;;  %v2991_v11 = vld [vmem:[%s4090_s14 + $0x1c0] ss:$28 sps:$4 sm:$0xff]  }
 0x377   :  { %1332 = vmatpush1.bf16.msra.mxu1 %v2934_v41  ;;  %v2999_v41 = vld [vmem:[%s4090_s14 + $0x1fc] ss:$28 sps:$4 sm:$0xff]  }
 0x378   :  { %1333 = vmatprep.subr.bf16.mxu1 %v2939_v12  ;;  %v2997_v12 = vld [vmem:[%s4090_s14 + $0x1f8] ss:$28 sps:$4 sm:$0xff]  }
 0x37a   :  { %v3104_v1 = vpop.eup %3103 }
 0x37b   :  { %v2359_v2 = vmul.f32 0.6931472, %v3104_v1  ;;  %1334 = vmatpush1.bf16.msra.mxu1 %v2937_v13  ;;  %v2975_v1 = vld [vmem:[%s4090_s14 + $0x11c] ss:$28 sps:$4 sm:$0xff]   ;;  %v3005_v13 = vld [vmem:[%s4090_s14 + $0x234] ss:$28 sps:$4 sm:$0xff]  }
 0x37c   :  { %1335 = vmatprep.subr.bf16.mxu1 %v2942_v14  ;;  %v3003_v14 = vld [vmem:[%s4090_s14 + $0x230] ss:$28 sps:$4 sm:$0xff]  }
 0x37d   :  { %v2360_v3 = vsub.f32 %v2356_v63, %v2359_v2  ;;  %v2969_v63 = vld [vmem:[%s4090_s14 + $0xe4] ss:$28 sps:$4 sm:$0xff]   ;;  %v2973_v2 = vld [vmem:[%s4090_s14 + $0x118] ss:$28 sps:$4 sm:$0xff]  }
 0x37f   :  { %v2646_v6 = vadd.f32 -1.0, %v2360_v3  ;;  %1336 = vmatpush1.bf16.msra.mxu1 %v2940_v15  ;;  %v2981_v3 = vld [vmem:[%s4090_s14 + $0x154] ss:$28 sps:$4 sm:$0xff]   ;;  %v3011_v15 = vld [vmem:[%s4090_s14 + $0x26c] ss:$28 sps:$4 sm:$0xff]  }
 0x380   :  { %2115 = vmatprep.subr.bf16.mxu1 %v2945_v16  ;;  %v3009_v16 = vld [vmem:[%s4090_s14 + $0x268] ss:$28 sps:$4 sm:$0xff]  }
 0x381   :  { %v2362_v8 = vsel %vm1216_vm4, %v2646_v6, 0.0  ;;  %v2979_v6 = vld [vmem:[%s4090_s14 + $0x150] ss:$28 sps:$4 sm:$0xff]  }
 0x382   :  { %2363 = vadd.xlane.f32.xlu0 %v2362_v8  ;;  %v2987_v8 = vld [vmem:[%s4090_s14 + $0x18c] ss:$28 sps:$4 sm:$0xff]  }
 0x40f   :  { %v2364_v46 = vpop.xlane.xlu0 %2363 }
 0x410   :  { %v2365_v47 = vmul.f32 0.5, %v2364_v46  ;;  %v3042_v46 = vld [vmem:[%s4090_s14 + $0x40] ss:$28 sps:$4 sm:$0xff]  }
 0x412   :  { %2367 = vst.msk [vmem:[%s4091_s17] sm:$0xff] %vm2366_vm5, %v2365_v47  ;;  %v3047_v47 = vld [vmem:[%s4090_s14 + $0x7c] ss:$28 sps:$4 sm:$0xff]  }
 0x445   :  { %v1258_v49 = vpop.f32.mrb[16].mxu1 }
 0x446   :  { %v1259_v50 = vadd.f32 %v2511_v48, %v1258_v49  ;;  %v2735_v51 = vpop.f32.mrb[17].mxu1  ;;  %v3045_v48 = vld [vmem:[%s4090_s14 + $0x78] ss:$28 sps:$4 sm:$0xff]  }
 0x447   :  { %v1261_v52 = vpop.f32.mrb[18].mxu1  ;;  %v3050_v49 = vld [vmem:[%s4090_s14 + $0xb4] ss:$28 sps:$4 sm:$0xff]   ;;  %v3053_v51 = vld [vmem:[%s4090_s14 + $0xec] ss:$28 sps:$4 sm:$0xff]  }
 0x448   :  { %v1264_v53 = vmax.f32 %v1259_v50, 0.0  ;;  %v2736_v54 = vpop.f32.mrb[19].mxu1  ;;  %v3048_v50 = vld [vmem:[%s4090_s14 + $0xb0] ss:$28 sps:$4 sm:$0xff]   ;;  %v3051_v52 = vld [vmem:[%s4090_s14 + $0xe8] ss:$28 sps:$4 sm:$0xff]  }
 0x449   :  { %v3054_v54 = vld [vmem:[%s4090_s14 + $0x120] ss:$28 sps:$4 sm:$0xff]  }
 0x44a   :  { %v1265_v56 = vpack.c.bf16 %v1264_v53, %v1264_v53  ;;  %v3056_v53 = vld [vmem:[%s4090_s14 + $0x124] ss:$28 sps:$4 sm:$0xff]  }
 0x44c   :  { %2522 = vmatmul.mubr.msk.bf16.vlgmr.msra.gmra.mrb[20].mxu1 %vm1072_vm2, %v1265_v56  ;;  %v3057_v56 = vld [vmem:[%s4090_s14 + $0x158] ss:$28 sps:$4 sm:$0xff]  }
 0x44d   :  { %2116 = vmatpush1.bf16.msra.mxu1 %v2943_v55  ;;  %v3059_v55 = vld [vmem:[%s4090_s14 + $0x15c] ss:$28 sps:$4 sm:$0xff]  }
 0x44e   :  { %2117 = vmatprep.subr.bf16.mxu1 %v2951_v57  ;;  %v3062_v57 = vld [vmem:[%s4090_s14 + $0x194] ss:$28 sps:$4 sm:$0xff]  }
 0x451   :  { %2118 = vmatpush1.bf16.msra.mxu1 %v2949_v58  ;;  %v3060_v58 = vld [vmem:[%s4090_s14 + $0x190] ss:$28 sps:$4 sm:$0xff]  }
 0x452   :  { %2119 = vmatprep.subr.bf16.mxu1 %v2957_v59  ;;  %v3065_v59 = vld [vmem:[%s4090_s14 + $0x1cc] ss:$28 sps:$4 sm:$0xff]  }
 0x455   :  { %2120 = vmatpush1.bf16.msra.mxu1 %v2955_v60  ;;  %v3063_v60 = vld [vmem:[%s4090_s14 + $0x1c8] ss:$28 sps:$4 sm:$0xff]  }
 0x456   :  { %2121 = vmatprep.subr.bf16.mxu1 %v2963_v61  ;;  %v3068_v61 = vld [vmem:[%s4090_s14 + $0x204] ss:$28 sps:$4 sm:$0xff]  }
 0x459   :  { %2122 = vmatpush1.bf16.msra.mxu1 %v2961_v62  ;;  %v3066_v62 = vld [vmem:[%s4090_s14 + $0x200] ss:$28 sps:$4 sm:$0xff]  }
 0x45a   :  { %2123 = vmatprep.subr.bf16.mxu1 %v2969_v63  ;;  %v3071_v63 = vld [vmem:[%s4090_s14 + $0x23c] ss:$28 sps:$4 sm:$0xff]  }
 0x45d   :  { %2124 = vmatpush1.bf16.msra.mxu1 %v2967_v0  ;;  %v3069_v0 = vld [vmem:[%s4090_s14 + $0x238] ss:$28 sps:$4 sm:$0xff]  }
 0x45e   :  { %2125 = vmatprep.subr.bf16.mxu1 %v2975_v1  ;;  %v3074_v1 = vld [vmem:[%s4090_s14 + $0x274] ss:$28 sps:$4 sm:$0xff]  }
 0x461   :  { %2126 = vmatpush1.bf16.msra.mxu1 %v2973_v2  ;;  %v3072_v2 = vld [vmem:[%s4090_s14 + $0x270] ss:$28 sps:$4 sm:$0xff]  }
 0x462   :  { %2127 = vmatprep.subr.bf16.mxu1 %v2981_v3  ;;  %v3077_v3 = vld [vmem:[%s4090_s14 + $0x2ac] ss:$28 sps:$4 sm:$0xff]  }
 0x465   :  { %2128 = vmatpush1.bf16.msra.mxu1 %v2979_v6  ;;  %v3075_v6 = vld [vmem:[%s4090_s14 + $0x2a8] ss:$28 sps:$4 sm:$0xff]  }
 0x466   :  { %2129 = vmatprep.subr.bf16.mxu1 %v2987_v8  ;;  %v3080_v8 = vld [vmem:[%s4090_s14 + $0x2e4] ss:$28 sps:$4 sm:$0xff]  }
 0x469   :  { %2130 = vmatpush1.bf16.msra.mxu1 %v2985_v9  ;;  %v3078_v9 = vld [vmem:[%s4090_s14 + $0x2e0] ss:$28 sps:$4 sm:$0xff]  }
 0x46a   :  { %2131 = vmatprep.subr.bf16.mxu1 %v2993_v10  ;;  %v3083_v10 = vld [vmem:[%s4090_s14 + $0x31c] ss:$28 sps:$4 sm:$0xff]  }
 0x46d   :  { %2132 = vmatpush1.bf16.msra.mxu1 %v2991_v11  ;;  %v3081_v11 = vld [vmem:[%s4090_s14 + $0x318] ss:$28 sps:$4 sm:$0xff]  }
 0x46e   :  { %2133 = vmatprep.subr.bf16.mxu1 %v2999_v41  ;;  %v3086_v41 = vld [vmem:[%s4090_s14 + $0x354] ss:$28 sps:$4 sm:$0xff]  }
 0x471   :  { %2134 = vmatpush1.bf16.msra.mxu1 %v2997_v12  ;;  %v3084_v12 = vld [vmem:[%s4090_s14 + $0x350] ss:$28 sps:$4 sm:$0xff]  }
 0x472   :  { %2135 = vmatprep.subr.bf16.mxu1 %v3005_v13  ;;  %v3087_v13 = vld [vmem:[%s4090_s14 + $0x1d8] ss:$28 sps:$4 sm:$0xff]  }
 0x475   :  { %2136 = vmatpush1.bf16.msra.mxu1 %v3003_v14  ;;  %v3088_v14 = vld [vmem:[%s4090_s14 + $0x18] ss:$28 sps:$4 sm:$0xff]  }
 0x476   :  { %2137 = vmatprep.subr.bf16.mxu1 %v3011_v15  ;;  %v3089_v15 = vld [vmem:[%s4090_s14 + $0x210] ss:$28 sps:$4 sm:$0xff]  }
 0x479   :  { %2138 = vmatpush1.bf16.msra.mxu1 %v3009_v16  ;;  %v3090_v16 = vld [vmem:[%s4090_s14 + $0x50] ss:$28 sps:$4 sm:$0xff]  }
 0x47a   :  { %2139 = vmatprep.subr.bf16.mxu1 %v3017_v17  ;;  %v3091_v17 = vld [vmem:[%s4090_s14 + $0x248] ss:$28 sps:$4 sm:$0xff]  }
 0x47d   :  { %2140 = vmatpush1.bf16.msra.mxu1 %v3015_v18  ;;  %v3092_v18 = vld [vmem:[%s4090_s14 + $0x88] ss:$28 sps:$4 sm:$0xff]  }
 0x47e   :  { %2141 = vmatprep.subr.bf16.mxu1 %v3023_v19  ;;  %v3093_v19 = vld [vmem:[%s4090_s14 + $0x280] ss:$28 sps:$4 sm:$0xff]  }
 0x481   :  { %2142 = vmatpush1.bf16.msra.mxu1 %v3021_v20  ;;  %v3094_v20 = vld [vmem:[%s4090_s14 + $0xc0] ss:$28 sps:$4 sm:$0xff]  }
 0x482   :  { %2143 = vmatprep.subr.bf16.mxu1 %v3029_v21  ;;  %v3095_v21 = vld [vmem:[%s4090_s14 + $0x2b8] ss:$28 sps:$4 sm:$0xff]  }
 0x485   :  { %2144 = vmatpush1.bf16.msra.mxu1 %v3027_v22  ;;  %v3096_v22 = vld [vmem:[%s4090_s14 + $0xf8] ss:$28 sps:$4 sm:$0xff]  }
 0x486   :  { %2145 = vmatprep.subr.bf16.mxu1 %v3035_v25  ;;  %v3099_v25 = vld [vmem:[%s4090_s14 + $0x328] ss:$28 sps:$4 sm:$0xff]  }
 0x489   :  { %2146 = vmatpush1.bf16.msra.mxu1 %v3033_v26  ;;  %v3100_v26 = vld [vmem:[%s4090_s14 + $0x168] ss:$28 sps:$4 sm:$0xff]  }
 0x48a   :  { %2156 = vmatprep.subr.bf16.mxu1 %v3041_v29  ;;  %v1522_v29 = vsub.s32 4, %v3594_v4 }
 0x51f   :  { %v1363_v33 = vpop.f32.mrb[20].mxu1 }
 0x520   :  { %v1364_v34 = vadd.f32 %v1363_v33, %v1279_v31  ;;  %v1365_v35 = vpop.f32.mrb[21].mxu1  ;;  %v1526_v31 = vsub.s32 5, %v3594_v4  ;;  %v1523_v33 = vrot.slane %v4051_v30, %v1522_v29 }
 0x521   :  { %v1366_v36 = vadd.f32 %v1365_v35, %v1283_v32  ;;  %v1367_v37 = vpop.f32.mrb[22].mxu1  ;;  %v1507_v32 = vrot.slane %v4051_v30, %v3597_v5 }
 0x522   :  { %v1370_v38 = vmax.f32 %v1364_v34, 0.0  ;;  %v1368_v39 = vpop.f32.mrb[23].mxu1  ;;  %v1511_v34 = vrot.slane %v4051_v30, %v3603_v7  ;;  %v1527_v35 = vrot.slane %v4051_v30, %v1526_v31 }
 0x523   :  { %v1371_v40 = vmax.f32 %v1366_v36, 0.0 }
 0x524   :  { %v3899_v44 = vpack.c.bf16 %v1370_v38, %v1370_v38 }
 0x525   :  { %v3894_v42 = vpack.c.bf16 %v1371_v40, %v1371_v40 }
 0x527   :  { %2147 = vmatprep.mubr.bf16.mxu1 %v3894_v42  ;;  %2229 = vmatprep.mubr.bf16.mxu0 %v3894_v42 }
 0x528   :  { %2148 = vmatmul.mubr.bf16.vlgmr.msra.gmra.mrb[24].mxu1 %v3899_v44  ;;  %2230 = vmatmul.mubr.bf16.vlgmr.msra.gmra.mrb[4].mxu0 %v3899_v44 }
 0x529   :  { %2157 = vmatpush1.bf16.msra.mxu1 %v3039_v43  ;;  %2188 = vmatprep.mubr.bf16.mxu1 %v3894_v42 }
 0x52a   :  { %2158 = vmatprep.subr.bf16.mxu1 %v3044_v45 }
 0x52d   :  { %2159 = vmatpush1.bf16.msra.mxu1 %v3042_v46 }
 0x52e   :  { %2160 = vmatprep.subr.bf16.mxu1 %v3047_v47 }
 0x531   :  { %2161 = vmatpush1.bf16.msra.mxu1 %v3045_v48 }
 0x532   :  { %2162 = vmatprep.subr.bf16.mxu1 %v3050_v49 }
 0x535   :  { %2163 = vmatpush1.bf16.msra.mxu1 %v3048_v50 }
 0x536   :  { %2164 = vmatprep.subr.bf16.mxu1 %v3053_v51 }
 0x539   :  { %2165 = vmatpush1.bf16.msra.mxu1 %v3051_v52 }
 0x53a   :  { %2166 = vmatprep.subr.bf16.mxu1 %v3056_v53 }
 0x53d   :  { %2167 = vmatpush1.bf16.msra.mxu1 %v3054_v54 }
 0x53e   :  { %2168 = vmatprep.subr.bf16.mxu1 %v3059_v55 }
 0x541   :  { %2169 = vmatpush1.bf16.msra.mxu1 %v3057_v56 }
 0x542   :  { %2170 = vmatprep.subr.bf16.mxu1 %v3062_v57 }
 0x545   :  { %2171 = vmatpush1.bf16.msra.mxu1 %v3060_v58 }
 0x546   :  { %2172 = vmatprep.subr.bf16.mxu1 %v3065_v59 }
 0x549   :  { %2173 = vmatpush1.bf16.msra.mxu1 %v3063_v60 }
 0x54a   :  { %2174 = vmatprep.subr.bf16.mxu1 %v3068_v61 }
 0x54d   :  { %2175 = vmatpush1.bf16.msra.mxu1 %v3066_v62 }
 0x54e   :  { %2176 = vmatprep.subr.bf16.mxu1 %v3071_v63 }
 0x551   :  { %2177 = vmatpush1.bf16.msra.mxu1 %v3069_v0 }
 0x552   :  { %2178 = vmatprep.subr.bf16.mxu1 %v3074_v1  ;;  %v1514_v1 = vsub.s32 2, %v3594_v4 }
 0x555   :  { %2179 = vmatpush1.bf16.msra.mxu1 %v3072_v2  ;;  %v1518_v2 = vsub.s32 3, %v3594_v4 }
 0x556   :  { %2180 = vmatprep.subr.bf16.mxu1 %v3077_v3  ;;  %v1515_v3 = vrot.slane %v4051_v30, %v1514_v1 }
 0x559   :  { %2181 = vmatpush1.bf16.msra.mxu1 %v3075_v6  ;;  %v1519_v6 = vrot.slane %v4051_v30, %v1518_v2 }
 0x55a   :  { %2182 = vmatprep.subr.bf16.mxu1 %v3080_v8 }
 0x55d   :  { %2183 = vmatpush1.bf16.msra.mxu1 %v3078_v9 }
 0x55e   :  { %2184 = vmatprep.subr.bf16.mxu1 %v3083_v10 }
 0x561   :  { %2185 = vmatpush1.bf16.msra.mxu1 %v3081_v11 }
 0x562   :  { %2186 = vmatprep.subr.bf16.mxu1 %v3086_v41 }
 0x565   :  { %2187 = vmatpush1.bf16.msra.mxu1 %v3084_v12 }
 0x566   :  { %2685 = vmatprep.subr.bf16.mxu1 %v3087_v13 }
 0x568   :  { %2189 = vmatmul.mubr.bf16.vlgmr.msra.gmra.mrb[28].mxu1 %v3899_v44 }
 0x569   :  { %2686 = vmatpush3.bf16.msra.mxu1 %v3088_v14  ;;  %2270 = vmatprep.mubr.bf16.mxu1 %v3894_v42 }
 0x56a   :  { %2687 = vmatprep.subr.bf16.mxu1 %v3089_v15 }
 0x56d   :  { %2688 = vmatpush3.bf16.msra.mxu1 %v3090_v16 }
 0x56e   :  { %2689 = vmatprep.subr.bf16.mxu1 %v3091_v17 }
 0x571   :  { %2690 = vmatpush3.bf16.msra.mxu1 %v3092_v18 }
 0x572   :  { %2691 = vmatprep.subr.bf16.mxu1 %v3093_v19 }
 0x575   :  { %2692 = vmatpush3.bf16.msra.mxu1 %v3094_v20  ;;  %v1530_v20 = vsub.s32 6, %v3594_v4 }
 0x576   :  { %2693 = vmatprep.subr.bf16.mxu1 %v3095_v21 }
 0x579   :  { %2694 = vmatpush3.bf16.msra.mxu1 %v3096_v22 }
 0x57a   :  { %2695 = vmatprep.subr.bf16.mxu1 %v3097_v23 }
 0x57d   :  { %2696 = vmatpush3.bf16.msra.mxu1 %v3098_v24  ;;  %v1531_v24 = vrot.slane %v4051_v30, %v1530_v20 }
 0x57e   :  { %2697 = vmatprep.subr.bf16.mxu1 %v3099_v25 }
 0x581   :  { %2698 = vmatpush3.bf16.msra.mxu1 %v3100_v26 }
 0x582   :  { %2699 = vmatprep.subr.bf16.mxu1 %v3101_v27 }
 0x585   :  { %2700 = vmatpush3.bf16.msra.mxu1 %v3102_v28 }
 0x588   :  { %2271 = vmatmul.mubr.bf16.vlgmr.msra.gmra.mrb[32].mxu1 %v3899_v44 }
 0x5fb   :  { %v2149_v36 = vpop.f32.mrb[24].mxu1  ;;  %v2231_v37 = vpop.f32.mrb[4].mxu0 }
 0x5fc   :  { %v2150_v38 = vadd.f32 %v2149_v36, %v1507_v32  ;;  %v2232_v39 = vadd.f32 %v2231_v37, %v1523_v33  ;;  %v2151_v40 = vpop.f32.mrb[25].mxu1  ;;  %v2233_v42 = vpop.f32.mrb[5].mxu0 }
 0x5fd   :  { %v2152_v43 = vadd.f32 %v2151_v40, %v1511_v34  ;;  %v2234_v44 = vadd.f32 %v2233_v42, %v1527_v35  ;;  %v2153_v45 = vpop.f32.mrb[26].mxu1  ;;  %v2235_v46 = vpop.f32.mrb[6].mxu0 }
 0x5fe   :  { %v2635_v47 = vmul.f32 -1.442695, %v2150_v38  ;;  %v2639_v48 = vmul.f32 -1.442695, %v2232_v39  ;;  %v2154_v5 = vpop.f32.mrb[27].mxu1  ;;  %v2236_v49 = vpop.f32.mrb[7].mxu0 }
 0x5ff   :  { %v2636_v50 = vmul.f32 -1.442695, %v2152_v43  ;;  %v2640_v51 = vmul.f32 -1.442695, %v2234_v44 }
 0x600   :  { %3105 = vpow2.f32 %v2635_v47 }
 0x601   :  { %3107 = vpow2.f32 %v2639_v48 }
 0x602   :  { %3109 = vpow2.f32 %v2636_v50 }
 0x603   :  { %3111 = vpow2.f32 %v2640_v51 }
 0x60a   :  { %v3106_v7 = vpop.eup %3105 }
 0x60b   :  { %v3108_v52 = vpop.eup %3107  ;;  %v2299_v53 = vadd.f32 1.0, %v3106_v7 }
 0x60c   :  { %v3110_v54 = vpop.eup %3109  ;;  %v2303_v55 = vadd.f32 1.0, %v3108_v52 }
 0x60d   :  { %v3112_v56 = vpop.eup %3111  ;;  %3113 = vrcp.f32 %v2299_v53  ;;  %v2300_v57 = vadd.f32 1.0, %v3110_v54 }
 0x60e   :  { %3115 = vrcp.f32 %v2303_v55  ;;  %v2304_v58 = vadd.f32 1.0, %v3112_v56 }
 0x60f   :  { %3117 = vrcp.f32 %v2300_v57 }
 0x610   :  { %3119 = vrcp.f32 %v2304_v58 }
 0x617   :  { %v3114_v59 = vpop.eup %3113 }
 0x618   :  { %v3116_v60 = vpop.eup %3115 }
 0x619   :  { %v3118_v61 = vpop.eup %3117 }
 0x61a   :  { %v3120_v62 = vpop.eup %3119  ;;  %v2647_v63 = vpack.c.bf16 %v3118_v61, %v3114_v59 }
 0x61b   :  { %v2649_v0 = vpack.c.bf16 %v3120_v62, %v3116_v60 }
 0x61c   :  { %2349 = vst [vmem:[%s4095_s16] sm:$0xff] %v2647_v63 }
 0x61d   :  { %2351 = vst [vmem:[%s4095_s16 + $0x10] sm:$0xff] %v2649_v0 }
 0x63b   :  { %v2190_v8 = vpop.f32.mrb[28].mxu1 }
 0x63c   :  { %v2191_v9 = vadd.f32 %v2190_v8, %v1515_v3  ;;  %v2192_v10 = vpop.f32.mrb[29].mxu1 }
 0x63d   :  { %v2193_v11 = vadd.f32 %v2192_v10, %v1519_v6  ;;  %v2194_v41 = vpop.f32.mrb[30].mxu1 }
 0x63e   :  { %v2637_v12 = vmul.f32 -1.442695, %v2191_v9  ;;  %v2195_v13 = vpop.f32.mrb[31].mxu1 }
 0x63f   :  { %v2638_v14 = vmul.f32 -1.442695, %v2193_v11 }
 0x640   :  { %3121 = vpow2.f32 %v2637_v12 }
 0x641   :  { %3123 = vpow2.f32 %v2638_v14 }
 0x64a   :  { %v3122_v15 = vpop.eup %3121 }
 0x64b   :  { %v3124_v16 = vpop.eup %3123  ;;  %v2301_v17 = vadd.f32 1.0, %v3122_v15 }
 0x64c   :  { %v2302_v18 = vadd.f32 1.0, %v3124_v16 }
 0x64d   :  { %3125 = vrcp.f32 %v2301_v17 }
 0x64e   :  { %3127 = vrcp.f32 %v2302_v18 }
 0x657   :  { %v3126_v19 = vpop.eup %3125 }
 0x658   :  { %v3128_v21 = vpop.eup %3127 }
 0x659   :  { %v2648_v22 = vpack.c.bf16 %v3128_v21, %v3126_v19 }
 0x65b   :  { %2350 = vst [vmem:[%s4095_s16 + $0x8] sm:$0xff] %v2648_v22  ;;  %v2701_v23 = vpop.f32.mrb[32].mxu1 }
 0x65c   :  { %v2702_v25 = vpop.f32.mrb[33].mxu1 }
 0x65d   :  { %v2703_v26 = vadd.f32 %v2702_v25, %v2701_v23  ;;  %v2704_v27 = vpop.f32.mrb[34].mxu1 }
 0x65e   :  { %v2705_v28 = vpop.f32.mrb[35].mxu1 }
 0x65f   :  { %v2273_v29 = vadd.f32 %v2703_v26, %v1531_v24 }
 0x661   :  { %v2641_v31 = vmul.f32 -1.442695, %v2273_v29 }
 0x663   :  { %3129 = vpow2.f32 %v2641_v31 }
 0x66d   :  { %v3130_v32 = vpop.eup %3129 }
 0x66e   :  { %v2305_v33 = vadd.f32 1.0, %v3130_v32 }
 0x670   :  { %3131 = vrcp.f32 %v2305_v33 }
 0x67a   :  { %v3132_v4 = vpop.eup %3131 }
 0x67b   :  { %v2650_v34 = vpack.c.bf16 %v3132_v4, %v3132_v4 }
 0x67d   :  { %2353 = vst.msk [vmem:[%s4095_s16 + $0x18] sm:$0xf] %vm2352_vm6, %v2650_v34 }

// kernel: _vae_forward_impl.1
= control target key start
LH: loop header
LB: loop body
LE: loop exit
PB: predicated region body
PF: predicated region fallthrough
CT: control target
= control target key end

     0   :  { %v3133_v41 = vmov 0   ;;  %vm684_vm0 = vcmask 130048   ;;  %vm3135_vm1 = vmmov 0   ;;  %vm1072_vm2 = vcmask 523264   ;;  %s4078_s2 = inlined_call_operand.vmem [shape: bf16[784,256], index: 2, kind: input, shape index: {}]   ;;  %s4079_s0 = inlined_call_operand.vmem [shape: bf16[8,784], index: 0, kind: input, shape index: {}]   ;;  %s4080_s4 = inlined_call_operand.vmem [shape: bf16[256,64], index: 4, kind: input, shape index: {}]   ;;  %s4081_s6 = inlined_call_operand.vmem [shape: bf16[64,10], index: 6, kind: input, shape index: {}]   ;;  %s4082_s3 = inlined_call_operand.vmem [shape: f32[1,256], index: 3, kind: input, shape index: {}]   ;;  %s4083_s8 = inlined_call_operand.vmem [shape: bf16[64,10], index: 8, kind: input, shape index: {}]   ;;  %s4084_s5 = inlined_call_operand.vmem [shape: f32[1,64], index: 5, kind: input, shape index: {}]   ;;  %s4085_s10 = inlined_call_operand.vmem [shape: bf16[10,64], index: 10, kind: input, shape index: {}]   ;;  %s4086_s7 = inlined_call_operand.vmem [shape: f32[1,10], index: 7, kind: input, shape index: {}]   ;;  %s4087_s1 = inlined_call_operand.vmem [shape: bf16[8,10], index: 1, kind: input, shape index: {}]   ;;  %s4088_s9 = inlined_call_operand.vmem [shape: f32[1,10], index: 9, kind: input, shape index: {}]   ;;  %s4089_s12 = inlined_call_operand.vmem [shape: bf16[64,256], index: 12, kind: input, shape index: {}]   ;;  %s4090_s14 = inlined_call_operand.vmem [shape: bf16[256,784], index: 14, kind: input, shape index: {}]   ;;  %s4091_s17 = inlined_call_operand.vmem [shape: f32[8,1], index: 17, kind: output, shape index: {1}]   ;;  %s4092_s11 = inlined_call_operand.vmem [shape: f32[1,64], index: 11, kind: input, shape index: {}]   ;;  %s4093_s13 = inlined_call_operand.vmem [shape: f32[1,256], index: 13, kind: input, shape index: {}]   ;;  %s4094_s15 = inlined_call_operand.vmem [shape: f32[1,784], index: 15, kind: input, shape index: {}]   ;;  %s4095_s16 = inlined_call_operand.vmem [shape: bf16[8,784], index: 16, kind: output, shape index: {0}]  }
   0x1   :  { %4098 = sst [smem:[#allocation2_spill]] %s4078_s2  ;;  %843 = vmatprep.mubr.bf16.mxu1 %v3133_v41  ;;  %v2906_v46 = vld [vmem:[%s4080_s4 + $0x40] sm:$0xff]   ;;  %v2908_v48 = vld [vmem:[%s4080_s4 + $0x48] sm:$0xff]   ;;  %v2910_v53 = vld [vmem:[%s4080_s4 + $0x50] sm:$0xff]   ;;  %vm1220_vm3 = vcmask 1044480   ;;  %vm1216_vm4 = vcmask 80896  }
   0x2   :  { %4099 = sst [smem:[#allocation3_spill]] %s4079_s0  ;;  %s4100_s26 = sld [smem:[#allocation2_spill]]  ;;  %v2907_v47 = vld [vmem:[%s4080_s4] sm:$0xff]   ;;  %v2909_v51 = vld [vmem:[%s4080_s4 + $0x8] sm:$0xff]   ;;  %v2911_v55 = vld [vmem:[%s4080_s4 + $0x10] sm:$0xff]   ;;  %vm2366_vm5 = vcmask 7168  }
   0x3   :  { %s4101_s24 = sld [smem:[#allocation3_spill]]  ;;  %v2912_v56 = vld [vmem:[%s4080_s4 + $0x58] sm:$0xff]   ;;  %v2914_v60 = vld [vmem:[%s4080_s4 + $0x60] sm:$0xff]   ;;  %vm2352_vm6 = vcmask 125952  }
   0x4   :  { %v2913_v59 = vld [vmem:[%s4080_s4 + $0x18] sm:$0xff]   ;;  %v2915_v63 = vld [vmem:[%s4080_s4 + $0x20] sm:$0xff]  }
   0x8   :  { %v2752_v0 = vld [vmem:[%s4100_s26 + $0x4] ss:$8 sps:$4 sm:$0xff]   ;;  %v2754_v1 = vld [vmem:[%s4100_s26] ss:$8 sps:$4 sm:$0xff]   ;;  %v2755_v2 = vld [vmem:[%s4100_s26 + $0x14] ss:$8 sps:$4 sm:$0xff]  }
   0x9   :  { %688 = vmatprep.subr.bf16.mxu0 %v2752_v0  ;;  %v2757_v3 = vld [vmem:[%s4100_s26 + $0x10] ss:$8 sps:$4 sm:$0xff]   ;;  %v2758_v4 = vld [vmem:[%s4100_s26 + $0x24] ss:$8 sps:$4 sm:$0xff]   ;;  %v2760_v5 = vld [vmem:[%s4100_s26 + $0x20] ss:$8 sps:$4 sm:$0xff]  }
   0xa   :  { %689 = vmatpush1.bf16.msra.mxu0 %v2754_v1  ;;  %v2761_v6 = vld [vmem:[%s4100_s26 + $0x34] ss:$8 sps:$4 sm:$0xff]   ;;  %v2763_v7 = vld [vmem:[%s4100_s26 + $0x30] ss:$8 sps:$4 sm:$0xff]   ;;  %v2764_v8 = vld [vmem:[%s4100_s26 + $0x44] ss:$8 sps:$4 sm:$0xff]  }
   0xb   :  { %690 = vmatprep.subr.bf16.mxu0 %v2755_v2  ;;  %v2766_v9 = vld [vmem:[%s4100_s26 + $0x40] ss:$8 sps:$4 sm:$0xff]   ;;  %v2767_v10 = vld [vmem:[%s4100_s26 + $0x54] ss:$8 sps:$4 sm:$0xff]   ;;  %v2769_v11 = vld [vmem:[%s4100_s26 + $0x50] ss:$8 sps:$4 sm:$0xff]  }
   0xc   :  { %v2770_v12 = vld [vmem:[%s4100_s26 + $0x64] ss:$8 sps:$4 sm:$0xff]   ;;  %v2772_v15 = vld [vmem:[%s4100_s26 + $0x60] ss:$8 sps:$4 sm:$0xff]   ;;  %v2773_v16 = vld [vmem:[%s4100_s26 + $0x74] ss:$8 sps:$4 sm:$0xff]  }
   0xd   :  { %v56_v13 = vld [vmem:[%s4101_s24] sm:$0xff]  ;;  %v2775_v17 = vld [vmem:[%s4100_s26 + $0x70] ss:$8 sps:$4 sm:$0xff]   ;;  %v2779_v20 = vld [vmem:[%s4100_s26 + $0x94] ss:$8 sps:$4 sm:$0xff]  }
   0xe   :  { %691 = vmatpush1.bf16.msra.mxu0 %v2757_v3  ;;  %v2377_v14 = vcombine.high %v56_v13, %v56_v13  ;;  %v2776_v18 = vld [vmem:[%s4100_s26 + $0x84] ss:$8 sps:$4 sm:$0xff]   ;;  %v2778_v19 = vld [vmem:[%s4100_s26 + $0x80] ss:$8 sps:$4 sm:$0xff]   ;;  %v2781_v21 = vld [vmem:[%s4100_s26 + $0x90] ss:$8 sps:$4 sm:$0xff]   ;;  %v2376_v36 = vcombine.low %v56_v13, %v56_v13 }
   0xf   :  { %692 = vmatprep.subr.bf16.mxu0 %v2758_v4  ;;  %v2782_v22 = vld [vmem:[%s4100_s26 + $0xa4] ss:$8 sps:$4 sm:$0xff]   ;;  %v2784_v23 = vld [vmem:[%s4100_s26 + $0xa0] ss:$8 sps:$4 sm:$0xff]   ;;  %v2785_v24 = vld [vmem:[%s4100_s26 + $0xb4] ss:$8 sps:$4 sm:$0xff]  }
  0x10   :  { %720 = vmatprep.mubr.bf16.mxu0 %v2377_v14  ;;  %v2787_v25 = vld [vmem:[%s4100_s26 + $0xb0] ss:$8 sps:$4 sm:$0xff]   ;;  %v2788_v26 = vld [vmem:[%s4100_s26 + $0xc4] ss:$8 sps:$4 sm:$0xff]   ;;  %v2790_v27 = vld [vmem:[%s4100_s26 + $0xc0] ss:$8 sps:$4 sm:$0xff]  }
  0x11   :  { %v2791_v28 = vld [vmem:[%s4100_s26 + $0xd4] ss:$8 sps:$4 sm:$0xff]   ;;  %v2793_v29 = vld [vmem:[%s4100_s26 + $0xd0] ss:$8 sps:$4 sm:$0xff]   ;;  %v2794_v30 = vld [vmem:[%s4100_s26 + $0xe4] ss:$8 sps:$4 sm:$0xff]  }
  0x12   :  { %693 = vmatpush1.bf16.msra.mxu0 %v2760_v5  ;;  %v2796_v31 = vld [vmem:[%s4100_s26 + $0xe0] ss:$8 sps:$4 sm:$0xff]   ;;  %v2797_v32 = vld [vmem:[%s4100_s26 + $0xf4] ss:$8 sps:$4 sm:$0xff]   ;;  %v2799_v33 = vld [vmem:[%s4100_s26 + $0xf0] ss:$8 sps:$4 sm:$0xff]  }
  0x13   :  { %694 = vmatprep.subr.bf16.mxu0 %v2761_v6  ;;  %v2804_v34 = vld [vmem:[%s4100_s26 + $0x104] ss:$8 sps:$4 sm:$0xff]   ;;  %v2802_v37 = vld [vmem:[%s4100_s26 + $0x100] ss:$8 sps:$4 sm:$0xff]   ;;  %v2807_v38 = vld [vmem:[%s4100_s26 + $0x114] ss:$8 sps:$4 sm:$0xff]  }
  0x14   :  { %v3331_v35 = vld [vmem:[%s4101_s24 + $0x8] sm:$0xff]  ;;  %v2805_v42 = vld [vmem:[%s4100_s26 + $0x110] ss:$8 sps:$4 sm:$0xff]   ;;  %v2813_v50 = vld [vmem:[%s4100_s26 + $0x134] ss:$8 sps:$4 sm:$0xff]  }
  0x15   :  { %v2379_v39 = vcombine.high %v3331_v35, %v3331_v35  ;;  %v2897_v40 = vld [vmem:[%s4100_s26 + $0x304] ss:$8 sps:$4 sm:$0xff]   ;;  %v2902_v43 = vld [vmem:[%s4100_s26 + $0x300] ss:$8 sps:$4 sm:$0xff]   ;;  %v2905_v45 = vld [vmem:[%s4101_s24 + $0x18] ss:$0 sps:$4 sm:$0xff]  }
  0x16   :  { %695 = vmatpush1.bf16.msra.mxu0 %v2763_v7  ;;  %v2810_v44 = vld [vmem:[%s4100_s26 + $0x124] ss:$8 sps:$4 sm:$0xff]   ;;  %811 = vmatprep.subr.bf16.mxu1 %v2897_v40  ;;  %v2808_v49 = vld [vmem:[%s4100_s26 + $0x120] ss:$8 sps:$4 sm:$0xff]   ;;  %v2811_v52 = vld [vmem:[%s4100_s26 + $0x130] ss:$8 sps:$4 sm:$0xff]  }
  0x17   :  { %696 = vmatprep.subr.bf16.mxu0 %v2764_v8  ;;  %812 = vmatpush1.bf16.msra.mxu1 %v2902_v43  ;;  %v2816_v54 = vld [vmem:[%s4100_s26 + $0x144] ss:$8 sps:$4 sm:$0xff]   ;;  %v2814_v57 = vld [vmem:[%s4100_s26 + $0x140] ss:$8 sps:$4 sm:$0xff]   ;;  %v2819_v58 = vld [vmem:[%s4100_s26 + $0x154] ss:$8 sps:$4 sm:$0xff]  }
  0x18   :  { %2651 = vmatprep.subr.bf16.mxu1 %v2906_v46  ;;  %v2817_v61 = vld [vmem:[%s4100_s26 + $0x150] ss:$8 sps:$4 sm:$0xff]   ;;  %v2822_v62 = vld [vmem:[%s4100_s26 + $0x164] ss:$8 sps:$4 sm:$0xff]   ;;  %v2820_v0 = vld [vmem:[%s4100_s26 + $0x160] ss:$8 sps:$4 sm:$0xff]  }
  0x19   :  { %v2825_v1 = vld [vmem:[%s4100_s26 + $0x174] ss:$8 sps:$4 sm:$0xff]   ;;  %v2823_v2 = vld [vmem:[%s4100_s26 + $0x170] ss:$8 sps:$4 sm:$0xff]   ;;  %v2828_v3 = vld [vmem:[%s4100_s26 + $0x184] ss:$8 sps:$4 sm:$0xff]  }
  0x1a   :  { %697 = vmatpush1.bf16.msra.mxu0 %v2766_v9  ;;  %2481 = vmatmul.mubr.msk.bf16.vlgmr.msra.gmra.mrb[0].mxu1 %vm684_vm0, %v2905_v45  ;;  %v2826_v4 = vld [vmem:[%s4100_s26 + $0x180] ss:$8 sps:$4 sm:$0xff]   ;;  %v2831_v5 = vld [vmem:[%s4100_s26 + $0x194] ss:$8 sps:$4 sm:$0xff]   ;;  %v2829_v6 = vld [vmem:[%s4100_s26 + $0x190] ss:$8 sps:$4 sm:$0xff]  }
  0x1b   :  { %698 = vmatprep.subr.bf16.mxu0 %v2767_v10  ;;  %2652 = vmatpush3.bf16.msra.mxu1 %v2907_v47  ;;  %v2834_v7 = vld [vmem:[%s4100_s26 + $0x1a4] ss:$8 sps:$4 sm:$0xff]   ;;  %v2832_v8 = vld [vmem:[%s4100_s26 + $0x1a0] ss:$8 sps:$4 sm:$0xff]   ;;  %v2837_v9 = vld [vmem:[%s4100_s26 + $0x1b4] ss:$8 sps:$4 sm:$0xff]  }
  0x1c   :  { %2653 = vmatprep.subr.bf16.mxu1 %v2908_v48  ;;  %v2835_v10 = vld [vmem:[%s4100_s26 + $0x1b0] ss:$8 sps:$4 sm:$0xff]   ;;  %v2843_v13 = vld [vmem:[%s4100_s26 + $0x1d4] ss:$8 sps:$4 sm:$0xff]   ;;  %v2876_v40 = vld [vmem:[%s4100_s26 + $0x280] ss:$8 sps:$4 sm:$0xff]  }
  0x1d   :  { %v2841_v14 = vld [vmem:[%s4100_s26 + $0x1d0] ss:$8 sps:$4 sm:$0xff]   ;;  %v2882_v45 = vld [vmem:[%s4100_s26 + $0x2a0] ss:$8 sps:$4 sm:$0xff]   ;;  %v2887_v46 = vld [vmem:[%s4100_s26 + $0x2b4] ss:$8 sps:$4 sm:$0xff]  }
  0x1e   :  { %699 = vmatpush1.bf16.msra.mxu0 %v2769_v11  ;;  %v2840_v11 = vld [vmem:[%s4100_s26 + $0x1c4] ss:$8 sps:$4 sm:$0xff]   ;;  %v2879_v43 = vld [vmem:[%s4100_s26 + $0x290] ss:$8 sps:$4 sm:$0xff]  }
  0x1f   :  { %700 = vmatprep.subr.bf16.mxu0 %v2770_v12  ;;  %2654 = vmatpush3.bf16.msra.mxu1 %v2909_v51  ;;  %v2838_v12 = vld [vmem:[%s4100_s26 + $0x1c0] ss:$8 sps:$4 sm:$0xff]   ;;  %v2885_v47 = vld [vmem:[%s4100_s26 + $0x2b0] ss:$8 sps:$4 sm:$0xff]   ;;  %v2890_v48 = vld [vmem:[%s4100_s26 + $0x2c4] ss:$8 sps:$4 sm:$0xff]  }
  0x20   :  { %2655 = vmatprep.subr.bf16.mxu1 %v2910_v53  ;;  %v2891_v51 = vld [vmem:[%s4100_s26 + $0x2d0] ss:$8 sps:$4 sm:$0xff]   ;;  %v2894_v53 = vld [vmem:[%s4100_s26 + $0x2e0] ss:$8 sps:$4 sm:$0xff]  }
  0x22   :  { %701 = vmatpush1.bf16.msra.mxu0 %v2772_v15  ;;  %v2846_v15 = vld [vmem:[%s4100_s26 + $0x1e4] ss:$8 sps:$4 sm:$0xff]  }
  0x23   :  { %702 = vmatprep.subr.bf16.mxu0 %v2773_v16  ;;  %2656 = vmatpush3.bf16.msra.mxu1 %v2911_v55  ;;  %v2844_v16 = vld [vmem:[%s4100_s26 + $0x1e0] ss:$8 sps:$4 sm:$0xff]   ;;  %v2899_v55 = vld [vmem:[%s4100_s26 + $0x2f0] ss:$8 sps:$4 sm:$0xff]  }
  0x24   :  { %2657 = vmatprep.subr.bf16.mxu1 %v2912_v56 }
  0x26   :  { %703 = vmatpush1.bf16.msra.mxu0 %v2775_v17  ;;  %v2849_v17 = vld [vmem:[%s4100_s26 + $0x1f4] ss:$8 sps:$4 sm:$0xff]  }
  0x27   :  { %704 = vmatprep.subr.bf16.mxu0 %v2776_v18  ;;  %2658 = vmatpush3.bf16.msra.mxu1 %v2913_v59  ;;  %v2847_v18 = vld [vmem:[%s4100_s26 + $0x1f0] ss:$8 sps:$4 sm:$0xff]  }
  0x28   :  { %2659 = vmatprep.subr.bf16.mxu1 %v2914_v60  ;;  %v2919_v59 = vld [vmem:[%s4080_s4 + $0x30] sm:$0xff]  }
  0x2a   :  { %705 = vmatpush1.bf16.msra.mxu0 %v2778_v19  ;;  %v2854_v19 = vld [vmem:[%s4100_s26 + $0x204] ss:$8 sps:$4 sm:$0xff]  }
  0x2b   :  { %706 = vmatprep.subr.bf16.mxu0 %v2779_v20  ;;  %2660 = vmatpush3.bf16.msra.mxu1 %v2915_v63  ;;  %v3474_v20 = vld [vmem:[%s4101_s24 + $0x10] sm:$0xff]  ;;  %v2921_v63 = vld [vmem:[%s4080_s4 + $0x38] sm:$0xff]  }
  0x2c   :  { %v2380_v56 = vcombine.low %v3474_v20, %v3474_v20 }
  0x2e   :  { %707 = vmatpush1.bf16.msra.mxu0 %v2781_v21  ;;  %v2378_v21 = vcombine.low %v3331_v35, %v3331_v35  ;;  %v2870_v35 = vld [vmem:[%s4100_s26 + $0x260] ss:$8 sps:$4 sm:$0xff]  }
  0x2f   :  { %708 = vmatprep.subr.bf16.mxu0 %v2782_v22  ;;  %v2852_v22 = vld [vmem:[%s4100_s26 + $0x200] ss:$8 sps:$4 sm:$0xff]  }
  0x32   :  { %709 = vmatpush1.bf16.msra.mxu0 %v2784_v23  ;;  %v2381_v23 = vcombine.high %v3474_v20, %v3474_v20 }
  0x33   :  { %710 = vmatprep.subr.bf16.mxu0 %v2785_v24  ;;  %v2857_v24 = vld [vmem:[%s4100_s26 + $0x214] ss:$8 sps:$4 sm:$0xff]  }
  0x36   :  { %711 = vmatpush1.bf16.msra.mxu0 %v2787_v25  ;;  %v2855_v25 = vld [vmem:[%s4100_s26 + $0x210] ss:$8 sps:$4 sm:$0xff]  }
  0x37   :  { %712 = vmatprep.subr.bf16.mxu0 %v2788_v26  ;;  %v2860_v26 = vld [vmem:[%s4100_s26 + $0x224] ss:$8 sps:$4 sm:$0xff]  }
  0x3a   :  { %713 = vmatpush1.bf16.msra.mxu0 %v2790_v27  ;;  %v2858_v27 = vld [vmem:[%s4100_s26 + $0x220] ss:$8 sps:$4 sm:$0xff]  }
  0x3b   :  { %714 = vmatprep.subr.bf16.mxu0 %v2791_v28  ;;  %v2863_v28 = vld [vmem:[%s4100_s26 + $0x234] ss:$8 sps:$4 sm:$0xff]  }
  0x3e   :  { %715 = vmatpush1.bf16.msra.mxu0 %v2793_v29  ;;  %v2861_v29 = vld [vmem:[%s4100_s26 + $0x230] ss:$8 sps:$4 sm:$0xff]  }
  0x3f   :  { %716 = vmatprep.subr.bf16.mxu0 %v2794_v30  ;;  %v2866_v30 = vld [vmem:[%s4100_s26 + $0x244] ss:$8 sps:$4 sm:$0xff]  }
  0x42   :  { %717 = vmatpush1.bf16.msra.mxu0 %v2796_v31  ;;  %v2864_v31 = vld [vmem:[%s4100_s26 + $0x240] ss:$8 sps:$4 sm:$0xff]  }
  0x43   :  { %718 = vmatprep.subr.bf16.mxu0 %v2797_v32  ;;  %v2869_v32 = vld [vmem:[%s4100_s26 + $0x254] ss:$8 sps:$4 sm:$0xff]  }
  0x46   :  { %719 = vmatpush1.bf16.msra.mxu0 %v2799_v33  ;;  %v2867_v33 = vld [vmem:[%s4100_s26 + $0x250] ss:$8 sps:$4 sm:$0xff]  }
  0x47   :  { %729 = vmatprep.subr.bf16.mxu0 %v2804_v34  ;;  %v2872_v34 = vld [vmem:[%s4100_s26 + $0x264] ss:$8 sps:$4 sm:$0xff]  }
  0x49   :  { %721 = vmatmul.mubr.bf16.vlgmr.msra.gmra.mrb[0].mxu0 %v2376_v36  ;;  %v2875_v36 = vld [vmem:[%s4100_s26 + $0x274] ss:$8 sps:$4 sm:$0xff]  }
  0x4a   :  { %730 = vmatpush1.bf16.msra.mxu0 %v2802_v37  ;;  %761 = vmatprep.mubr.bf16.mxu0 %v2379_v39  ;;  %v2916_v37 = vld [vmem:[%s4080_s4 + $0x68] sm:$0xff]  }
  0x4b   :  { %731 = vmatprep.subr.bf16.mxu0 %v2807_v38  ;;  %v2873_v38 = vld [vmem:[%s4100_s26 + $0x270] ss:$8 sps:$4 sm:$0xff]   ;;  %v2878_v39 = vld [vmem:[%s4100_s26 + $0x284] ss:$8 sps:$4 sm:$0xff]   ;;  %2661 = vmatprep.subr.bf16.mxu1 %v2916_v37 }
  0x4c   :  { %v2928_v37 = vld [vmem:[%s4083_s8 + $0x10] sm:$0xff]  }
  0x4e   :  { %732 = vmatpush1.bf16.msra.mxu0 %v2805_v42  ;;  %v2881_v42 = vld [vmem:[%s4100_s26 + $0x294] ss:$8 sps:$4 sm:$0xff]  }
  0x4f   :  { %733 = vmatprep.subr.bf16.mxu0 %v2810_v44  ;;  %v2884_v44 = vld [vmem:[%s4100_s26 + $0x2a4] ss:$8 sps:$4 sm:$0xff]  }
  0x52   :  { %734 = vmatpush1.bf16.msra.mxu0 %v2808_v49  ;;  %v2888_v49 = vld [vmem:[%s4100_s26 + $0x2c0] ss:$8 sps:$4 sm:$0xff]  }
  0x53   :  { %735 = vmatprep.subr.bf16.mxu0 %v2813_v50  ;;  %v2893_v50 = vld [vmem:[%s4100_s26 + $0x2d4] ss:$8 sps:$4 sm:$0xff]  }
  0x56   :  { %736 = vmatpush1.bf16.msra.mxu0 %v2811_v52  ;;  %v2896_v52 = vld [vmem:[%s4100_s26 + $0x2e4] ss:$8 sps:$4 sm:$0xff]  }
  0x57   :  { %737 = vmatprep.subr.bf16.mxu0 %v2816_v54  ;;  %v2901_v54 = vld [vmem:[%s4100_s26 + $0x2f4] ss:$8 sps:$4 sm:$0xff]  }
  0x5a   :  { %738 = vmatpush1.bf16.msra.mxu0 %v2814_v57  ;;  %v2917_v57 = vld [vmem:[%s4080_s4 + $0x28] sm:$0xff]  }
  0x5b   :  { %739 = vmatprep.subr.bf16.mxu0 %v2819_v58  ;;  %2662 = vmatpush3.bf16.msra.mxu1 %v2917_v57  ;;  %v2918_v58 = vld [vmem:[%s4080_s4 + $0x70] sm:$0xff]  }
  0x5c   :  { %2663 = vmatprep.subr.bf16.mxu1 %v2918_v58 }
  0x5e   :  { %740 = vmatpush1.bf16.msra.mxu0 %v2817_v61  ;;  %v2920_v61 = vld [vmem:[%s4080_s4 + $0x78] sm:$0xff]  }
  0x5f   :  { %741 = vmatprep.subr.bf16.mxu0 %v2822_v62  ;;  %2664 = vmatpush3.bf16.msra.mxu1 %v2919_v59 }
  0x60   :  { %2665 = vmatprep.subr.bf16.mxu1 %v2920_v61 }
  0x62   :  { %742 = vmatpush1.bf16.msra.mxu0 %v2820_v0 }
  0x63   :  { %743 = vmatprep.subr.bf16.mxu0 %v2825_v1  ;;  %2666 = vmatpush3.bf16.msra.mxu1 %v2921_v63 }
  0x66   :  { %744 = vmatpush1.bf16.msra.mxu0 %v2823_v2  ;;  %v3134_v2 = vmov 0.0  }
  0x67   :  { %745 = vmatprep.subr.bf16.mxu0 %v2828_v3  ;;  %2707 = vmatprep.subr.bf16.mxu1 %v3134_v2  ;;  %v160_v3 = vlaneseq }
  0x6a   :  { %746 = vmatpush1.bf16.msra.mxu0 %v2826_v4  ;;  %v3594_v4 = vshrl.u32 %v160_v3, 7 }
  0x6b   :  { %747 = vmatprep.subr.bf16.mxu0 %v2831_v5 }
  0x6c   :  { %v3597_v5 = vsub.s32 0, %v3594_v4 }
  0x6e   :  { %748 = vmatpush1.bf16.msra.mxu0 %v2829_v6  ;;  %v158_v6 = vld [vmem:[%s4082_s3] sm:$0x3] }
  0x6f   :  { %749 = vmatprep.subr.bf16.mxu0 %v2834_v7  ;;  %v3603_v7 = vsub.s32 1, %v3594_v4 }
  0x72   :  { %750 = vmatpush1.bf16.msra.mxu0 %v2832_v8  ;;  %v163_v8 = vrot.slane %v158_v6, %v3597_v5 }
  0x73   :  { %751 = vmatprep.subr.bf16.mxu0 %v2837_v9  ;;  %v167_v9 = vrot.slane %v158_v6, %v3603_v7 }
  0x76   :  { %752 = vmatpush1.bf16.msra.mxu0 %v2835_v10 }
  0x77   :  { %753 = vmatprep.subr.bf16.mxu0 %v2840_v11 }
  0x7a   :  { %754 = vmatpush1.bf16.msra.mxu0 %v2838_v12 }
  0x7b   :  { %755 = vmatprep.subr.bf16.mxu0 %v2843_v13 }
  0x7e   :  { %756 = vmatpush1.bf16.msra.mxu0 %v2841_v14 }
  0x7f   :  { %757 = vmatprep.subr.bf16.mxu0 %v2846_v15 }
  0x82   :  { %758 = vmatpush1.bf16.msra.mxu0 %v2844_v16 }
  0x83   :  { %759 = vmatprep.subr.bf16.mxu0 %v2849_v17 }
  0x86   :  { %760 = vmatpush1.bf16.msra.mxu0 %v2847_v18 }
  0x87   :  { %770 = vmatprep.subr.bf16.mxu0 %v2854_v19 }
  0x89   :  { %762 = vmatmul.mubr.bf16.vlgmr.msra.gmra.mrb[0].mxu0 %v2378_v21  ;;  %v2922_v21 = vld [vmem:[%s4081_s6] sm:$0xff]  }
  0x8a   :  { %771 = vmatpush1.bf16.msra.mxu0 %v2852_v22  ;;  %802 = vmatprep.mubr.bf16.mxu0 %v2381_v23  ;;  %v2923_v23 = vld [vmem:[%s4081_s6 + $0x8] sm:$0xff]  }
  0x8b   :  { %772 = vmatprep.subr.bf16.mxu0 %v2857_v24  ;;  %v2924_v24 = vld [vmem:[%s4081_s6 + $0x10] sm:$0xff]  }
  0x8e   :  { %773 = vmatpush1.bf16.msra.mxu0 %v2855_v25  ;;  %v2925_v25 = vld [vmem:[%s4081_s6 + $0x18] sm:$0xff]  }
  0x8f   :  { %774 = vmatprep.subr.bf16.mxu0 %v2860_v26 }
  0x92   :  { %775 = vmatpush1.bf16.msra.mxu0 %v2858_v27  ;;  %v2482_v27 = vld [vmem:[%s4084_s5] ss:$0 sm:$0xff] }
  0x93   :  { %776 = vmatprep.subr.bf16.mxu0 %v2863_v28 }
  0x96   :  { %777 = vmatpush1.bf16.msra.mxu0 %v2861_v29 }
  0x97   :  { %778 = vmatprep.subr.bf16.mxu0 %v2866_v30 }
  0x9a   :  { %779 = vmatpush1.bf16.msra.mxu0 %v2864_v31 }
  0x9b   :  { %780 = vmatprep.subr.bf16.mxu0 %v2869_v32 }
  0x9e   :  { %781 = vmatpush1.bf16.msra.mxu0 %v2867_v33 }
  0x9f   :  { %782 = vmatprep.subr.bf16.mxu0 %v2872_v34  ;;  %v2926_v34 = vld [vmem:[%s4083_s8] sm:$0xff]  }
  0xa2   :  { %783 = vmatpush1.bf16.msra.mxu0 %v2870_v35 }
  0xa3   :  { %784 = vmatprep.subr.bf16.mxu0 %v2875_v36  ;;  %v2927_v36 = vld [vmem:[%s4083_s8 + $0x8] sm:$0xff]  }
  0xa6   :  { %785 = vmatpush1.bf16.msra.mxu0 %v2873_v38  ;;  %v2929_v38 = vld [vmem:[%s4083_s8 + $0x18] sm:$0xff]  }
  0xa7   :  { %786 = vmatprep.subr.bf16.mxu0 %v2878_v39  ;;  %v2930_v39 = vld [vmem:[%s4085_s10] sm:$0x1f]  }
  0xaa   :  { %787 = vmatpush1.bf16.msra.mxu0 %v2876_v40  ;;  %v1222_v40 = vsel %vm1220_vm3, %v2930_v39, 0  ;;  %v3014_v39 = vld [vmem:[%s4090_s14 + $0x27c] ss:$28 sps:$4 sm:$0xff]  }
  0xab   :  { %788 = vmatprep.subr.bf16.mxu0 %v2881_v42 }
  0xae   :  { %789 = vmatpush1.bf16.msra.mxu0 %v2879_v43 }
  0xaf   :  { %790 = vmatprep.subr.bf16.mxu0 %v2884_v44 }
  0xb2   :  { %791 = vmatpush1.bf16.msra.mxu0 %v2882_v45 }
  0xb3   :  { %792 = vmatprep.subr.bf16.mxu0 %v2887_v46  ;;  %v2499_v46 = vld [vmem:[%s4086_s7] ss:$0 sm:$0xff] }
  0xb6   :  { %793 = vmatpush1.bf16.msra.mxu0 %v2885_v47 }
  0xb7   :  { %794 = vmatprep.subr.bf16.mxu0 %v2890_v48  ;;  %v2505_v48 = vld [vmem:[%s4088_s9] ss:$0 sm:$0xff] }
  0xba   :  { %795 = vmatpush1.bf16.msra.mxu0 %v2888_v49  ;;  %v1197_v49 = vld [vmem:[%s4087_s1] sm:$0xf] }
  0xbb   :  { %796 = vmatprep.subr.bf16.mxu0 %v2893_v50 }
  0xbe   :  { %797 = vmatpush1.bf16.msra.mxu0 %v2891_v51 }
  0xbf   :  { %798 = vmatprep.subr.bf16.mxu0 %v2896_v52 }
  0xc2   :  { %799 = vmatpush1.bf16.msra.mxu0 %v2894_v53  ;;  %v1198_v53 = vunpack.c.l.bf16 %v1197_v49 }
  0xc3   :  { %800 = vmatprep.subr.bf16.mxu0 %v2901_v54 }
  0xc6   :  { %801 = vmatpush1.bf16.msra.mxu0 %v2899_v55 }
  0xc9   :  { %803 = vmatmul.mubr.bf16.vlgmr.msra.gmra.mrb[0].mxu0 %v2380_v56 }
  0xed   :  { %v845_v60 = vpop.f32.mrb[0].mxu1 }
  0xee   :  { %v847_v62 = vpop.f32.mrb[1].mxu1 }
  0xef   :  { %v849_v0 = vpop.f32.mrb[2].mxu1 }
  0xf0   :  { %v850_v1 = vpop.f32.mrb[3].mxu1 }
 0x19c   :  { %v804_v10 = vpop.f32.mrb[0].mxu0 }
 0x19d   :  { %v2737_v11 = vadd.f32 %v804_v10, %v163_v8  ;;  %v806_v12 = vpop.f32.mrb[1].mxu0  ;;  %v2933_v10 = vld [vmem:[%s4089_s12 + $0x4] ss:$8 sps:$4 sm:$0xff]  }
 0x19e   :  { %v2739_v13 = vadd.f32 %v806_v12, %v167_v9  ;;  %v808_v14 = vpop.f32.mrb[2].mxu0  ;;  %v2931_v9 = vld [vmem:[%s4089_s12] ss:$8 sps:$4 sm:$0xff]   ;;  %v2939_v12 = vld [vmem:[%s4089_s12 + $0x24] ss:$8 sps:$4 sm:$0xff]  }
 0x19f   :  { %v2738_v15 = vadd.f32 %v2737_v11, %v845_v60  ;;  %v809_v16 = vpop.f32.mrb[3].mxu0  ;;  %v2936_v11 = vld [vmem:[%s4089_s12 + $0x14] ss:$8 sps:$4 sm:$0xff]  }
 0x1a0   :  { %v2740_v17 = vadd.f32 %v2739_v13, %v847_v62  ;;  %v2937_v13 = vld [vmem:[%s4089_s12 + $0x20] ss:$8 sps:$4 sm:$0xff]   ;;  %v2942_v14 = vld [vmem:[%s4089_s12 + $0x34] ss:$8 sps:$4 sm:$0xff]  }
 0x1a1   :  { %v852_v18 = vmax.f32 %v2738_v15, 0.0  ;;  %v2940_v15 = vld [vmem:[%s4089_s12 + $0x30] ss:$8 sps:$4 sm:$0xff]   ;;  %v2945_v16 = vld [vmem:[%s4090_s14 + $0x4] ss:$28 sps:$4 sm:$0xff]  }
 0x1a2   :  { %v853_v19 = vmax.f32 %v2740_v17, 0.0  ;;  %v2946_v17 = vld [vmem:[%s4090_s14 + $0x10] ss:$28 sps:$4 sm:$0xff]  }
 0x1a3   :  { %v854_v22 = vpack.c.bf16 %v852_v18, %v852_v18  ;;  %v2948_v18 = vld [vmem:[%s4090_s14 + $0x14] ss:$28 sps:$4 sm:$0xff]  }
 0x1a4   :  { %v855_v20 = vpack.c.bf16 %v853_v19, %v853_v19  ;;  %2197 = vmatprep.subr.bf16.mxu0 %v2948_v18  ;;  %v2952_v19 = vld [vmem:[%s4090_s14 + $0x48] ss:$28 sps:$4 sm:$0xff]   ;;  %v3015_v18 = vld [vmem:[%s4090_s14 + $0x2a0] ss:$28 sps:$4 sm:$0xff]  }
 0x1a5   :  { %2198 = vmatpush1.bf16.msra.mxu0 %v2946_v17  ;;  %v3017_v17 = vld [vmem:[%s4090_s14 + $0x2a4] ss:$28 sps:$4 sm:$0xff]  }
 0x1a6   :  { %1023 = vmatprep.mubr.bf16.mxu1 %v855_v20  ;;  %v2954_v20 = vld [vmem:[%s4090_s14 + $0x4c] ss:$28 sps:$4 sm:$0xff]  }
 0x1a7   :  { %1024 = vmatmul.mubr.bf16.vlgmr.msra.gmra.mrb[4].mxu1 %v854_v22  ;;  %2199 = vmatprep.subr.bf16.mxu0 %v2954_v20  ;;  %v2958_v22 = vld [vmem:[%s4090_s14 + $0x80] ss:$28 sps:$4 sm:$0xff]   ;;  %v3021_v20 = vld [vmem:[%s4090_s14 + $0x2d8] ss:$28 sps:$4 sm:$0xff]  }
 0x1a8   :  { %2708 = vmatpush3.bf16.msra.mxu1 %v2922_v21  ;;  %2715 = vmatprep.mubr.msk.bf16.mxu1 %vm3135_vm1, %v3134_v2  ;;  %v2960_v21 = vld [vmem:[%s4090_s14 + $0x84] ss:$28 sps:$4 sm:$0xff]  }
 0x1a9   :  { %2709 = vmatprep.subr.bf16.mxu1 %v3134_v2  ;;  %2200 = vmatpush1.bf16.msra.mxu0 %v2952_v19  ;;  %v3023_v19 = vld [vmem:[%s4090_s14 + $0x2dc] ss:$28 sps:$4 sm:$0xff]  }
 0x1aa   :  { %2201 = vmatprep.subr.bf16.mxu0 %v2960_v21  ;;  %v3029_v21 = vld [vmem:[%s4090_s14 + $0x314] ss:$28 sps:$4 sm:$0xff]  }
 0x1ac   :  { %2710 = vmatpush3.bf16.msra.mxu1 %v2923_v23  ;;  %v2966_v23 = vld [vmem:[%s4090_s14 + $0xbc] ss:$28 sps:$4 sm:$0xff]  }
 0x1ad   :  { %2711 = vmatprep.subr.bf16.mxu1 %v3134_v2  ;;  %2202 = vmatpush1.bf16.msra.mxu0 %v2958_v22  ;;  %v3027_v22 = vld [vmem:[%s4090_s14 + $0x310] ss:$28 sps:$4 sm:$0xff]  }
 0x1ae   :  { %2203 = vmatprep.subr.bf16.mxu0 %v2966_v23  ;;  %v3032_v23 = vld [vmem:[%s4090_s14 + $0x324] ss:$28 sps:$4 sm:$0xff]  }
 0x1b0   :  { %2712 = vmatpush3.bf16.msra.mxu1 %v2924_v24  ;;  %v2964_v24 = vld [vmem:[%s4090_s14 + $0xb8] ss:$28 sps:$4 sm:$0xff]  }
 0x1b1   :  { %2713 = vmatprep.subr.bf16.mxu1 %v3134_v2  ;;  %2204 = vmatpush1.bf16.msra.mxu0 %v2964_v24  ;;  %v3030_v24 = vld [vmem:[%s4090_s14 + $0x320] ss:$28 sps:$4 sm:$0xff]  }
 0x1b4   :  { %2714 = vmatpush3.bf16.msra.mxu1 %v2925_v25  ;;  %v2972_v25 = vld [vmem:[%s4090_s14 + $0xf4] ss:$28 sps:$4 sm:$0xff]  }
 0x1b5   :  { %2719 = vmatprep.subr.bf16.mxu1 %v3134_v2  ;;  %2205 = vmatprep.subr.bf16.mxu0 %v2972_v25  ;;  %v3035_v25 = vld [vmem:[%s4090_s14 + $0x34c] ss:$28 sps:$4 sm:$0xff]  }
 0x27a   :  { %v2667_v26 = vpop.f32.mrb[4].mxu1 }
 0x27b   :  { %v2668_v28 = vpop.f32.mrb[5].mxu1 }
 0x27c   :  { %v2669_v29 = vadd.f32 %v2668_v28, %v2667_v26  ;;  %v2670_v30 = vpop.f32.mrb[6].mxu1  ;;  %v2970_v26 = vld [vmem:[%s4090_s14 + $0xf0] ss:$28 sps:$4 sm:$0xff]   ;;  %v2976_v28 = vld [vmem:[%s4090_s14 + $0x128] ss:$28 sps:$4 sm:$0xff]  }
 0x27d   :  { %v2671_v31 = vpop.f32.mrb[7].mxu1  ;;  %2206 = vmatpush1.bf16.msra.mxu0 %v2970_v26  ;;  %v2982_v30 = vld [vmem:[%s4090_s14 + $0x160] ss:$28 sps:$4 sm:$0xff]   ;;  %v3033_v26 = vld [vmem:[%s4090_s14 + $0x348] ss:$28 sps:$4 sm:$0xff]  }
 0x27e   :  { %v1026_v32 = vadd.f32 %v2669_v29, %v2482_v27  ;;  %v2978_v27 = vld [vmem:[%s4090_s14 + $0x12c] ss:$28 sps:$4 sm:$0xff]   ;;  %v2984_v29 = vld [vmem:[%s4090_s14 + $0x164] ss:$28 sps:$4 sm:$0xff]   ;;  %v2990_v31 = vld [vmem:[%s4090_s14 + $0x19c] ss:$28 sps:$4 sm:$0xff]  }
 0x27f   :  { %2207 = vmatprep.subr.bf16.mxu0 %v2978_v27  ;;  %v3038_v27 = vld [vmem:[%s4090_s14 + $0x35c] ss:$28 sps:$4 sm:$0xff]  }
 0x280   :  { %v1031_v33 = vmax.f32 %v1026_v32, 0.0  ;;  %v2988_v32 = vld [vmem:[%s4090_s14 + $0x198] ss:$28 sps:$4 sm:$0xff]  }
 0x281   :  { %2208 = vmatpush1.bf16.msra.mxu0 %v2976_v28  ;;  %v3036_v28 = vld [vmem:[%s4090_s14 + $0x358] ss:$28 sps:$4 sm:$0xff]  }
 0x282   :  { %v1032_v35 = vpack.c.bf16 %v1031_v33, %v1031_v33  ;;  %2209 = vmatprep.subr.bf16.mxu0 %v2984_v29  ;;  %v2996_v33 = vld [vmem:[%s4090_s14 + $0x1d4] ss:$28 sps:$4 sm:$0xff]   ;;  %v3041_v29 = vld [vmem:[%s4090_s14 + $0xc] ss:$28 sps:$4 sm:$0xff]  }
 0x284   :  { %2716 = vmatmul.mubr.msk.bf16.vlgmr.msra.gmra.mrb[8].mxu1 %vm1072_vm2, %v1032_v35 }
 0x285   :  { %2720 = vmatpush3.bf16.msra.mxu1 %v2926_v34  ;;  %2727 = vmatprep.mubr.msk.bf16.mxu1 %vm3135_vm1, %v3134_v2  ;;  %v2994_v34 = vld [vmem:[%s4090_s14 + $0x1d0] ss:$28 sps:$4 sm:$0xff]  }
 0x286   :  { %2721 = vmatprep.subr.bf16.mxu1 %v3134_v2  ;;  %2210 = vmatpush1.bf16.msra.mxu0 %v2982_v30  ;;  %v1274_v30 = vld [vmem:[%s4093_s13] sm:$0x3] }
 0x287   :  { %2211 = vmatprep.subr.bf16.mxu0 %v2990_v31  ;;  %v1279_v31 = vrot.slane %v1274_v30, %v3597_v5 }
 0x289   :  { %2722 = vmatpush3.bf16.msra.mxu1 %v2927_v36  ;;  %v3000_v36 = vld [vmem:[%s4090_s14 + $0x208] ss:$28 sps:$4 sm:$0xff]  }
 0x28a   :  { %2723 = vmatprep.subr.bf16.mxu1 %v3134_v2  ;;  %2212 = vmatpush1.bf16.msra.mxu0 %v2988_v32  ;;  %v1283_v32 = vrot.slane %v1274_v30, %v3603_v7  ;;  %v4051_v30 = vld [vmem:[%s4094_s15] sm:$0x7f] }
 0x28b   :  { %2213 = vmatprep.subr.bf16.mxu0 %v2996_v33 }
 0x28d   :  { %2724 = vmatpush3.bf16.msra.mxu1 %v2928_v37  ;;  %v3008_v37 = vld [vmem:[%s4090_s14 + $0x244] ss:$28 sps:$4 sm:$0xff]  }
 0x28e   :  { %2725 = vmatprep.subr.bf16.mxu1 %v3134_v2  ;;  %2214 = vmatpush1.bf16.msra.mxu0 %v2994_v34 }
 0x291   :  { %2726 = vmatpush3.bf16.msra.mxu1 %v2929_v38  ;;  %v3006_v38 = vld [vmem:[%s4090_s14 + $0x240] ss:$28 sps:$4 sm:$0xff]  }
 0x292   :  { %2731 = vmatprep.subr.bf16.mxu1 %v3134_v2 }
 0x294   :  { %2728 = vmatmul.mubr.msk.bf16.vlgmr.msra.gmra.mrb[12].mxu1 %vm1072_vm2, %v1032_v35  ;;  %v3002_v35 = vld [vmem:[%s4090_s14 + $0x20c] ss:$28 sps:$4 sm:$0xff]  }
 0x295   :  { %2733 = vmatprep.mubr.msk.bf16.mxu1 %vm3135_vm1, %v3134_v2  ;;  %2732 = vmatpush3.bf16.msra.mxu1 %v1222_v40  ;;  %v3012_v40 = vld [vmem:[%s4090_s14 + $0x278] ss:$28 sps:$4 sm:$0xff]  }
 0x296   :  { %1329 = vmatprep.subr.bf16.mxu1 %v2933_v10  ;;  %2215 = vmatprep.subr.bf16.mxu0 %v3002_v35  ;;  %v2993_v10 = vld [vmem:[%s4090_s14 + $0x1c4] ss:$28 sps:$4 sm:$0xff]  }
 0x297   :  { %2216 = vmatpush1.bf16.msra.mxu0 %v3000_v36 }
 0x298   :  { %2217 = vmatprep.subr.bf16.mxu0 %v3008_v37 }
 0x29b   :  { %2218 = vmatpush1.bf16.msra.mxu0 %v3006_v38 }
 0x29c   :  { %2219 = vmatprep.subr.bf16.mxu0 %v3014_v39 }
 0x29f   :  { %2220 = vmatpush1.bf16.msra.mxu0 %v3012_v40 }
 0x357   :  { %v1110_v42 = vpop.f32.mrb[8].mxu1 }
 0x358   :  { %v2717_v43 = vpop.f32.mrb[9].mxu1  ;;  %v1111_v47 = vadd.f32 %v2499_v46, %v1110_v42  ;;  %v3020_v42 = vld [vmem:[%s4090_s14 + $0x2b4] ss:$28 sps:$4 sm:$0xff]  }
 0x359   :  { %v1113_v44 = vpop.f32.mrb[10].mxu1  ;;  %v3018_v43 = vld [vmem:[%s4090_s14 + $0x2b0] ss:$28 sps:$4 sm:$0xff]   ;;  %2221 = vmatprep.subr.bf16.mxu0 %v3020_v42 }
 0x35a   :  { %v2718_v45 = vpop.f32.mrb[11].mxu1  ;;  %v1116_v51 = vmax.f32 %v1111_v47, 0.0  ;;  %v3026_v44 = vld [vmem:[%s4090_s14 + $0x2ec] ss:$28 sps:$4 sm:$0xff]   ;;  %2222 = vmatpush1.bf16.msra.mxu0 %v3018_v43 }
 0x35b   :  { %v3024_v45 = vld [vmem:[%s4090_s14 + $0x2e8] ss:$28 sps:$4 sm:$0xff]   ;;  %2223 = vmatprep.subr.bf16.mxu0 %v3026_v44 }
 0x35c   :  { %v2355_v58 = vmul.f32 %v1116_v51, %v1116_v51  ;;  %v3039_v43 = vld [vmem:[%s4090_s14 + $0x8] ss:$28 sps:$4 sm:$0xff]  }
 0x35e   :  { %2224 = vmatpush1.bf16.msra.mxu0 %v3024_v45  ;;  %v3044_v45 = vld [vmem:[%s4090_s14 + $0x44] ss:$28 sps:$4 sm:$0xff]  }
 0x35f   :  { %2225 = vmatprep.subr.bf16.mxu0 %v3032_v23  ;;  %v3097_v23 = vld [vmem:[%s4090_s14 + $0x2f0] ss:$28 sps:$4 sm:$0xff]  }
 0x362   :  { %2226 = vmatpush1.bf16.msra.mxu0 %v3030_v24  ;;  %v3098_v24 = vld [vmem:[%s4090_s14 + $0x130] ss:$28 sps:$4 sm:$0xff]  }
 0x363   :  { %2227 = vmatprep.subr.bf16.mxu0 %v3038_v27  ;;  %v3101_v27 = vld [vmem:[%s4090_s14 + $0x360] ss:$28 sps:$4 sm:$0xff]  }
 0x366   :  { %2228 = vmatpush1.bf16.msra.mxu0 %v3036_v28  ;;  %v3102_v28 = vld [vmem:[%s4090_s14 + $0x1a0] ss:$28 sps:$4 sm:$0xff]  }
 0x367   :  { %v1190_v50 = vpop.f32.mrb[12].mxu1 }
 0x368   :  { %v1191_v52 = vadd.f32 %v2505_v48, %v1190_v50  ;;  %v2729_v54 = vpop.f32.mrb[13].mxu1  ;;  %v2511_v48 = vld [vmem:[%s4092_s11] ss:$0 sm:$0xff] }
 0x369   :  { %v1193_v55 = vpop.f32.mrb[14].mxu1 }
 0x36a   :  { %v1196_v56 = vmax.f32 %v1191_v52, 0.0  ;;  %v2730_v57 = vpop.f32.mrb[15].mxu1  ;;  %v2943_v55 = vld [vmem:[%s4090_s14] ss:$28 sps:$4 sm:$0xff]  }
 0x36b   :  { %v2951_v57 = vld [vmem:[%s4090_s14 + $0x3c] ss:$28 sps:$4 sm:$0xff]  }
 0x36c   :  { %v1199_v59 = vmul.f32 %v1198_v53, %v1196_v56  ;;  %v2354_v60 = vmul.f32 %v1196_v56, %v1196_v56 }
 0x36e   :  { %v1200_v61 = vadd.f32 %v1199_v59, %v1116_v51  ;;  %v2357_v62 = vadd.f32 1e-08, %v2354_v60  ;;  %v2356_v63 = vadd.f32 %v2355_v58, %v2354_v60  ;;  %v2949_v58 = vld [vmem:[%s4090_s14 + $0x38] ss:$28 sps:$4 sm:$0xff]   ;;  %v2955_v60 = vld [vmem:[%s4090_s14 + $0x70] ss:$28 sps:$4 sm:$0xff]  }
 0x36f   :  { %v2957_v59 = vld [vmem:[%s4090_s14 + $0x74] ss:$28 sps:$4 sm:$0xff]  }
 0x370   :  { %v1201_v0 = vpack.c.bf16 %v1200_v61, %v1200_v61  ;;  %3103 = vlog2.f32 %v2357_v62  ;;  %v2963_v61 = vld [vmem:[%s4090_s14 + $0xac] ss:$28 sps:$4 sm:$0xff]  }
 0x371   :  { %v2961_v62 = vld [vmem:[%s4090_s14 + $0xa8] ss:$28 sps:$4 sm:$0xff]  }
 0x372   :  { %2734 = vmatmul.mubr.msk.bf16.vlgmr.msra.gmra.mrb[16].mxu1 %vm1216_vm4, %v1201_v0  ;;  %v2967_v0 = vld [vmem:[%s4090_s14 + $0xe0] ss:$28 sps:$4 sm:$0xff]  }
 0x373   :  { %1361 = vmatprep.mubr.bf16.mxu1 %v3133_v41  ;;  %1330 = vmatpush1.bf16.msra.mxu1 %v2931_v9  ;;  %v2934_v41 = vld [vmem:[%s4089_s12 + $0x10] ss:$8 sps:$4 sm:$0xff]   ;;  %v2985_v9 = vld [vmem:[%s4090_s14 + $0x188] ss:$28 sps:$4 sm:$0xff]  }
 0x374   :  { %1331 = vmatprep.subr.bf16.mxu1 %v2936_v11  ;;  %v2991_v11 = vld [vmem:[%s4090_s14 + $0x1c0] ss:$28 sps:$4 sm:$0xff]  }
 0x377   :  { %1332 = vmatpush1.bf16.msra.mxu1 %v2934_v41  ;;  %v2999_v41 = vld [vmem:[%s4090_s14 + $0x1fc] ss:$28 sps:$4 sm:$0xff]  }
 0x378   :  { %1333 = vmatprep.subr.bf16.mxu1 %v2939_v12  ;;  %v2997_v12 = vld [vmem:[%s4090_s14 + $0x1f8] ss:$28 sps:$4 sm:$0xff]  }
 0x37a   :  { %v3104_v1 = vpop.eup %3103 }
 0x37b   :  { %v2359_v2 = vmul.f32 0.6931472, %v3104_v1  ;;  %1334 = vmatpush1.bf16.msra.mxu1 %v2937_v13  ;;  %v2975_v1 = vld [vmem:[%s4090_s14 + $0x11c] ss:$28 sps:$4 sm:$0xff]   ;;  %v3005_v13 = vld [vmem:[%s4090_s14 + $0x234] ss:$28 sps:$4 sm:$0xff]  }
 0x37c   :  { %1335 = vmatprep.subr.bf16.mxu1 %v2942_v14  ;;  %v3003_v14 = vld [vmem:[%s4090_s14 + $0x230] ss:$28 sps:$4 sm:$0xff]  }
 0x37d   :  { %v2360_v3 = vsub.f32 %v2356_v63, %v2359_v2  ;;  %v2969_v63 = vld [vmem:[%s4090_s14 + $0xe4] ss:$28 sps:$4 sm:$0xff]   ;;  %v2973_v2 = vld [vmem:[%s4090_s14 + $0x118] ss:$28 sps:$4 sm:$0xff]  }
 0x37f   :  { %v2646_v6 = vadd.f32 -1.0, %v2360_v3  ;;  %1336 = vmatpush1.bf16.msra.mxu1 %v2940_v15  ;;  %v2981_v3 = vld [vmem:[%s4090_s14 + $0x154] ss:$28 sps:$4 sm:$0xff]   ;;  %v3011_v15 = vld [vmem:[%s4090_s14 + $0x26c] ss:$28 sps:$4 sm:$0xff]  }
 0x380   :  { %2115 = vmatprep.subr.bf16.mxu1 %v2945_v16  ;;  %v3009_v16 = vld [vmem:[%s4090_s14 + $0x268] ss:$28 sps:$4 sm:$0xff]  }
 0x381   :  { %v2362_v8 = vsel %vm1216_vm4, %v2646_v6, 0.0  ;;  %v2979_v6 = vld [vmem:[%s4090_s14 + $0x150] ss:$28 sps:$4 sm:$0xff]  }
 0x382   :  { %2363 = vadd.xlane.f32.xlu0 %v2362_v8  ;;  %v2987_v8 = vld [vmem:[%s4090_s14 + $0x18c] ss:$28 sps:$4 sm:$0xff]  }
 0x40f   :  { %v2364_v46 = vpop.xlane.xlu0 %2363 }
 0x410   :  { %v2365_v47 = vmul.f32 0.5, %v2364_v46  ;;  %v3042_v46 = vld [vmem:[%s4090_s14 + $0x40] ss:$28 sps:$4 sm:$0xff]  }
 0x412   :  { %2367 = vst.msk [vmem:[%s4091_s17] sm:$0xff] %vm2366_vm5, %v2365_v47  ;;  %v3047_v47 = vld [vmem:[%s4090_s14 + $0x7c] ss:$28 sps:$4 sm:$0xff]  }
 0x445   :  { %v1258_v49 = vpop.f32.mrb[16].mxu1 }
 0x446   :  { %v1259_v50 = vadd.f32 %v2511_v48, %v1258_v49  ;;  %v2735_v51 = vpop.f32.mrb[17].mxu1  ;;  %v3045_v48 = vld [vmem:[%s4090_s14 + $0x78] ss:$28 sps:$4 sm:$0xff]  }
 0x447   :  { %v1261_v52 = vpop.f32.mrb[18].mxu1  ;;  %v3050_v49 = vld [vmem:[%s4090_s14 + $0xb4] ss:$28 sps:$4 sm:$0xff]   ;;  %v3053_v51 = vld [vmem:[%s4090_s14 + $0xec] ss:$28 sps:$4 sm:$0xff]  }
 0x448   :  { %v1264_v53 = vmax.f32 %v1259_v50, 0.0  ;;  %v2736_v54 = vpop.f32.mrb[19].mxu1  ;;  %v3048_v50 = vld [vmem:[%s4090_s14 + $0xb0] ss:$28 sps:$4 sm:$0xff]   ;;  %v3051_v52 = vld [vmem:[%s4090_s14 + $0xe8] ss:$28 sps:$4 sm:$0xff]  }
 0x449   :  { %v3054_v54 = vld [vmem:[%s4090_s14 + $0x120] ss:$28 sps:$4 sm:$0xff]  }
 0x44a   :  { %v1265_v56 = vpack.c.bf16 %v1264_v53, %v1264_v53  ;;  %v3056_v53 = vld [vmem:[%s4090_s14 + $0x124] ss:$28 sps:$4 sm:$0xff]  }
 0x44c   :  { %2522 = vmatmul.mubr.msk.bf16.vlgmr.msra.gmra.mrb[20].mxu1 %vm1072_vm2, %v1265_v56  ;;  %v3057_v56 = vld [vmem:[%s4090_s14 + $0x158] ss:$28 sps:$4 sm:$0xff]  }
 0x44d   :  { %2116 = vmatpush1.bf16.msra.mxu1 %v2943_v55  ;;  %v3059_v55 = vld [vmem:[%s4090_s14 + $0x15c] ss:$28 sps:$4 sm:$0xff]  }
 0x44e   :  { %2117 = vmatprep.subr.bf16.mxu1 %v2951_v57  ;;  %v3062_v57 = vld [vmem:[%s4090_s14 + $0x194] ss:$28 sps:$4 sm:$0xff]  }
 0x451   :  { %2118 = vmatpush1.bf16.msra.mxu1 %v2949_v58  ;;  %v3060_v58 = vld [vmem:[%s4090_s14 + $0x190] ss:$28 sps:$4 sm:$0xff]  }
 0x452   :  { %2119 = vmatprep.subr.bf16.mxu1 %v2957_v59  ;;  %v3065_v59 = vld [vmem:[%s4090_s14 + $0x1cc] ss:$28 sps:$4 sm:$0xff]  }
 0x455   :  { %2120 = vmatpush1.bf16.msra.mxu1 %v2955_v60  ;;  %v3063_v60 = vld [vmem:[%s4090_s14 + $0x1c8] ss:$28 sps:$4 sm:$0xff]  }
 0x456   :  { %2121 = vmatprep.subr.bf16.mxu1 %v2963_v61  ;;  %v3068_v61 = vld [vmem:[%s4090_s14 + $0x204] ss:$28 sps:$4 sm:$0xff]  }
 0x459   :  { %2122 = vmatpush1.bf16.msra.mxu1 %v2961_v62  ;;  %v3066_v62 = vld [vmem:[%s4090_s14 + $0x200] ss:$28 sps:$4 sm:$0xff]  }
 0x45a   :  { %2123 = vmatprep.subr.bf16.mxu1 %v2969_v63  ;;  %v3071_v63 = vld [vmem:[%s4090_s14 + $0x23c] ss:$28 sps:$4 sm:$0xff]  }
 0x45d   :  { %2124 = vmatpush1.bf16.msra.mxu1 %v2967_v0  ;;  %v3069_v0 = vld [vmem:[%s4090_s14 + $0x238] ss:$28 sps:$4 sm:$0xff]  }
 0x45e   :  { %2125 = vmatprep.subr.bf16.mxu1 %v2975_v1  ;;  %v3074_v1 = vld [vmem:[%s4090_s14 + $0x274] ss:$28 sps:$4 sm:$0xff]  }
 0x461   :  { %2126 = vmatpush1.bf16.msra.mxu1 %v2973_v2  ;;  %v3072_v2 = vld [vmem:[%s4090_s14 + $0x270] ss:$28 sps:$4 sm:$0xff]  }
 0x462   :  { %2127 = vmatprep.subr.bf16.mxu1 %v2981_v3  ;;  %v3077_v3 = vld [vmem:[%s4090_s14 + $0x2ac] ss:$28 sps:$4 sm:$0xff]  }
 0x465   :  { %2128 = vmatpush1.bf16.msra.mxu1 %v2979_v6  ;;  %v3075_v6 = vld [vmem:[%s4090_s14 + $0x2a8] ss:$28 sps:$4 sm:$0xff]  }
 0x466   :  { %2129 = vmatprep.subr.bf16.mxu1 %v2987_v8  ;;  %v3080_v8 = vld [vmem:[%s4090_s14 + $0x2e4] ss:$28 sps:$4 sm:$0xff]  }
 0x469   :  { %2130 = vmatpush1.bf16.msra.mxu1 %v2985_v9  ;;  %v3078_v9 = vld [vmem:[%s4090_s14 + $0x2e0] ss:$28 sps:$4 sm:$0xff]  }
 0x46a   :  { %2131 = vmatprep.subr.bf16.mxu1 %v2993_v10  ;;  %v3083_v10 = vld [vmem:[%s4090_s14 + $0x31c] ss:$28 sps:$4 sm:$0xff]  }
 0x46d   :  { %2132 = vmatpush1.bf16.msra.mxu1 %v2991_v11  ;;  %v3081_v11 = vld [vmem:[%s4090_s14 + $0x318] ss:$28 sps:$4 sm:$0xff]  }
 0x46e   :  { %2133 = vmatprep.subr.bf16.mxu1 %v2999_v41  ;;  %v3086_v41 = vld [vmem:[%s4090_s14 + $0x354] ss:$28 sps:$4 sm:$0xff]  }
 0x471   :  { %2134 = vmatpush1.bf16.msra.mxu1 %v2997_v12  ;;  %v3084_v12 = vld [vmem:[%s4090_s14 + $0x350] ss:$28 sps:$4 sm:$0xff]  }
 0x472   :  { %2135 = vmatprep.subr.bf16.mxu1 %v3005_v13  ;;  %v3087_v13 = vld [vmem:[%s4090_s14 + $0x1d8] ss:$28 sps:$4 sm:$0xff]  }
 0x475   :  { %2136 = vmatpush1.bf16.msra.mxu1 %v3003_v14  ;;  %v3088_v14 = vld [vmem:[%s4090_s14 + $0x18] ss:$28 sps:$4 sm:$0xff]  }
 0x476   :  { %2137 = vmatprep.subr.bf16.mxu1 %v3011_v15  ;;  %v3089_v15 = vld [vmem:[%s4090_s14 + $0x210] ss:$28 sps:$4 sm:$0xff]  }
 0x479   :  { %2138 = vmatpush1.bf16.msra.mxu1 %v3009_v16  ;;  %v3090_v16 = vld [vmem:[%s4090_s14 + $0x50] ss:$28 sps:$4 sm:$0xff]  }
 0x47a   :  { %2139 = vmatprep.subr.bf16.mxu1 %v3017_v17  ;;  %v3091_v17 = vld [vmem:[%s4090_s14 + $0x248] ss:$28 sps:$4 sm:$0xff]  }
 0x47d   :  { %2140 = vmatpush1.bf16.msra.mxu1 %v3015_v18  ;;  %v3092_v18 = vld [vmem:[%s4090_s14 + $0x88] ss:$28 sps:$4 sm:$0xff]  }
 0x47e   :  { %2141 = vmatprep.subr.bf16.mxu1 %v3023_v19  ;;  %v3093_v19 = vld [vmem:[%s4090_s14 + $0x280] ss:$28 sps:$4 sm:$0xff]  }
 0x481   :  { %2142 = vmatpush1.bf16.msra.mxu1 %v3021_v20  ;;  %v3094_v20 = vld [vmem:[%s4090_s14 + $0xc0] ss:$28 sps:$4 sm:$0xff]  }
 0x482   :  { %2143 = vmatprep.subr.bf16.mxu1 %v3029_v21  ;;  %v3095_v21 = vld [vmem:[%s4090_s14 + $0x2b8] ss:$28 sps:$4 sm:$0xff]  }
 0x485   :  { %2144 = vmatpush1.bf16.msra.mxu1 %v3027_v22  ;;  %v3096_v22 = vld [vmem:[%s4090_s14 + $0xf8] ss:$28 sps:$4 sm:$0xff]  }
 0x486   :  { %2145 = vmatprep.subr.bf16.mxu1 %v3035_v25  ;;  %v3099_v25 = vld [vmem:[%s4090_s14 + $0x328] ss:$28 sps:$4 sm:$0xff]  }
 0x489   :  { %2146 = vmatpush1.bf16.msra.mxu1 %v3033_v26  ;;  %v3100_v26 = vld [vmem:[%s4090_s14 + $0x168] ss:$28 sps:$4 sm:$0xff]  }
 0x48a   :  { %2156 = vmatprep.subr.bf16.mxu1 %v3041_v29  ;;  %v1522_v29 = vsub.s32 4, %v3594_v4 }
 0x51f   :  { %v1363_v33 = vpop.f32.mrb[20].mxu1 }
 0x520   :  { %v1364_v34 = vadd.f32 %v1363_v33, %v1279_v31  ;;  %v1365_v35 = vpop.f32.mrb[21].mxu1  ;;  %v1526_v31 = vsub.s32 5, %v3594_v4  ;;  %v1523_v33 = vrot.slane %v4051_v30, %v1522_v29 }
 0x521   :  { %v1366_v36 = vadd.f32 %v1365_v35, %v1283_v32  ;;  %v1367_v37 = vpop.f32.mrb[22].mxu1  ;;  %v1507_v32 = vrot.slane %v4051_v30, %v3597_v5 }
 0x522   :  { %v1370_v38 = vmax.f32 %v1364_v34, 0.0  ;;  %v1368_v39 = vpop.f32.mrb[23].mxu1  ;;  %v1511_v34 = vrot.slane %v4051_v30, %v3603_v7  ;;  %v1527_v35 = vrot.slane %v4051_v30, %v1526_v31 }
 0x523   :  { %v1371_v40 = vmax.f32 %v1366_v36, 0.0 }
 0x524   :  { %v3899_v44 = vpack.c.bf16 %v1370_v38, %v1370_v38 }
 0x525   :  { %v3894_v42 = vpack.c.bf16 %v1371_v40, %v1371_v40 }
 0x527   :  { %2147 = vmatprep.mubr.bf16.mxu1 %v3894_v42  ;;  %2229 = vmatprep.mubr.bf16.mxu0 %v3894_v42 }
 0x528   :  { %2148 = vmatmul.mubr.bf16.vlgmr.msra.gmra.mrb[24].mxu1 %v3899_v44  ;;  %2230 = vmatmul.mubr.bf16.vlgmr.msra.gmra.mrb[4].mxu0 %v3899_v44 }
 0x529   :  { %2157 = vmatpush1.bf16.msra.mxu1 %v3039_v43  ;;  %2188 = vmatprep.mubr.bf16.mxu1 %v3894_v42 }
 0x52a   :  { %2158 = vmatprep.subr.bf16.mxu1 %v3044_v45 }
 0x52d   :  { %2159 = vmatpush1.bf16.msra.mxu1 %v3042_v46 }
 0x52e   :  { %2160 = vmatprep.subr.bf16.mxu1 %v3047_v47 }
 0x531   :  { %2161 = vmatpush1.bf16.msra.mxu1 %v3045_v48 }
 0x532   :  { %2162 = vmatprep.subr.bf16.mxu1 %v3050_v49 }
 0x535   :  { %2163 = vmatpush1.bf16.msra.mxu1 %v3048_v50 }
 0x536   :  { %2164 = vmatprep.subr.bf16.mxu1 %v3053_v51 }
 0x539   :  { %2165 = vmatpush1.bf16.msra.mxu1 %v3051_v52 }
 0x53a   :  { %2166 = vmatprep.subr.bf16.mxu1 %v3056_v53 }
 0x53d   :  { %2167 = vmatpush1.bf16.msra.mxu1 %v3054_v54 }
 0x53e   :  { %2168 = vmatprep.subr.bf16.mxu1 %v3059_v55 }
 0x541   :  { %2169 = vmatpush1.bf16.msra.mxu1 %v3057_v56 }
 0x542   :  { %2170 = vmatprep.subr.bf16.mxu1 %v3062_v57 }
 0x545   :  { %2171 = vmatpush1.bf16.msra.mxu1 %v3060_v58 }
 0x546   :  { %2172 = vmatprep.subr.bf16.mxu1 %v3065_v59 }
 0x549   :  { %2173 = vmatpush1.bf16.msra.mxu1 %v3063_v60 }
 0x54a   :  { %2174 = vmatprep.subr.bf16.mxu1 %v3068_v61 }
 0x54d   :  { %2175 = vmatpush1.bf16.msra.mxu1 %v3066_v62 }
 0x54e   :  { %2176 = vmatprep.subr.bf16.mxu1 %v3071_v63 }
 0x551   :  { %2177 = vmatpush1.bf16.msra.mxu1 %v3069_v0 }
 0x552   :  { %2178 = vmatprep.subr.bf16.mxu1 %v3074_v1  ;;  %v1514_v1 = vsub.s32 2, %v3594_v4 }
 0x555   :  { %2179 = vmatpush1.bf16.msra.mxu1 %v3072_v2  ;;  %v1518_v2 = vsub.s32 3, %v3594_v4 }
 0x556   :  { %2180 = vmatprep.subr.bf16.mxu1 %v3077_v3  ;;  %v1515_v3 = vrot.slane %v4051_v30, %v1514_v1 }
 0x559   :  { %2181 = vmatpush1.bf16.msra.mxu1 %v3075_v6  ;;  %v1519_v6 = vrot.slane %v4051_v30, %v1518_v2 }
 0x55a   :  { %2182 = vmatprep.subr.bf16.mxu1 %v3080_v8 }
 0x55d   :  { %2183 = vmatpush1.bf16.msra.mxu1 %v3078_v9 }
 0x55e   :  { %2184 = vmatprep.subr.bf16.mxu1 %v3083_v10 }
 0x561   :  { %2185 = vmatpush1.bf16.msra.mxu1 %v3081_v11 }
 0x562   :  { %2186 = vmatprep.subr.bf16.mxu1 %v3086_v41 }
 0x565   :  { %2187 = vmatpush1.bf16.msra.mxu1 %v3084_v12 }
 0x566   :  { %2685 = vmatprep.subr.bf16.mxu1 %v3087_v13 }
 0x568   :  { %2189 = vmatmul.mubr.bf16.vlgmr.msra.gmra.mrb[28].mxu1 %v3899_v44 }
 0x569   :  { %2686 = vmatpush3.bf16.msra.mxu1 %v3088_v14  ;;  %2270 = vmatprep.mubr.bf16.mxu1 %v3894_v42 }
 0x56a   :  { %2687 = vmatprep.subr.bf16.mxu1 %v3089_v15 }
 0x56d   :  { %2688 = vmatpush3.bf16.msra.mxu1 %v3090_v16 }
 0x56e   :  { %2689 = vmatprep.subr.bf16.mxu1 %v3091_v17 }
 0x571   :  { %2690 = vmatpush3.bf16.msra.mxu1 %v3092_v18 }
 0x572   :  { %2691 = vmatprep.subr.bf16.mxu1 %v3093_v19 }
 0x575   :  { %2692 = vmatpush3.bf16.msra.mxu1 %v3094_v20  ;;  %v1530_v20 = vsub.s32 6, %v3594_v4 }
 0x576   :  { %2693 = vmatprep.subr.bf16.mxu1 %v3095_v21 }
 0x579   :  { %2694 = vmatpush3.bf16.msra.mxu1 %v3096_v22 }
 0x57a   :  { %2695 = vmatprep.subr.bf16.mxu1 %v3097_v23 }
 0x57d   :  { %2696 = vmatpush3.bf16.msra.mxu1 %v3098_v24  ;;  %v1531_v24 = vrot.slane %v4051_v30, %v1530_v20 }
 0x57e   :  { %2697 = vmatprep.subr.bf16.mxu1 %v3099_v25 }
 0x581   :  { %2698 = vmatpush3.bf16.msra.mxu1 %v3100_v26 }
 0x582   :  { %2699 = vmatprep.subr.bf16.mxu1 %v3101_v27 }
 0x585   :  { %2700 = vmatpush3.bf16.msra.mxu1 %v3102_v28 }
 0x588   :  { %2271 = vmatmul.mubr.bf16.vlgmr.msra.gmra.mrb[32].mxu1 %v3899_v44 }
 0x5fb   :  { %v2149_v36 = vpop.f32.mrb[24].mxu1  ;;  %v2231_v37 = vpop.f32.mrb[4].mxu0 }
 0x5fc   :  { %v2150_v38 = vadd.f32 %v2149_v36, %v1507_v32  ;;  %v2232_v39 = vadd.f32 %v2231_v37, %v1523_v33  ;;  %v2151_v40 = vpop.f32.mrb[25].mxu1  ;;  %v2233_v42 = vpop.f32.mrb[5].mxu0 }
 0x5fd   :  { %v2152_v43 = vadd.f32 %v2151_v40, %v1511_v34  ;;  %v2234_v44 = vadd.f32 %v2233_v42, %v1527_v35  ;;  %v2153_v45 = vpop.f32.mrb[26].mxu1  ;;  %v2235_v46 = vpop.f32.mrb[6].mxu0 }
 0x5fe   :  { %v2635_v47 = vmul.f32 -1.442695, %v2150_v38  ;;  %v2639_v48 = vmul.f32 -1.442695, %v2232_v39  ;;  %v2154_v5 = vpop.f32.mrb[27].mxu1  ;;  %v2236_v49 = vpop.f32.mrb[7].mxu0 }
 0x5ff   :  { %v2636_v50 = vmul.f32 -1.442695, %v2152_v43  ;;  %v2640_v51 = vmul.f32 -1.442695, %v2234_v44 }
 0x600   :  { %3105 = vpow2.f32 %v2635_v47 }
 0x601   :  { %3107 = vpow2.f32 %v2639_v48 }
 0x602   :  { %3109 = vpow2.f32 %v2636_v50 }
 0x603   :  { %3111 = vpow2.f32 %v2640_v51 }
 0x60a   :  { %v3106_v7 = vpop.eup %3105 }
 0x60b   :  { %v3108_v52 = vpop.eup %3107  ;;  %v2299_v53 = vadd.f32 1.0, %v3106_v7 }
 0x60c   :  { %v3110_v54 = vpop.eup %3109  ;;  %v2303_v55 = vadd.f32 1.0, %v3108_v52 }
 0x60d   :  { %v3112_v56 = vpop.eup %3111  ;;  %3113 = vrcp.f32 %v2299_v53  ;;  %v2300_v57 = vadd.f32 1.0, %v3110_v54 }
 0x60e   :  { %3115 = vrcp.f32 %v2303_v55  ;;  %v2304_v58 = vadd.f32 1.0, %v3112_v56 }
 0x60f   :  { %3117 = vrcp.f32 %v2300_v57 }
 0x610   :  { %3119 = vrcp.f32 %v2304_v58 }
 0x617   :  { %v3114_v59 = vpop.eup %3113 }
 0x618   :  { %v3116_v60 = vpop.eup %3115 }
 0x619   :  { %v3118_v61 = vpop.eup %3117 }
 0x61a   :  { %v3120_v62 = vpop.eup %3119  ;;  %v2647_v63 = vpack.c.bf16 %v3118_v61, %v3114_v59 }
 0x61b   :  { %v2649_v0 = vpack.c.bf16 %v3120_v62, %v3116_v60 }
 0x61c   :  { %2349 = vst [vmem:[%s4095_s16] sm:$0xff] %v2647_v63 }
 0x61d   :  { %2351 = vst [vmem:[%s4095_s16 + $0x10] sm:$0xff] %v2649_v0 }
 0x63b   :  { %v2190_v8 = vpop.f32.mrb[28].mxu1 }
 0x63c   :  { %v2191_v9 = vadd.f32 %v2190_v8, %v1515_v3  ;;  %v2192_v10 = vpop.f32.mrb[29].mxu1 }
 0x63d   :  { %v2193_v11 = vadd.f32 %v2192_v10, %v1519_v6  ;;  %v2194_v41 = vpop.f32.mrb[30].mxu1 }
 0x63e   :  { %v2637_v12 = vmul.f32 -1.442695, %v2191_v9  ;;  %v2195_v13 = vpop.f32.mrb[31].mxu1 }
 0x63f   :  { %v2638_v14 = vmul.f32 -1.442695, %v2193_v11 }
 0x640   :  { %3121 = vpow2.f32 %v2637_v12 }
 0x641   :  { %3123 = vpow2.f32 %v2638_v14 }
 0x64a   :  { %v3122_v15 = vpop.eup %3121 }
 0x64b   :  { %v3124_v16 = vpop.eup %3123  ;;  %v2301_v17 = vadd.f32 1.0, %v3122_v15 }
 0x64c   :  { %v2302_v18 = vadd.f32 1.0, %v3124_v16 }
 0x64d   :  { %3125 = vrcp.f32 %v2301_v17 }
 0x64e   :  { %3127 = vrcp.f32 %v2302_v18 }
 0x657   :  { %v3126_v19 = vpop.eup %3125 }
 0x658   :  { %v3128_v21 = vpop.eup %3127 }
 0x659   :  { %v2648_v22 = vpack.c.bf16 %v3128_v21, %v3126_v19 }
 0x65b   :  { %2350 = vst [vmem:[%s4095_s16 + $0x8] sm:$0xff] %v2648_v22  ;;  %v2701_v23 = vpop.f32.mrb[32].mxu1 }
 0x65c   :  { %v2702_v25 = vpop.f32.mrb[33].mxu1 }
 0x65d   :  { %v2703_v26 = vadd.f32 %v2702_v25, %v2701_v23  ;;  %v2704_v27 = vpop.f32.mrb[34].mxu1 }
 0x65e   :  { %v2705_v28 = vpop.f32.mrb[35].mxu1 }
 0x65f   :  { %v2273_v29 = vadd.f32 %v2703_v26, %v1531_v24 }
 0x661   :  { %v2641_v31 = vmul.f32 -1.442695, %v2273_v29 }
 0x663   :  { %3129 = vpow2.f32 %v2641_v31 }
 0x66d   :  { %v3130_v32 = vpop.eup %3129 }
 0x66e   :  { %v2305_v33 = vadd.f32 1.0, %v3130_v32 }
 0x670   :  { %3131 = vrcp.f32 %v2305_v33 }
 0x67a   :  { %v3132_v4 = vpop.eup %3131 }
 0x67b   :  { %v2650_v34 = vpack.c.bf16 %v3132_v4, %v3132_v4 }
 0x67d   :  { %2353 = vst.msk [vmem:[%s4095_s16 + $0x18] sm:$0xf] %vm2352_vm6, %v2650_v34 }

</bundles_post_ra>
